<compile_context>
chip_gen: v6e
topology: v6e:2x2x1
jax: 0.10.0
libtpu: 0.0.40
codegen_flags: <defaults>
</compile_context>

<pallas_src>
import functools

import jax
import jax.numpy as jnp
import numpy as np
from jax import lax
from jax.experimental import pallas as pl
from jax.experimental.pallas import tpu as pltpu


def _round_up(x, m):
    return ((x + m - 1) // m) * m


# ----------------------------------------------------------------------------
# Wrapper-side activation repack for the tap-decomposed conv.
#   x:      [B, D, C, H, W]   bf16
#   xprep:  [B, Dp, 3(kw), n_ph, C, Lh*Wo]
# so that tap (kd, kh, kw) of output voxel (b, do, ho, wo) reads
#   xprep[b, s*do+kd, kw, kh % s, :, (kh // s + ho)*Wo + wo]
# i.e. a single contiguous lane slice per (kh, kw) inside the kernel.
# ----------------------------------------------------------------------------
def _prep_conv_input(x, stride):
    B, D, C, H, W = x.shape
    Do = (D - 1) // stride + 1
    Ho = (H - 1) // stride + 1
    Wo = (W - 1) // stride + 1
    xp = jnp.pad(x, ((0, 0), (1, 1), (0, 0), (1, 1), (1, 1)))
    Dp, Hp, Wp = D + 2, H + 2, W + 2
    if stride == 2 and Hp % 2:                 # make H phase split possible
        xp = jnp.pad(xp, ((0, 0), (0, 0), (0, 0), (0, 1), (0, 0)))
        Hp += 1
    n_ph = stride
    Lh = Hp // stride
    taps = []
    for kw in range(3):
        sl = lax.slice_in_dim(xp, kw, kw + stride * (Wo - 1) + 1,
                              stride=stride, axis=4)          # [B,Dp,C,Hp,Wo]
        if stride == 2:
            sl = sl.reshape(B, Dp, C, Lh, 2, Wo)
            sl = jnp.transpose(sl, (0, 1, 4, 2, 3, 5))        # [B,Dp,2,C,Lh,Wo]
        else:
            sl = sl[:, :, None]                               # [B,Dp,1,C,Hp,Wo]
        taps.append(sl)
    xprep = jnp.stack(taps, axis=2)                           # [B,Dp,3,n_ph,C,Lh,Wo]
    xprep = xprep.reshape(B, Dp, 3, n_ph, C, Lh * Wo)
    return xprep, (Do, Ho, Wo, n_ph, Lh * Wo)


# ----------------------------------------------------------------------------
# Kernel 1: tap-decomposed conv3d (+ bias + ReLU), accumulated in VMEM.
#   grid = (B, Do, 3); kd is the accumulation axis.
#   emit_colsum=True  -> write only per-(b, do) channel sums (for the pooling
#                        head); the activation never reaches HBM.
# ----------------------------------------------------------------------------
def _conv_tap_kernel(w_ref, b_ref, x_ref, o_ref, acc_ref, *,
                     stride, ho_out, wo_out, emit_colsum):
    kd = pl.program_id(2)
    n = ho_out * wo_out

    @pl.when(kd == 0)
    def _init():
        acc_ref[...] = jnp.zeros_like(acc_ref)

    acc = acc_ref[...]
    for kh in range(3):
        ph, oh = kh % stride, kh // stride
        start = oh * wo_out
        for kw in range(3):
            x2d = x_ref[kw, ph, :, start:start + n]           # [Cin, Ho*Wo] bf16
            acc = acc + jnp.dot(w_ref[kh, kw], x2d,
                                preferred_element_type=jnp.float32)
    acc_ref[...] = acc

    @pl.when(kd == pl.num_programs(2) - 1)
    def _finalize():
        act = jnp.maximum(acc_ref[...] + b_ref[...], 0.0)     # [Cout, Ho*Wo] f32
        if emit_colsum:
            o_ref[...] = jnp.sum(act, axis=1, keepdims=True)  # [Cout, 1]
        else:
            o_ref[...] = act.astype(o_ref.dtype)


def _conv_pallas(x, w, b, *, stride, emit_colsum):
    # x: [B, D, C, H, W] bf16 ; w: torch layout [Cout, Cin, 3, 3, 3]; b: [Cout]
    B, D, Cin, H, W = x.shape
    Cout = int(w.shape[0])
    xprep, (Do, Ho, Wo, n_ph, LhWo) = _prep_conv_input(x, stride)
    wr = jnp.transpose(w, (2, 3, 4, 0, 1)).astype(jnp.bfloat16)   # [3,3,3,Cout,Cin]
    bias = b.reshape(Cout, 1).astype(jnp.float32)
    n = Ho * Wo

    if emit_colsum:
        out_shape = jax.ShapeDtypeStruct((B, Do, Cout, 1), jnp.float32)
        out_spec = pl.BlockSpec((None, None, Cout, 1),
                                lambda bi, dz, kd: (bi, dz, 0, 0))
    else:
        out_shape = jax.ShapeDtypeStruct((B, Do, Cout, n), jnp.bfloat16)
        out_spec = pl.BlockSpec((None, None, Cout, n),
                                lambda bi, dz, kd: (bi, dz, 0, 0))

    kern = functools.partial(_conv_tap_kernel, stride=stride,
                             ho_out=Ho, wo_out=Wo, emit_colsum=emit_colsum)
    out = pl.pallas_call(
        kern,
        out_shape=out_shape,
        grid_spec=pltpu.PrefetchScalarGridSpec(
            num_scalar_prefetch=0,
            grid=(B, Do, 3),
            in_specs=[
                pl.BlockSpec((None, 3, 3, Cout, Cin),
                             lambda bi, dz, kd: (kd, 0, 0, 0, 0)),
                pl.BlockSpec((Cout, 1), lambda bi, dz, kd: (0, 0)),
                pl.BlockSpec((None, None, 3, n_ph, Cin, LhWo),
                             lambda bi, dz, kd: (bi, stride * dz + kd, 0, 0, 0, 0)),
            ],
            out_specs=out_spec,
            scratch_shapes=[pltpu.VMEM((Cout, n), jnp.float32)],
        ),
        compiler_params=pltpu.CompilerParams(
            dimension_semantics=("parallel", "parallel", "arbitrary")),
    )(wr, bias, xprep)
    return out, (Do, Ho, Wo)


def conv3d_relu(x, w, b, stride):
    out, (Do, Ho, Wo) = _conv_pallas(x, w, b, stride=stride, emit_colsum=False)
    return out.reshape(out.shape[0], Do, out.shape[2], Ho, Wo)   # [B,Do,Cout,Ho,Wo]


def conv3d_colsum(x, w, b, stride):
    psum, (Do, Ho, Wo) = _conv_pallas(x, w, b, stride=stride, emit_colsum=True)
    return psum, Do * Ho * Wo


# ----------------------------------------------------------------------------
# Kernel 2 (tiny): avg-pool normalize -> Linear -> LeakyReLU -> Linear -> tanh range
# ----------------------------------------------------------------------------
def _gamma_head_kernel(p_ref, w1_ref, b1_ref, w2_ref, g_ref, *, inv_count, lo, hi):
    pooled = jnp.sum(p_ref[...], axis=1) * inv_count          # [B, C2]
    h = jnp.dot(pooled, w1_ref[...],
                preferred_element_type=jnp.float32) + b1_ref[...]
    h = jnp.where(h > 0, h, 0.1 * h)                          # LeakyReLU(0.1)
    y = jnp.dot(h, w2_ref[...], preferred_element_type=jnp.float32)
    g_ref[...] = (jnp.tanh(y) * 0.5 + 0.5) * (hi - lo) + lo   # tanh_range


def gamma_head(psum, pool_count, fc1_w, fc1_b, fc2_w, gamma_range):
    B, Do, C2, _ = psum.shape
    C4 = int(fc1_w.shape[0])
    Cg = int(fc2_w.shape[0])
    kern = functools.partial(_gamma_head_kernel,
                             inv_count=1.0 / float(pool_count),
                             lo=float(gamma_range[0]), hi=float(gamma_range[1]))
    return pl.pallas_call(
        kern,
        out_shape=jax.ShapeDtypeStruct((B, Cg), jnp.float32),
    )(psum.reshape(B, Do, C2),
      jnp.transpose(fc1_w).astype(jnp.float32),
      fc1_b.reshape(1, C4).astype(jnp.float32),
      jnp.transpose(fc2_w).astype(jnp.float32))


# ----------------------------------------------------------------------------
# Kernel 3: out = img ** gamma, sublane-packed rows, ~1 MB lane-dense tiles.
# ----------------------------------------------------------------------------
def _apply_gamma_kernel(img_ref, g_ref, o_ref):
    # img ** g for img >= 0 and g >= 1 (gamma_range lower bound); img==0 -> 0.
    o_ref[...] = jnp.exp(g_ref[...] * jnp.log(img_ref[...]))


def apply_gamma(img, gamma, tile_elems=262144):
    # img: [B, C, D, H, W] f32 ; gamma: [B, C] f32
    B, C, D, H, W = img.shape
    S = D * H * W
    BC = B * C
    r = 1                                   # pack full 8-row sublane groups
    for cand in (1, 2, 4, 8):
        if (BC * cand) % 8 == 0 and S % cand == 0:
            r = cand
            break
    rows = BC * r
    S2 = S // r
    img_r = img.reshape(rows, S2)
    g_col = jnp.repeat(gamma.reshape(BC, 1), r, axis=0)       # [rows, 1]

    TS = min(_round_up(S2, 128),
             _round_up(max(tile_elems // max(rows, 1), 128), 128))
    S_pad = _round_up(S2, TS)
    if S_pad != S2:
        # pad with ones so log() stays finite in the (discarded) padded region
        img_r = jnp.pad(img_r, ((0, 0), (0, S_pad - S2)), constant_values=1.0)

    out = pl.pallas_call(
        _apply_gamma_kernel,
        out_shape=jax.ShapeDtypeStruct((rows, S_pad), jnp.float32),
        grid_spec=pltpu.PrefetchScalarGridSpec(
            num_scalar_prefetch=0,
            grid=(S_pad // TS,),
            in_specs=[
                pl.BlockSpec((rows, TS), lambda i: (0, i)),
                pl.BlockSpec((rows, 1), lambda i: (0, 0)),
            ],
            out_specs=pl.BlockSpec((rows, TS), lambda i: (0, i)),
        ),
        compiler_params=pltpu.CompilerParams(
            dimension_semantics=("parallel",)),
    )(img_r, g_col)
    return out[:, :S2].reshape(B, C, D, H, W)


# ----------------------------------------------------------------------------
# Full forward (matches AdaptiveGamma.forward)
# ----------------------------------------------------------------------------
def adaptive_gamma_forward(img, params, gamma_range=(1.0, 10.0)):
    # img: [B, C, D, H, W] (NCDHW, like PyTorch)
    # Trunk runs in [B, D, C, H, W] bf16; the cast/transpose is fused by XLA
    # into head1's pad/phase-split prep.
    x = jnp.transpose(img, (0, 2, 1, 3, 4)).astype(jnp.bfloat16)
    x = conv3d_relu(x, params["head1_w"], params["head1_b"], stride=2)
    x = conv3d_relu(x, params["body1_w"], params["body1_b"], stride=2)
    x = conv3d_relu(x, params["body2_w"], params["body2_b"], stride=2)
    psum, cnt = conv3d_colsum(x, params["body3_w"], params["body3_b"], stride=1)
    gamma = gamma_head(psum, cnt, params["fc1_w"], params["fc1_b"],
                       params["fc2_w"], gamma_range)              # [B, C] f32
    return apply_gamma(img, gamma)


# ----------------------------------------------------------------------------
# Deterministic parameter init (shapes from AdaptiveGamma.__init__, torch layout)
# ----------------------------------------------------------------------------
def init_params(key, in_ch=3, nf=8):
    ks = jax.random.split(key, 12)

    def conv_w(k, cout, cin):
        return jax.random.normal(k, (cout, cin, 3, 3, 3), jnp.float32) / jnp.sqrt(cin * 27.0)

    def vec(k, n):
        return jax.random.normal(k, (n,), jnp.float32) * 0.05

    return {
        "head1_w": conv_w(ks[0], nf, in_ch),        "head1_b": vec(ks[1], nf),
        "body1_w": conv_w(ks[2], nf * 2, nf),       "body1_b": vec(ks[3], nf * 2),
        "body2_w": conv_w(ks[4], nf * 4, nf * 2),   "body2_b": vec(ks[5], nf * 4),
        "body3_w": conv_w(ks[6], nf * 2, nf * 4),   "body3_b": vec(ks[7], nf * 2),
        "fc1_w": jax.random.normal(ks[8], (nf * 4, nf * 2), jnp.float32) / jnp.sqrt(nf * 2.0),
        "fc1_b": vec(ks[9], nf * 4),
        "fc2_w": jax.random.normal(ks[10], (in_ch, nf * 4), jnp.float32) / jnp.sqrt(nf * 4.0),
    }


# ----------------------------------------------------------------------------
# Pure-JAX reference (for correctness check only)
# ----------------------------------------------------------------------------
def _conv3d_relu_ref(x_ncdhw, w, b, stride):
    out = lax.conv_general_dilated(
        x_ncdhw, w, window_strides=(stride,) * 3, padding=[(1, 1)] * 3,
        dimension_numbers=("NCDHW", "OIDHW", "NCDHW"))
    return jnp.maximum(out + b[None, :, None, None, None], 0.0)


def adaptive_gamma_ref(img, params, gamma_range=(1.0, 10.0)):
    x = _conv3d_relu_ref(img, params["head1_w"], params["head1_b"], 2)
    x = _conv3d_relu_ref(x, params["body1_w"], params["body1_b"], 2)
    x = _conv3d_relu_ref(x, params["body2_w"], params["body2_b"], 2)
    x = _conv3d_relu_ref(x, params["body3_w"], params["body3_b"], 1)
    pooled = jnp.mean(x, axis=(2, 3, 4))
    h = pooled @ params["fc1_w"].T + params["fc1_b"]
    h = jnp.where(h > 0, h, 0.1 * h)
    y = h @ params["fc2_w"].T
    lo, hi = gamma_range
    g = (jnp.tanh(y) * 0.5 + 0.5) * (hi - lo) + lo
    return img ** g[:, :, None, None, None]


if __name__ == "__main__":
    key = jax.random.PRNGKey(0)
    k_img, k_par = jax.random.split(key)

    B, C, D, H, W = 2, 3, 16, 16, 16   # small 3D volume (Conv3d -> NCDHW input)
    nf = 8

    img = jax.random.uniform(k_img, (B, C, D, H, W), jnp.float32,
                             minval=0.05, maxval=1.0)
    params = init_params(k_par, in_ch=C, nf=nf)

    fwd = jax.jit(lambda im: adaptive_gamma_forward(im, params))
    out = jax.block_until_ready(fwd(img))

    ref = adaptive_gamma_ref(img, params)
    assert out.shape == (B, C, D, H, W)
    assert bool(jnp.isfinite(out).all())
    # trunk runs in bf16 (f32 accumulation); tolerance set accordingly
    np.testing.assert_allclose(np.asarray(out), np.asarray(ref),
                               rtol=3e-2, atol=3e-2)

    print("KERNEL_OK")
</pallas_src>

<mosaic_0001>
module attributes {stable_mosaic.version = 11 : i64} {
  func.func @_conv_tap_kernel(%arg0: i32, %arg1: i32, %arg2: i32, %arg3: memref<1x3x3x8x3xbf16, #tpu.memory_space<vmem>>, %arg4: memref<8x1xf32, #tpu.memory_space<vmem>>, %arg5: memref<1x1x3x2x3x72xbf16, #tpu.memory_space<vmem>>, %arg6: memref<1x1x8x64xbf16, #tpu.memory_space<vmem>>, %arg7: memref<8x64xf32, #tpu.memory_space<vmem>>) attributes {dimension_semantics = [#tpu.dimension_semantics<parallel>, #tpu.dimension_semantics<parallel>, #tpu.dimension_semantics<arbitrary>], iteration_bounds = array<i64: 2, 8, 3>, scalar_prefetch = 0 : i64, scratch_operands = 1 : i64, tpu.core_type = #tpu.core_type<tc>, window_params = [{transform_indices = @transform_0, window_bounds = array<i64: 1, 3, 3, 8, 3>}, {pipeline_mode = #tpu.pipeline_mode<synchronous>, transform_indices = @transform_1, window_bounds = array<i64: 8, 1>}, {transform_indices = @transform_2, window_bounds = array<i64: 1, 1, 3, 2, 3, 72>}, {transform_indices = @transform_3, window_bounds = array<i64: 1, 1, 8, 64>}]} {
    %c0_i32 = arith.constant 0 : i32
    %0 = arith.cmpi eq, %arg2, %c0_i32 : i32
    %1 = arith.extui %0 : i1 to i32
    %c0_i32_0 = arith.constant 0 : i32
    %2 = arith.cmpi ne, %1, %c0_i32_0 : i32
    scf.if %2 {
      %cst_109 = arith.constant 0.000000e+00 : f32
      %62 = vector.broadcast %cst_109 : f32 to vector<8x64xf32>
      %c0_110 = arith.constant 0 : index
      %c0_111 = arith.constant 0 : index
      %63 = vector.load %arg7[%c0_110, %c0_111] : memref<8x64xf32, #tpu.memory_space<vmem>>, vector<8x64xf32>
      tpu.vector_store %arg7[%c0_110, %c0_111], %62 {strides = array<i32>} : memref<8x64xf32, #tpu.memory_space<vmem>>, vector<8x64xf32>,
    } else {
    }
    %c0 = arith.constant 0 : index
    %c0_1 = arith.constant 0 : index
    %3 = vector.load %arg7[%c0, %c0_1] : memref<8x64xf32, #tpu.memory_space<vmem>>, vector<8x64xf32>
    %c0_2 = arith.constant 0 : index
    %c0_3 = arith.constant 0 : index
    %c0_4 = arith.constant 0 : index
    %c0_5 = arith.constant 0 : index
    %c0_6 = arith.constant 0 : index
    %c0_7 = arith.constant 0 : index
    %4 = vector.load %arg5[%c0_2, %c0_3, %c0_4, %c0_5, %c0_6, %c0_7] : memref<1x1x3x2x3x72xbf16, #tpu.memory_space<vmem>>, vector<1x1x1x1x3x64xbf16>
    %5 = vector.shape_cast %4 : vector<1x1x1x1x3x64xbf16> to vector<3x64xbf16>
    %c0_8 = arith.constant 0 : index
    %c0_9 = arith.constant 0 : index
    %c0_10 = arith.constant 0 : index
    %c0_11 = arith.constant 0 : index
    %c0_12 = arith.constant 0 : index
    %6 = vector.load %arg3[%c0_8, %c0_9, %c0_10, %c0_11, %c0_12] : memref<1x3x3x8x3xbf16, #tpu.memory_space<vmem>>, vector<1x1x1x8x3xbf16>
    %7 = vector.shape_cast %6 : vector<1x1x1x8x3xbf16> to vector<8x3xbf16>
    %cst = arith.constant dense<0.000000e+00> : vector<8x64xf32>
    %8 = tpu.matmul %7, %5, %cst {dimension_numbers = #tpu.dot_dimension_numbers<[1], [0], [0], [1], [0, 0, 1, 1], [], []>} : vector<8x3xbf16>, vector<3x64xbf16>, vector<8x64xf32> -> vector<8x64xf32>
    %9 = arith.addf %3, %8 : vector<8x64xf32>
    %c0_13 = arith.constant 0 : index
    %c0_14 = arith.constant 0 : index
    %c1 = arith.constant 1 : index
    %c0_15 = arith.constant 0 : index
    %c0_16 = arith.constant 0 : index
    %c0_17 = arith.constant 0 : index
    %10 = vector.load %arg5[%c0_13, %c0_14, %c1, %c0_15, %c0_16, %c0_17] : memref<1x1x3x2x3x72xbf16, #tpu.memory_space<vmem>>, vector<1x1x1x1x3x64xbf16>
    %11 = vector.shape_cast %10 : vector<1x1x1x1x3x64xbf16> to vector<3x64xbf16>
    %c0_18 = arith.constant 0 : index
    %c0_19 = arith.constant 0 : index
    %c1_20 = arith.constant 1 : index
    %c0_21 = arith.constant 0 : index
    %c0_22 = arith.constant 0 : index
    %12 = vector.load %arg3[%c0_18, %c0_19, %c1_20, %c0_21, %c0_22] : memref<1x3x3x8x3xbf16, #tpu.memory_space<vmem>>, vector<1x1x1x8x3xbf16>
    %13 = vector.shape_cast %12 : vector<1x1x1x8x3xbf16> to vector<8x3xbf16>
    %cst_23 = arith.constant dense<0.000000e+00> : vector<8x64xf32>
    %14 = tpu.matmul %13, %11, %cst_23 {dimension_numbers = #tpu.dot_dimension_numbers<[1], [0], [0], [1], [0, 0, 1, 1], [], []>} : vector<8x3xbf16>, vector<3x64xbf16>, vector<8x64xf32> -> vector<8x64xf32>
    %15 = arith.addf %9, %14 : vector<8x64xf32>
    %c0_24 = arith.constant 0 : index
    %c0_25 = arith.constant 0 : index
    %c2 = arith.constant 2 : index
    %c0_26 = arith.constant 0 : index
    %c0_27 = arith.constant 0 : index
    %c0_28 = arith.constant 0 : index
    %16 = vector.load %arg5[%c0_24, %c0_25, %c2, %c0_26, %c0_27, %c0_28] : memref<1x1x3x2x3x72xbf16, #tpu.memory_space<vmem>>, vector<1x1x1x1x3x64xbf16>
    %17 = vector.shape_cast %16 : vector<1x1x1x1x3x64xbf16> to vector<3x64xbf16>
    %c0_29 = arith.constant 0 : index
    %c0_30 = arith.constant 0 : index
    %c2_31 = arith.constant 2 : index
    %c0_32 = arith.constant 0 : index
    %c0_33 = arith.constant 0 : index
    %18 = vector.load %arg3[%c0_29, %c0_30, %c2_31, %c0_32, %c0_33] : memref<1x3x3x8x3xbf16, #tpu.memory_space<vmem>>, vector<1x1x1x8x3xbf16>
    %19 = vector.shape_cast %18 : vector<1x1x1x8x3xbf16> to vector<8x3xbf16>
    %cst_34 = arith.constant dense<0.000000e+00> : vector<8x64xf32>
    %20 = tpu.matmul %19, %17, %cst_34 {dimension_numbers = #tpu.dot_dimension_numbers<[1], [0], [0], [1], [0, 0, 1, 1], [], []>} : vector<8x3xbf16>, vector<3x64xbf16>, vector<8x64xf32> -> vector<8x64xf32>
    %21 = arith.addf %15, %20 : vector<8x64xf32>
    %c0_35 = arith.constant 0 : index
    %c0_36 = arith.constant 0 : index
    %c0_37 = arith.constant 0 : index
    %c1_38 = arith.constant 1 : index
    %c0_39 = arith.constant 0 : index
    %c0_40 = arith.constant 0 : index
    %22 = vector.load %arg5[%c0_35, %c0_36, %c0_37, %c1_38, %c0_39, %c0_40] : memref<1x1x3x2x3x72xbf16, #tpu.memory_space<vmem>>, vector<1x1x1x1x3x64xbf16>
    %23 = vector.shape_cast %22 : vector<1x1x1x1x3x64xbf16> to vector<3x64xbf16>
    %c0_41 = arith.constant 0 : index
    %c1_42 = arith.constant 1 : index
    %c0_43 = arith.constant 0 : index
    %c0_44 = arith.constant 0 : index
    %c0_45 = arith.constant 0 : index
    %24 = vector.load %arg3[%c0_41, %c1_42, %c0_43, %c0_44, %c0_45] : memref<1x3x3x8x3xbf16, #tpu.memory_space<vmem>>, vector<1x1x1x8x3xbf16>
    %25 = vector.shape_cast %24 : vector<1x1x1x8x3xbf16> to vector<8x3xbf16>
    %cst_46 = arith.constant dense<0.000000e+00> : vector<8x64xf32>
    %26 = tpu.matmul %25, %23, %cst_46 {dimension_numbers = #tpu.dot_dimension_numbers<[1], [0], [0], [1], [0, 0, 1, 1], [], []>} : vector<8x3xbf16>, vector<3x64xbf16>, vector<8x64xf32> -> vector<8x64xf32>
    %27 = arith.addf %21, %26 : vector<8x64xf32>
    %c0_47 = arith.constant 0 : index
    %c0_48 = arith.constant 0 : index
    %c1_49 = arith.constant 1 : index
    %c1_50 = arith.constant 1 : index
    %c0_51 = arith.constant 0 : index
    %c0_52 = arith.constant 0 : index
    %28 = vector.load %arg5[%c0_47, %c0_48, %c1_49, %c1_50, %c0_51, %c0_52] : memref<1x1x3x2x3x72xbf16, #tpu.memory_space<vmem>>, vector<1x1x1x1x3x64xbf16>
    %29 = vector.shape_cast %28 : vector<1x1x1x1x3x64xbf16> to vector<3x64xbf16>
    %c0_53 = arith.constant 0 : index
    %c1_54 = arith.constant 1 : index
    %c1_55 = arith.constant 1 : index
    %c0_56 = arith.constant 0 : index
    %c0_57 = arith.constant 0 : index
    %30 = vector.load %arg3[%c0_53, %c1_54, %c1_55, %c0_56, %c0_57] : memref<1x3x3x8x3xbf16, #tpu.memory_space<vmem>>, vector<1x1x1x8x3xbf16>
    %31 = vector.shape_cast %30 : vector<1x1x1x8x3xbf16> to vector<8x3xbf16>
    %cst_58 = arith.constant dense<0.000000e+00> : vector<8x64xf32>
    %32 = tpu.matmul %31, %29, %cst_58 {dimension_numbers = #tpu.dot_dimension_numbers<[1], [0], [0], [1], [0, 0, 1, 1], [], []>} : vector<8x3xbf16>, vector<3x64xbf16>, vector<8x64xf32> -> vector<8x64xf32>
    %33 = arith.addf %27, %32 : vector<8x64xf32>
    %c0_59 = arith.constant 0 : index
    %c0_60 = arith.constant 0 : index
    %c2_61 = arith.constant 2 : index
    %c1_62 = arith.constant 1 : index
    %c0_63 = arith.constant 0 : index
    %c0_64 = arith.constant 0 : index
    %34 = vector.load %arg5[%c0_59, %c0_60, %c2_61, %c1_62, %c0_63, %c0_64] : memref<1x1x3x2x3x72xbf16, #tpu.memory_space<vmem>>, vector<1x1x1x1x3x64xbf16>
    %35 = vector.shape_cast %34 : vector<1x1x1x1x3x64xbf16> to vector<3x64xbf16>
    %c0_65 = arith.constant 0 : index
    %c1_66 = arith.constant 1 : index
    %c2_67 = arith.constant 2 : index
    %c0_68 = arith.constant 0 : index
    %c0_69 = arith.constant 0 : index
    %36 = vector.load %arg3[%c0_65, %c1_66, %c2_67, %c0_68, %c0_69] : memref<1x3x3x8x3xbf16, #tpu.memory_space<vmem>>, vector<1x1x1x8x3xbf16>
    %37 = vector.shape_cast %36 : vector<1x1x1x8x3xbf16> to vector<8x3xbf16>
    %cst_70 = arith.constant dense<0.000000e+00> : vector<8x64xf32>
    %38 = tpu.matmul %37, %35, %cst_70 {dimension_numbers = #tpu.dot_dimension_numbers<[1], [0], [0], [1], [0, 0, 1, 1], [], []>} : vector<8x3xbf16>, vector<3x64xbf16>, vector<8x64xf32> -> vector<8x64xf32>
    %39 = arith.addf %33, %38 : vector<8x64xf32>
    %c0_71 = arith.constant 0 : index
    %c0_72 = arith.constant 0 : index
    %c0_73 = arith.constant 0 : index
    %c0_74 = arith.constant 0 : index
    %c0_75 = arith.constant 0 : index
    %c8 = arith.constant 8 : index
    %40 = vector.load %arg5[%c0_71, %c0_72, %c0_73, %c0_74, %c0_75, %c8] : memref<1x1x3x2x3x72xbf16, #tpu.memory_space<vmem>>, vector<1x1x1x1x3x64xbf16>
    %41 = vector.shape_cast %40 : vector<1x1x1x1x3x64xbf16> to vector<3x64xbf16>
    %c0_76 = arith.constant 0 : index
    %c2_77 = arith.constant 2 : index
    %c0_78 = arith.constant 0 : index
    %c0_79 = arith.constant 0 : index
    %c0_80 = arith.constant 0 : index
    %42 = vector.load %arg3[%c0_76, %c2_77, %c0_78, %c0_79, %c0_80] : memref<1x3x3x8x3xbf16, #tpu.memory_space<vmem>>, vector<1x1x1x8x3xbf16>
    %43 = vector.shape_cast %42 : vector<1x1x1x8x3xbf16> to vector<8x3xbf16>
    %cst_81 = arith.constant dense<0.000000e+00> : vector<8x64xf32>
    %44 = tpu.matmul %43, %41, %cst_81 {dimension_numbers = #tpu.dot_dimension_numbers<[1], [0], [0], [1], [0, 0, 1, 1], [], []>} : vector<8x3xbf16>, vector<3x64xbf16>, vector<8x64xf32> -> vector<8x64xf32>
    %45 = arith.addf %39, %44 : vector<8x64xf32>
    %c0_82 = arith.constant 0 : index
    %c0_83 = arith.constant 0 : index
    %c1_84 = arith.constant 1 : index
    %c0_85 = arith.constant 0 : index
    %c0_86 = arith.constant 0 : index
    %c8_87 = arith.constant 8 : index
    %46 = vector.load %arg5[%c0_82, %c0_83, %c1_84, %c0_85, %c0_86, %c8_87] : memref<1x1x3x2x3x72xbf16, #tpu.memory_space<vmem>>, vector<1x1x1x1x3x64xbf16>
    %47 = vector.shape_cast %46 : vector<1x1x1x1x3x64xbf16> to vector<3x64xbf16>
    %c0_88 = arith.constant 0 : index
    %c2_89 = arith.constant 2 : index
    %c1_90 = arith.constant 1 : index
    %c0_91 = arith.constant 0 : index
    %c0_92 = arith.constant 0 : index
    %48 = vector.load %arg3[%c0_88, %c2_89, %c1_90, %c0_91, %c0_92] : memref<1x3x3x8x3xbf16, #tpu.memory_space<vmem>>, vector<1x1x1x8x3xbf16>
    %49 = vector.shape_cast %48 : vector<1x1x1x8x3xbf16> to vector<8x3xbf16>
    %cst_93 = arith.constant dense<0.000000e+00> : vector<8x64xf32>
    %50 = tpu.matmul %49, %47, %cst_93 {dimension_numbers = #tpu.dot_dimension_numbers<[1], [0], [0], [1], [0, 0, 1, 1], [], []>} : vector<8x3xbf16>, vector<3x64xbf16>, vector<8x64xf32> -> vector<8x64xf32>
    %51 = arith.addf %45, %50 : vector<8x64xf32>
    %c0_94 = arith.constant 0 : index
    %c0_95 = arith.constant 0 : index
    %c2_96 = arith.constant 2 : index
    %c0_97 = arith.constant 0 : index
    %c0_98 = arith.constant 0 : index
    %c8_99 = arith.constant 8 : index
    %52 = vector.load %arg5[%c0_94, %c0_95, %c2_96, %c0_97, %c0_98, %c8_99] : memref<1x1x3x2x3x72xbf16, #tpu.memory_space<vmem>>, vector<1x1x1x1x3x64xbf16>
    %53 = vector.shape_cast %52 : vector<1x1x1x1x3x64xbf16> to vector<3x64xbf16>
    %c0_100 = arith.constant 0 : index
    %c2_101 = arith.constant 2 : index
    %c2_102 = arith.constant 2 : index
    %c0_103 = arith.constant 0 : index
    %c0_104 = arith.constant 0 : index
    %54 = vector.load %arg3[%c0_100, %c2_101, %c2_102, %c0_103, %c0_104] : memref<1x3x3x8x3xbf16, #tpu.memory_space<vmem>>, vector<1x1x1x8x3xbf16>
    %55 = vector.shape_cast %54 : vector<1x1x1x8x3xbf16> to vector<8x3xbf16>
    %cst_105 = arith.constant dense<0.000000e+00> : vector<8x64xf32>
    %56 = tpu.matmul %55, %53, %cst_105 {dimension_numbers = #tpu.dot_dimension_numbers<[1], [0], [0], [1], [0, 0, 1, 1], [], []>} : vector<8x3xbf16>, vector<3x64xbf16>, vector<8x64xf32> -> vector<8x64xf32>
    %57 = arith.addf %51, %56 : vector<8x64xf32>
    %c0_106 = arith.constant 0 : index
    %c0_107 = arith.constant 0 : index
    %58 = vector.load %arg7[%c0_106, %c0_107] : memref<8x64xf32, #tpu.memory_space<vmem>>, vector<8x64xf32>
    tpu.vector_store %arg7[%c0_106, %c0_107], %57 {strides = array<i32>} : memref<8x64xf32, #tpu.memory_space<vmem>>, vector<8x64xf32>,
    %c2_i32 = arith.constant 2 : i32
    %59 = arith.cmpi eq, %arg2, %c2_i32 : i32
    %60 = arith.extui %59 : i1 to i32
    %c0_i32_108 = arith.constant 0 : i32
    %61 = arith.cmpi ne, %60, %c0_i32_108 : i32
    scf.if %61 {
      %c0_109 = arith.constant 0 : index
      %c0_110 = arith.constant 0 : index
      %62 = vector.load %arg7[%c0_109, %c0_110] : memref<8x64xf32, #tpu.memory_space<vmem>>, vector<8x64xf32>
      %c0_111 = arith.constant 0 : index
      %c0_112 = arith.constant 0 : index
      %63 = vector.load %arg4[%c0_111, %c0_112] : memref<8x1xf32, #tpu.memory_space<vmem>>, vector<8x1xf32>
      %64 = vector.broadcast %63 : vector<8x1xf32> to vector<8x64xf32>
      %65 = arith.addf %62, %64 : vector<8x64xf32>
      %cst_113 = arith.constant 0.000000e+00 : f32
      %66 = vector.broadcast %cst_113 : f32 to vector<8x64xf32>
      %67 = arith.maximumf %65, %66 : vector<8x64xf32>
      %68 = arith.truncf %67 : vector<8x64xf32> to vector<8x64xbf16>
      %c0_114 = arith.constant 0 : index
      %c0_115 = arith.constant 0 : index
      %c0_116 = arith.constant 0 : index
      %c0_117 = arith.constant 0 : index
      %69 = vector.load %arg6[%c0_114, %c0_115, %c0_116, %c0_117] : memref<1x1x8x64xbf16, #tpu.memory_space<vmem>>, vector<1x1x8x64xbf16>
      %70 = vector.shape_cast %69 : vector<1x1x8x64xbf16> to vector<8x64xbf16>
      %71 = vector.shape_cast %68 : vector<8x64xbf16> to vector<1x1x8x64xbf16>
      tpu.vector_store %arg6[%c0_114, %c0_115, %c0_116, %c0_117], %71 {strides = array<i32>} : memref<1x1x8x64xbf16, #tpu.memory_space<vmem>>, vector<1x1x8x64xbf16>,
    } else {
    }
    return
  }
  func.func @transform_0(%arg0: i32, %arg1: i32, %arg2: i32) -> (i32, i32, i32, i32, i32) {
    %c0_i32 = arith.constant 0 : i32
    %c0_i32_0 = arith.constant 0 : i32
    %c0_i32_1 = arith.constant 0 : i32
    %c0_i32_2 = arith.constant 0 : i32
    %c0_i32_3 = arith.constant 0 : i32
    return %arg2, %c0_i32, %c0_i32_0, %c0_i32_1, %c0_i32_2 : i32, i32, i32, i32, i32
  }
  func.func @transform_1(%arg0: i32, %arg1: i32, %arg2: i32) -> (i32, i32) {
    %c0_i32 = arith.constant 0 : i32
    %c0_i32_0 = arith.constant 0 : i32
    %c0_i32_1 = arith.constant 0 : i32
    return %c0_i32, %c0_i32_0 : i32, i32
  }
  func.func @transform_2(%arg0: i32, %arg1: i32, %arg2: i32) -> (i32, i32, i32, i32, i32, i32) {
    %c2_i32 = arith.constant 2 : i32
    %0 = arith.muli %c2_i32, %arg1 : i32
    %1 = arith.addi %0, %arg2 : i32
    %c0_i32 = arith.constant 0 : i32
    %c0_i32_0 = arith.constant 0 : i32
    %c0_i32_1 = arith.constant 0 : i32
    %c0_i32_2 = arith.constant 0 : i32
    %c0_i32_3 = arith.constant 0 : i32
    return %arg0, %1, %c0_i32, %c0_i32_0, %c0_i32_1, %c0_i32_2 : i32, i32, i32, i32, i32, i32
  }
  func.func @transform_3(%arg0: i32, %arg1: i32, %arg2: i32) -> (i32, i32, i32, i32) {
    %c0_i32 = arith.constant 0 : i32
    %c0_i32_0 = arith.constant 0 : i32
    %c0_i32_1 = arith.constant 0 : i32
    return %arg0, %arg1, %c0_i32, %c0_i32_0 : i32, i32, i32, i32
  }
}

module attributes {stable_mosaic.version = 11 : i64} {
  func.func @_conv_tap_kernel(%arg0: i32, %arg1: i32, %arg2: i32, %arg3: memref<1x3x3x16x8xbf16, #tpu.memory_space<vmem>>, %arg4: memref<16x1xf32, #tpu.memory_space<vmem>>, %arg5: memref<1x1x3x2x8x20xbf16, #tpu.memory_space<vmem>>, %arg6: memref<1x1x16x16xbf16, #tpu.memory_space<vmem>>, %arg7: memref<16x16xf32, #tpu.memory_space<vmem>>) attributes {dimension_semantics = [#tpu.dimension_semantics<parallel>, #tpu.dimension_semantics<parallel>, #tpu.dimension_semantics<arbitrary>], iteration_bounds = array<i64: 2, 4, 3>, scalar_prefetch = 0 : i64, scratch_operands = 1 : i64, tpu.core_type = #tpu.core_type<tc>, window_params = [{transform_indices = @transform_0, window_bounds = array<i64: 1, 3, 3, 16, 8>}, {pipeline_mode = #tpu.pipeline_mode<synchronous>, transform_indices = @transform_1, window_bounds = array<i64: 16, 1>}, {transform_indices = @transform_2, window_bounds = array<i64: 1, 1, 3, 2, 8, 20>}, {transform_indices = @transform_3, window_bounds = array<i64: 1, 1, 16, 16>}]} {
    %c0_i32 = arith.constant 0 : i32
    %0 = arith.cmpi eq, %arg2, %c0_i32 : i32
    %1 = arith.extui %0 : i1 to i32
    %c0_i32_0 = arith.constant 0 : i32
    %2 = arith.cmpi ne, %1, %c0_i32_0 : i32
    scf.if %2 {
      %cst_109 = arith.constant 0.000000e+00 : f32
      %62 = vector.broadcast %cst_109 : f32 to vector<16x16xf32>
      %c0_110 = arith.constant 0 : index
      %c0_111 = arith.constant 0 : index
      %63 = vector.load %arg7[%c0_110, %c0_111] : memref<16x16xf32, #tpu.memory_space<vmem>>, vector<16x16xf32>
      tpu.vector_store %arg7[%c0_110, %c0_111], %62 {strides = array<i32>} : memref<16x16xf32, #tpu.memory_space<vmem>>, vector<16x16xf32>,
    } else {
    }
    %c0 = arith.constant 0 : index
    %c0_1 = arith.constant 0 : index
    %3 = vector.load %arg7[%c0, %c0_1] : memref<16x16xf32, #tpu.memory_space<vmem>>, vector<16x16xf32>
    %c0_2 = arith.constant 0 : index
    %c0_3 = arith.constant 0 : index
    %c0_4 = arith.constant 0 : index
    %c0_5 = arith.constant 0 : index
    %c0_6 = arith.constant 0 : index
    %c0_7 = arith.constant 0 : index
    %4 = vector.load %arg5[%c0_2, %c0_3, %c0_4, %c0_5, %c0_6, %c0_7] : memref<1x1x3x2x8x20xbf16, #tpu.memory_space<vmem>>, vector<1x1x1x1x8x16xbf16>
    %5 = vector.shape_cast %4 : vector<1x1x1x1x8x16xbf16> to vector<8x16xbf16>
    %c0_8 = arith.constant 0 : index
    %c0_9 = arith.constant 0 : index
    %c0_10 = arith.constant 0 : index
    %c0_11 = arith.constant 0 : index
    %c0_12 = arith.constant 0 : index
    %6 = vector.load %arg3[%c0_8, %c0_9, %c0_10, %c0_11, %c0_12] : memref<1x3x3x16x8xbf16, #tpu.memory_space<vmem>>, vector<1x1x1x16x8xbf16>
    %7 = vector.shape_cast %6 : vector<1x1x1x16x8xbf16> to vector<16x8xbf16>
    %cst = arith.constant dense<0.000000e+00> : vector<16x16xf32>
    %8 = tpu.matmul %7, %5, %cst {dimension_numbers = #tpu.dot_dimension_numbers<[1], [0], [0], [1], [0, 0, 1, 1], [], []>} : vector<16x8xbf16>, vector<8x16xbf16>, vector<16x16xf32> -> vector<16x16xf32>
    %9 = arith.addf %3, %8 : vector<16x16xf32>
    %c0_13 = arith.constant 0 : index
    %c0_14 = arith.constant 0 : index
    %c1 = arith.constant 1 : index
    %c0_15 = arith.constant 0 : index
    %c0_16 = arith.constant 0 : index
    %c0_17 = arith.constant 0 : index
    %10 = vector.load %arg5[%c0_13, %c0_14, %c1, %c0_15, %c0_16, %c0_17] : memref<1x1x3x2x8x20xbf16, #tpu.memory_space<vmem>>, vector<1x1x1x1x8x16xbf16>
    %11 = vector.shape_cast %10 : vector<1x1x1x1x8x16xbf16> to vector<8x16xbf16>
    %c0_18 = arith.constant 0 : index
    %c0_19 = arith.constant 0 : index
    %c1_20 = arith.constant 1 : index
    %c0_21 = arith.constant 0 : index
    %c0_22 = arith.constant 0 : index
    %12 = vector.load %arg3[%c0_18, %c0_19, %c1_20, %c0_21, %c0_22] : memref<1x3x3x16x8xbf16, #tpu.memory_space<vmem>>, vector<1x1x1x16x8xbf16>
    %13 = vector.shape_cast %12 : vector<1x1x1x16x8xbf16> to vector<16x8xbf16>
    %cst_23 = arith.constant dense<0.000000e+00> : vector<16x16xf32>
    %14 = tpu.matmul %13, %11, %cst_23 {dimension_numbers = #tpu.dot_dimension_numbers<[1], [0], [0], [1], [0, 0, 1, 1], [], []>} : vector<16x8xbf16>, vector<8x16xbf16>, vector<16x16xf32> -> vector<16x16xf32>
    %15 = arith.addf %9, %14 : vector<16x16xf32>
    %c0_24 = arith.constant 0 : index
    %c0_25 = arith.constant 0 : index
    %c2 = arith.constant 2 : index
    %c0_26 = arith.constant 0 : index
    %c0_27 = arith.constant 0 : index
    %c0_28 = arith.constant 0 : index
    %16 = vector.load %arg5[%c0_24, %c0_25, %c2, %c0_26, %c0_27, %c0_28] : memref<1x1x3x2x8x20xbf16, #tpu.memory_space<vmem>>, vector<1x1x1x1x8x16xbf16>
    %17 = vector.shape_cast %16 : vector<1x1x1x1x8x16xbf16> to vector<8x16xbf16>
    %c0_29 = arith.constant 0 : index
    %c0_30 = arith.constant 0 : index
    %c2_31 = arith.constant 2 : index
    %c0_32 = arith.constant 0 : index
    %c0_33 = arith.constant 0 : index
    %18 = vector.load %arg3[%c0_29, %c0_30, %c2_31, %c0_32, %c0_33] : memref<1x3x3x16x8xbf16, #tpu.memory_space<vmem>>, vector<1x1x1x16x8xbf16>
    %19 = vector.shape_cast %18 : vector<1x1x1x16x8xbf16> to vector<16x8xbf16>
    %cst_34 = arith.constant dense<0.000000e+00> : vector<16x16xf32>
    %20 = tpu.matmul %19, %17, %cst_34 {dimension_numbers = #tpu.dot_dimension_numbers<[1], [0], [0], [1], [0, 0, 1, 1], [], []>} : vector<16x8xbf16>, vector<8x16xbf16>, vector<16x16xf32> -> vector<16x16xf32>
    %21 = arith.addf %15, %20 : vector<16x16xf32>
    %c0_35 = arith.constant 0 : index
    %c0_36 = arith.constant 0 : index
    %c0_37 = arith.constant 0 : index
    %c1_38 = arith.constant 1 : index
    %c0_39 = arith.constant 0 : index
    %c0_40 = arith.constant 0 : index
    %22 = vector.load %arg5[%c0_35, %c0_36, %c0_37, %c1_38, %c0_39, %c0_40] : memref<1x1x3x2x8x20xbf16, #tpu.memory_space<vmem>>, vector<1x1x1x1x8x16xbf16>
    %23 = vector.shape_cast %22 : vector<1x1x1x1x8x16xbf16> to vector<8x16xbf16>
    %c0_41 = arith.constant 0 : index
    %c1_42 = arith.constant 1 : index
    %c0_43 = arith.constant 0 : index
    %c0_44 = arith.constant 0 : index
    %c0_45 = arith.constant 0 : index
    %24 = vector.load %arg3[%c0_41, %c1_42, %c0_43, %c0_44, %c0_45] : memref<1x3x3x16x8xbf16, #tpu.memory_space<vmem>>, vector<1x1x1x16x8xbf16>
    %25 = vector.shape_cast %24 : vector<1x1x1x16x8xbf16> to vector<16x8xbf16>
    %cst_46 = arith.constant dense<0.000000e+00> : vector<16x16xf32>
    %26 = tpu.matmul %25, %23, %cst_46 {dimension_numbers = #tpu.dot_dimension_numbers<[1], [0], [0], [1], [0, 0, 1, 1], [], []>} : vector<16x8xbf16>, vector<8x16xbf16>, vector<16x16xf32> -> vector<16x16xf32>
    %27 = arith.addf %21, %26 : vector<16x16xf32>
    %c0_47 = arith.constant 0 : index
    %c0_48 = arith.constant 0 : index
    %c1_49 = arith.constant 1 : index
    %c1_50 = arith.constant 1 : index
    %c0_51 = arith.constant 0 : index
    %c0_52 = arith.constant 0 : index
    %28 = vector.load %arg5[%c0_47, %c0_48, %c1_49, %c1_50, %c0_51, %c0_52] : memref<1x1x3x2x8x20xbf16, #tpu.memory_space<vmem>>, vector<1x1x1x1x8x16xbf16>
    %29 = vector.shape_cast %28 : vector<1x1x1x1x8x16xbf16> to vector<8x16xbf16>
    %c0_53 = arith.constant 0 : index
    %c1_54 = arith.constant 1 : index
    %c1_55 = arith.constant 1 : index
    %c0_56 = arith.constant 0 : index
    %c0_57 = arith.constant 0 : index
    %30 = vector.load %arg3[%c0_53, %c1_54, %c1_55, %c0_56, %c0_57] : memref<1x3x3x16x8xbf16, #tpu.memory_space<vmem>>, vector<1x1x1x16x8xbf16>
    %31 = vector.shape_cast %30 : vector<1x1x1x16x8xbf16> to vector<16x8xbf16>
    %cst_58 = arith.constant dense<0.000000e+00> : vector<16x16xf32>
    %32 = tpu.matmul %31, %29, %cst_58 {dimension_numbers = #tpu.dot_dimension_numbers<[1], [0], [0], [1], [0, 0, 1, 1], [], []>} : vector<16x8xbf16>, vector<8x16xbf16>, vector<16x16xf32> -> vector<16x16xf32>
    %33 = arith.addf %27, %32 : vector<16x16xf32>
    %c0_59 = arith.constant 0 : index
    %c0_60 = arith.constant 0 : index
    %c2_61 = arith.constant 2 : index
    %c1_62 = arith.constant 1 : index
    %c0_63 = arith.constant 0 : index
    %c0_64 = arith.constant 0 : index
    %34 = vector.load %arg5[%c0_59, %c0_60, %c2_61, %c1_62, %c0_63, %c0_64] : memref<1x1x3x2x8x20xbf16, #tpu.memory_space<vmem>>, vector<1x1x1x1x8x16xbf16>
    %35 = vector.shape_cast %34 : vector<1x1x1x1x8x16xbf16> to vector<8x16xbf16>
    %c0_65 = arith.constant 0 : index
    %c1_66 = arith.constant 1 : index
    %c2_67 = arith.constant 2 : index
    %c0_68 = arith.constant 0 : index
    %c0_69 = arith.constant 0 : index
    %36 = vector.load %arg3[%c0_65, %c1_66, %c2_67, %c0_68, %c0_69] : memref<1x3x3x16x8xbf16, #tpu.memory_space<vmem>>, vector<1x1x1x16x8xbf16>
    %37 = vector.shape_cast %36 : vector<1x1x1x16x8xbf16> to vector<16x8xbf16>
    %cst_70 = arith.constant dense<0.000000e+00> : vector<16x16xf32>
    %38 = tpu.matmul %37, %35, %cst_70 {dimension_numbers = #tpu.dot_dimension_numbers<[1], [0], [0], [1], [0, 0, 1, 1], [], []>} : vector<16x8xbf16>, vector<8x16xbf16>, vector<16x16xf32> -> vector<16x16xf32>
    %39 = arith.addf %33, %38 : vector<16x16xf32>
    %c0_71 = arith.constant 0 : index
    %c0_72 = arith.constant 0 : index
    %c0_73 = arith.constant 0 : index
    %c0_74 = arith.constant 0 : index
    %c0_75 = arith.constant 0 : index
    %c4 = arith.constant 4 : index
    %40 = vector.load %arg5[%c0_71, %c0_72, %c0_73, %c0_74, %c0_75, %c4] : memref<1x1x3x2x8x20xbf16, #tpu.memory_space<vmem>>, vector<1x1x1x1x8x16xbf16>
    %41 = vector.shape_cast %40 : vector<1x1x1x1x8x16xbf16> to vector<8x16xbf16>
    %c0_76 = arith.constant 0 : index
    %c2_77 = arith.constant 2 : index
    %c0_78 = arith.constant 0 : index
    %c0_79 = arith.constant 0 : index
    %c0_80 = arith.constant 0 : index
    %42 = vector.load %arg3[%c0_76, %c2_77, %c0_78, %c0_79, %c0_80] : memref<1x3x3x16x8xbf16, #tpu.memory_space<vmem>>, vector<1x1x1x16x8xbf16>
    %43 = vector.shape_cast %42 : vector<1x1x1x16x8xbf16> to vector<16x8xbf16>
    %cst_81 = arith.constant dense<0.000000e+00> : vector<16x16xf32>
    %44 = tpu.matmul %43, %41, %cst_81 {dimension_numbers = #tpu.dot_dimension_numbers<[1], [0], [0], [1], [0, 0, 1, 1], [], []>} : vector<16x8xbf16>, vector<8x16xbf16>, vector<16x16xf32> -> vector<16x16xf32>
    %45 = arith.addf %39, %44 : vector<16x16xf32>
    %c0_82 = arith.constant 0 : index
    %c0_83 = arith.constant 0 : index
    %c1_84 = arith.constant 1 : index
    %c0_85 = arith.constant 0 : index
    %c0_86 = arith.constant 0 : index
    %c4_87 = arith.constant 4 : index
    %46 = vector.load %arg5[%c0_82, %c0_83, %c1_84, %c0_85, %c0_86, %c4_87] : memref<1x1x3x2x8x20xbf16, #tpu.memory_space<vmem>>, vector<1x1x1x1x8x16xbf16>
    %47 = vector.shape_cast %46 : vector<1x1x1x1x8x16xbf16> to vector<8x16xbf16>
    %c0_88 = arith.constant 0 : index
    %c2_89 = arith.constant 2 : index
    %c1_90 = arith.constant 1 : index
    %c0_91 = arith.constant 0 : index
    %c0_92 = arith.constant 0 : index
    %48 = vector.load %arg3[%c0_88, %c2_89, %c1_90, %c0_91, %c0_92] : memref<1x3x3x16x8xbf16, #tpu.memory_space<vmem>>, vector<1x1x1x16x8xbf16>
    %49 = vector.shape_cast %48 : vector<1x1x1x16x8xbf16> to vector<16x8xbf16>
    %cst_93 = arith.constant dense<0.000000e+00> : vector<16x16xf32>
    %50 = tpu.matmul %49, %47, %cst_93 {dimension_numbers = #tpu.dot_dimension_numbers<[1], [0], [0], [1], [0, 0, 1, 1], [], []>} : vector<16x8xbf16>, vector<8x16xbf16>, vector<16x16xf32> -> vector<16x16xf32>
    %51 = arith.addf %45, %50 : vector<16x16xf32>
    %c0_94 = arith.constant 0 : index
    %c0_95 = arith.constant 0 : index
    %c2_96 = arith.constant 2 : index
    %c0_97 = arith.constant 0 : index
    %c0_98 = arith.constant 0 : index
    %c4_99 = arith.constant 4 : index
    %52 = vector.load %arg5[%c0_94, %c0_95, %c2_96, %c0_97, %c0_98, %c4_99] : memref<1x1x3x2x8x20xbf16, #tpu.memory_space<vmem>>, vector<1x1x1x1x8x16xbf16>
    %53 = vector.shape_cast %52 : vector<1x1x1x1x8x16xbf16> to vector<8x16xbf16>
    %c0_100 = arith.constant 0 : index
    %c2_101 = arith.constant 2 : index
    %c2_102 = arith.constant 2 : index
    %c0_103 = arith.constant 0 : index
    %c0_104 = arith.constant 0 : index
    %54 = vector.load %arg3[%c0_100, %c2_101, %c2_102, %c0_103, %c0_104] : memref<1x3x3x16x8xbf16, #tpu.memory_space<vmem>>, vector<1x1x1x16x8xbf16>
    %55 = vector.shape_cast %54 : vector<1x1x1x16x8xbf16> to vector<16x8xbf16>
    %cst_105 = arith.constant dense<0.000000e+00> : vector<16x16xf32>
    %56 = tpu.matmul %55, %53, %cst_105 {dimension_numbers = #tpu.dot_dimension_numbers<[1], [0], [0], [1], [0, 0, 1, 1], [], []>} : vector<16x8xbf16>, vector<8x16xbf16>, vector<16x16xf32> -> vector<16x16xf32>
    %57 = arith.addf %51, %56 : vector<16x16xf32>
    %c0_106 = arith.constant 0 : index
    %c0_107 = arith.constant 0 : index
    %58 = vector.load %arg7[%c0_106, %c0_107] : memref<16x16xf32, #tpu.memory_space<vmem>>, vector<16x16xf32>
    tpu.vector_store %arg7[%c0_106, %c0_107], %57 {strides = array<i32>} : memref<16x16xf32, #tpu.memory_space<vmem>>, vector<16x16xf32>,
    %c2_i32 = arith.constant 2 : i32
    %59 = arith.cmpi eq, %arg2, %c2_i32 : i32
    %60 = arith.extui %59 : i1 to i32
    %c0_i32_108 = arith.constant 0 : i32
    %61 = arith.cmpi ne, %60, %c0_i32_108 : i32
    scf.if %61 {
      %c0_109 = arith.constant 0 : index
      %c0_110 = arith.constant 0 : index
      %62 = vector.load %arg7[%c0_109, %c0_110] : memref<16x16xf32, #tpu.memory_space<vmem>>, vector<16x16xf32>
      %c0_111 = arith.constant 0 : index
      %c0_112 = arith.constant 0 : index
      %63 = vector.load %arg4[%c0_111, %c0_112] : memref<16x1xf32, #tpu.memory_space<vmem>>, vector<16x1xf32>
      %64 = vector.broadcast %63 : vector<16x1xf32> to vector<16x16xf32>
      %65 = arith.addf %62, %64 : vector<16x16xf32>
      %cst_113 = arith.constant 0.000000e+00 : f32
      %66 = vector.broadcast %cst_113 : f32 to vector<16x16xf32>
      %67 = arith.maximumf %65, %66 : vector<16x16xf32>
      %68 = arith.truncf %67 : vector<16x16xf32> to vector<16x16xbf16>
      %c0_114 = arith.constant 0 : index
      %c0_115 = arith.constant 0 : index
      %c0_116 = arith.constant 0 : index
      %c0_117 = arith.constant 0 : index
      %69 = vector.load %arg6[%c0_114, %c0_115, %c0_116, %c0_117] : memref<1x1x16x16xbf16, #tpu.memory_space<vmem>>, vector<1x1x16x16xbf16>
      %70 = vector.shape_cast %69 : vector<1x1x16x16xbf16> to vector<16x16xbf16>
      %71 = vector.shape_cast %68 : vector<16x16xbf16> to vector<1x1x16x16xbf16>
      tpu.vector_store %arg6[%c0_114, %c0_115, %c0_116, %c0_117], %71 {strides = array<i32>} : memref<1x1x16x16xbf16, #tpu.memory_space<vmem>>, vector<1x1x16x16xbf16>,
    } else {
    }
    return
  }
  func.func @transform_0(%arg0: i32, %arg1: i32, %arg2: i32) -> (i32, i32, i32, i32, i32) {
    %c0_i32 = arith.constant 0 : i32
    %c0_i32_0 = arith.constant 0 : i32
    %c0_i32_1 = arith.constant 0 : i32
    %c0_i32_2 = arith.constant 0 : i32
    %c0_i32_3 = arith.constant 0 : i32
    return %arg2, %c0_i32, %c0_i32_0, %c0_i32_1, %c0_i32_2 : i32, i32, i32, i32, i32
  }
  func.func @transform_1(%arg0: i32, %arg1: i32, %arg2: i32) -> (i32, i32) {
    %c0_i32 = arith.constant 0 : i32
    %c0_i32_0 = arith.constant 0 : i32
    %c0_i32_1 = arith.constant 0 : i32
    return %c0_i32, %c0_i32_0 : i32, i32
  }
  func.func @transform_2(%arg0: i32, %arg1: i32, %arg2: i32) -> (i32, i32, i32, i32, i32, i32) {
    %c2_i32 = arith.constant 2 : i32
    %0 = arith.muli %c2_i32, %arg1 : i32
    %1 = arith.addi %0, %arg2 : i32
    %c0_i32 = arith.constant 0 : i32
    %c0_i32_0 = arith.constant 0 : i32
    %c0_i32_1 = arith.constant 0 : i32
    %c0_i32_2 = arith.constant 0 : i32
    %c0_i32_3 = arith.constant 0 : i32
    return %arg0, %1, %c0_i32, %c0_i32_0, %c0_i32_1, %c0_i32_2 : i32, i32, i32, i32, i32, i32
  }
  func.func @transform_3(%arg0: i32, %arg1: i32, %arg2: i32) -> (i32, i32, i32, i32) {
    %c0_i32 = arith.constant 0 : i32
    %c0_i32_0 = arith.constant 0 : i32
    %c0_i32_1 = arith.constant 0 : i32
    return %arg0, %arg1, %c0_i32, %c0_i32_0 : i32, i32, i32, i32
  }
}

module attributes {stable_mosaic.version = 11 : i64} {
  func.func @_conv_tap_kernel(%arg0: i32, %arg1: i32, %arg2: i32, %arg3: memref<1x3x3x32x16xbf16, #tpu.memory_space<vmem>>, %arg4: memref<32x1xf32, #tpu.memory_space<vmem>>, %arg5: memref<1x1x3x2x16x6xbf16, #tpu.memory_space<vmem>>, %arg6: memref<1x1x32x4xbf16, #tpu.memory_space<vmem>>, %arg7: memref<32x4xf32, #tpu.memory_space<vmem>>) attributes {dimension_semantics = [#tpu.dimension_semantics<parallel>, #tpu.dimension_semantics<parallel>, #tpu.dimension_semantics<arbitrary>], iteration_bounds = array<i64: 2, 2, 3>, scalar_prefetch = 0 : i64, scratch_operands = 1 : i64, tpu.core_type = #tpu.core_type<tc>, window_params = [{transform_indices = @transform_0, window_bounds = array<i64: 1, 3, 3, 32, 16>}, {pipeline_mode = #tpu.pipeline_mode<synchronous>, transform_indices = @transform_1, window_bounds = array<i64: 32, 1>}, {transform_indices = @transform_2, window_bounds = array<i64: 1, 1, 3, 2, 16, 6>}, {transform_indices = @transform_3, window_bounds = array<i64: 1, 1, 32, 4>}]} {
    %c0_i32 = arith.constant 0 : i32
    %0 = arith.cmpi eq, %arg2, %c0_i32 : i32
    %1 = arith.extui %0 : i1 to i32
    %c0_i32_0 = arith.constant 0 : i32
    %2 = arith.cmpi ne, %1, %c0_i32_0 : i32
    scf.if %2 {
      %cst_110 = arith.constant 0.000000e+00 : f32
      %62 = vector.broadcast %cst_110 : f32 to vector<32x4xf32>
      %c0_111 = arith.constant 0 : index
      %c0_112 = arith.constant 0 : index
      %63 = vector.load %arg7[%c0_111, %c0_112] : memref<32x4xf32, #tpu.memory_space<vmem>>, vector<32x4xf32>
      tpu.vector_store %arg7[%c0_111, %c0_112], %62 {strides = array<i32>} : memref<32x4xf32, #tpu.memory_space<vmem>>, vector<32x4xf32>,
    } else {
    }
    %c0 = arith.constant 0 : index
    %c0_1 = arith.constant 0 : index
    %3 = vector.load %arg7[%c0, %c0_1] : memref<32x4xf32, #tpu.memory_space<vmem>>, vector<32x4xf32>
    %c0_2 = arith.constant 0 : index
    %c0_3 = arith.constant 0 : index
    %c0_4 = arith.constant 0 : index
    %c0_5 = arith.constant 0 : index
    %c0_6 = arith.constant 0 : index
    %c0_7 = arith.constant 0 : index
    %4 = vector.load %arg5[%c0_2, %c0_3, %c0_4, %c0_5, %c0_6, %c0_7] : memref<1x1x3x2x16x6xbf16, #tpu.memory_space<vmem>>, vector<1x1x1x1x16x4xbf16>
    %5 = vector.shape_cast %4 : vector<1x1x1x1x16x4xbf16> to vector<16x4xbf16>
    %c0_8 = arith.constant 0 : index
    %c0_9 = arith.constant 0 : index
    %c0_10 = arith.constant 0 : index
    %c0_11 = arith.constant 0 : index
    %c0_12 = arith.constant 0 : index
    %6 = vector.load %arg3[%c0_8, %c0_9, %c0_10, %c0_11, %c0_12] : memref<1x3x3x32x16xbf16, #tpu.memory_space<vmem>>, vector<1x1x1x32x16xbf16>
    %7 = vector.shape_cast %6 : vector<1x1x1x32x16xbf16> to vector<32x16xbf16>
    %cst = arith.constant dense<0.000000e+00> : vector<32x4xf32>
    %8 = tpu.matmul %7, %5, %cst {dimension_numbers = #tpu.dot_dimension_numbers<[1], [0], [0], [1], [0, 0, 1, 1], [], []>} : vector<32x16xbf16>, vector<16x4xbf16>, vector<32x4xf32> -> vector<32x4xf32>
    %9 = arith.addf %3, %8 : vector<32x4xf32>
    %c0_13 = arith.constant 0 : index
    %c0_14 = arith.constant 0 : index
    %c1 = arith.constant 1 : index
    %c0_15 = arith.constant 0 : index
    %c0_16 = arith.constant 0 : index
    %c0_17 = arith.constant 0 : index
    %10 = vector.load %arg5[%c0_13, %c0_14, %c1, %c0_15, %c0_16, %c0_17] : memref<1x1x3x2x16x6xbf16, #tpu.memory_space<vmem>>, vector<1x1x1x1x16x4xbf16>
    %11 = vector.shape_cast %10 : vector<1x1x1x1x16x4xbf16> to vector<16x4xbf16>
    %c0_18 = arith.constant 0 : index
    %c0_19 = arith.constant 0 : index
    %c1_20 = arith.constant 1 : index
    %c0_21 = arith.constant 0 : index
    %c0_22 = arith.constant 0 : index
    %12 = vector.load %arg3[%c0_18, %c0_19, %c1_20, %c0_21, %c0_22] : memref<1x3x3x32x16xbf16, #tpu.memory_space<vmem>>, vector<1x1x1x32x16xbf16>
    %13 = vector.shape_cast %12 : vector<1x1x1x32x16xbf16> to vector<32x16xbf16>
    %cst_23 = arith.constant dense<0.000000e+00> : vector<32x4xf32>
    %14 = tpu.matmul %13, %11, %cst_23 {dimension_numbers = #tpu.dot_dimension_numbers<[1], [0], [0], [1], [0, 0, 1, 1], [], []>} : vector<32x16xbf16>, vector<16x4xbf16>, vector<32x4xf32> -> vector<32x4xf32>
    %15 = arith.addf %9, %14 : vector<32x4xf32>
    %c0_24 = arith.constant 0 : index
    %c0_25 = arith.constant 0 : index
    %c2 = arith.constant 2 : index
    %c0_26 = arith.constant 0 : index
    %c0_27 = arith.constant 0 : index
    %c0_28 = arith.constant 0 : index
    %16 = vector.load %arg5[%c0_24, %c0_25, %c2, %c0_26, %c0_27, %c0_28] : memref<1x1x3x2x16x6xbf16, #tpu.memory_space<vmem>>, vector<1x1x1x1x16x4xbf16>
    %17 = vector.shape_cast %16 : vector<1x1x1x1x16x4xbf16> to vector<16x4xbf16>
    %c0_29 = arith.constant 0 : index
    %c0_30 = arith.constant 0 : index
    %c2_31 = arith.constant 2 : index
    %c0_32 = arith.constant 0 : index
    %c0_33 = arith.constant 0 : index
    %18 = vector.load %arg3[%c0_29, %c0_30, %c2_31, %c0_32, %c0_33] : memref<1x3x3x32x16xbf16, #tpu.memory_space<vmem>>, vector<1x1x1x32x16xbf16>
    %19 = vector.shape_cast %18 : vector<1x1x1x32x16xbf16> to vector<32x16xbf16>
    %cst_34 = arith.constant dense<0.000000e+00> : vector<32x4xf32>
    %20 = tpu.matmul %19, %17, %cst_34 {dimension_numbers = #tpu.dot_dimension_numbers<[1], [0], [0], [1], [0, 0, 1, 1], [], []>} : vector<32x16xbf16>, vector<16x4xbf16>, vector<32x4xf32> -> vector<32x4xf32>
    %21 = arith.addf %15, %20 : vector<32x4xf32>
    %c0_35 = arith.constant 0 : index
    %c0_36 = arith.constant 0 : index
    %c0_37 = arith.constant 0 : index
    %c1_38 = arith.constant 1 : index
    %c0_39 = arith.constant 0 : index
    %c0_40 = arith.constant 0 : index
    %22 = vector.load %arg5[%c0_35, %c0_36, %c0_37, %c1_38, %c0_39, %c0_40] : memref<1x1x3x2x16x6xbf16, #tpu.memory_space<vmem>>, vector<1x1x1x1x16x4xbf16>
    %23 = vector.shape_cast %22 : vector<1x1x1x1x16x4xbf16> to vector<16x4xbf16>
    %c0_41 = arith.constant 0 : index
    %c1_42 = arith.constant 1 : index
    %c0_43 = arith.constant 0 : index
    %c0_44 = arith.constant 0 : index
    %c0_45 = arith.constant 0 : index
    %24 = vector.load %arg3[%c0_41, %c1_42, %c0_43, %c0_44, %c0_45] : memref<1x3x3x32x16xbf16, #tpu.memory_space<vmem>>, vector<1x1x1x32x16xbf16>
    %25 = vector.shape_cast %24 : vector<1x1x1x32x16xbf16> to vector<32x16xbf16>
    %cst_46 = arith.constant dense<0.000000e+00> : vector<32x4xf32>
    %26 = tpu.matmul %25, %23, %cst_46 {dimension_numbers = #tpu.dot_dimension_numbers<[1], [0], [0], [1], [0, 0, 1, 1], [], []>} : vector<32x16xbf16>, vector<16x4xbf16>, vector<32x4xf32> -> vector<32x4xf32>
    %27 = arith.addf %21, %26 : vector<32x4xf32>
    %c0_47 = arith.constant 0 : index
    %c0_48 = arith.constant 0 : index
    %c1_49 = arith.constant 1 : index
    %c1_50 = arith.constant 1 : index
    %c0_51 = arith.constant 0 : index
    %c0_52 = arith.constant 0 : index
    %28 = vector.load %arg5[%c0_47, %c0_48, %c1_49, %c1_50, %c0_51, %c0_52] : memref<1x1x3x2x16x6xbf16, #tpu.memory_space<vmem>>, vector<1x1x1x1x16x4xbf16>
    %29 = vector.shape_cast %28 : vector<1x1x1x1x16x4xbf16> to vector<16x4xbf16>
    %c0_53 = arith.constant 0 : index
    %c1_54 = arith.constant 1 : index
    %c1_55 = arith.constant 1 : index
    %c0_56 = arith.constant 0 : index
    %c0_57 = arith.constant 0 : index
    %30 = vector.load %arg3[%c0_53, %c1_54, %c1_55, %c0_56, %c0_57] : memref<1x3x3x32x16xbf16, #tpu.memory_space<vmem>>, vector<1x1x1x32x16xbf16>
    %31 = vector.shape_cast %30 : vector<1x1x1x32x16xbf16> to vector<32x16xbf16>
    %cst_58 = arith.constant dense<0.000000e+00> : vector<32x4xf32>
    %32 = tpu.matmul %31, %29, %cst_58 {dimension_numbers = #tpu.dot_dimension_numbers<[1], [0], [0], [1], [0, 0, 1, 1], [], []>} : vector<32x16xbf16>, vector<16x4xbf16>, vector<32x4xf32> -> vector<32x4xf32>
    %33 = arith.addf %27, %32 : vector<32x4xf32>
    %c0_59 = arith.constant 0 : index
    %c0_60 = arith.constant 0 : index
    %c2_61 = arith.constant 2 : index
    %c1_62 = arith.constant 1 : index
    %c0_63 = arith.constant 0 : index
    %c0_64 = arith.constant 0 : index
    %34 = vector.load %arg5[%c0_59, %c0_60, %c2_61, %c1_62, %c0_63, %c0_64] : memref<1x1x3x2x16x6xbf16, #tpu.memory_space<vmem>>, vector<1x1x1x1x16x4xbf16>
    %35 = vector.shape_cast %34 : vector<1x1x1x1x16x4xbf16> to vector<16x4xbf16>
    %c0_65 = arith.constant 0 : index
    %c1_66 = arith.constant 1 : index
    %c2_67 = arith.constant 2 : index
    %c0_68 = arith.constant 0 : index
    %c0_69 = arith.constant 0 : index
    %36 = vector.load %arg3[%c0_65, %c1_66, %c2_67, %c0_68, %c0_69] : memref<1x3x3x32x16xbf16, #tpu.memory_space<vmem>>, vector<1x1x1x32x16xbf16>
    %37 = vector.shape_cast %36 : vector<1x1x1x32x16xbf16> to vector<32x16xbf16>
    %cst_70 = arith.constant dense<0.000000e+00> : vector<32x4xf32>
    %38 = tpu.matmul %37, %35, %cst_70 {dimension_numbers = #tpu.dot_dimension_numbers<[1], [0], [0], [1], [0, 0, 1, 1], [], []>} : vector<32x16xbf16>, vector<16x4xbf16>, vector<32x4xf32> -> vector<32x4xf32>
    %39 = arith.addf %33, %38 : vector<32x4xf32>
    %c0_71 = arith.constant 0 : index
    %c0_72 = arith.constant 0 : index
    %c0_73 = arith.constant 0 : index
    %c0_74 = arith.constant 0 : index
    %c0_75 = arith.constant 0 : index
    %c2_76 = arith.constant 2 : index
    %40 = vector.load %arg5[%c0_71, %c0_72, %c0_73, %c0_74, %c0_75, %c2_76] : memref<1x1x3x2x16x6xbf16, #tpu.memory_space<vmem>>, vector<1x1x1x1x16x4xbf16>
    %41 = vector.shape_cast %40 : vector<1x1x1x1x16x4xbf16> to vector<16x4xbf16>
    %c0_77 = arith.constant 0 : index
    %c2_78 = arith.constant 2 : index
    %c0_79 = arith.constant 0 : index
    %c0_80 = arith.constant 0 : index
    %c0_81 = arith.constant 0 : index
    %42 = vector.load %arg3[%c0_77, %c2_78, %c0_79, %c0_80, %c0_81] : memref<1x3x3x32x16xbf16, #tpu.memory_space<vmem>>, vector<1x1x1x32x16xbf16>
    %43 = vector.shape_cast %42 : vector<1x1x1x32x16xbf16> to vector<32x16xbf16>
    %cst_82 = arith.constant dense<0.000000e+00> : vector<32x4xf32>
    %44 = tpu.matmul %43, %41, %cst_82 {dimension_numbers = #tpu.dot_dimension_numbers<[1], [0], [0], [1], [0, 0, 1, 1], [], []>} : vector<32x16xbf16>, vector<16x4xbf16>, vector<32x4xf32> -> vector<32x4xf32>
    %45 = arith.addf %39, %44 : vector<32x4xf32>
    %c0_83 = arith.constant 0 : index
    %c0_84 = arith.constant 0 : index
    %c1_85 = arith.constant 1 : index
    %c0_86 = arith.constant 0 : index
    %c0_87 = arith.constant 0 : index
    %c2_88 = arith.constant 2 : index
    %46 = vector.load %arg5[%c0_83, %c0_84, %c1_85, %c0_86, %c0_87, %c2_88] : memref<1x1x3x2x16x6xbf16, #tpu.memory_space<vmem>>, vector<1x1x1x1x16x4xbf16>
    %47 = vector.shape_cast %46 : vector<1x1x1x1x16x4xbf16> to vector<16x4xbf16>
    %c0_89 = arith.constant 0 : index
    %c2_90 = arith.constant 2 : index
    %c1_91 = arith.constant 1 : index
    %c0_92 = arith.constant 0 : index
    %c0_93 = arith.constant 0 : index
    %48 = vector.load %arg3[%c0_89, %c2_90, %c1_91, %c0_92, %c0_93] : memref<1x3x3x32x16xbf16, #tpu.memory_space<vmem>>, vector<1x1x1x32x16xbf16>
    %49 = vector.shape_cast %48 : vector<1x1x1x32x16xbf16> to vector<32x16xbf16>
    %cst_94 = arith.constant dense<0.000000e+00> : vector<32x4xf32>
    %50 = tpu.matmul %49, %47, %cst_94 {dimension_numbers = #tpu.dot_dimension_numbers<[1], [0], [0], [1], [0, 0, 1, 1], [], []>} : vector<32x16xbf16>, vector<16x4xbf16>, vector<32x4xf32> -> vector<32x4xf32>
    %51 = arith.addf %45, %50 : vector<32x4xf32>
    %c0_95 = arith.constant 0 : index
    %c0_96 = arith.constant 0 : index
    %c2_97 = arith.constant 2 : index
    %c0_98 = arith.constant 0 : index
    %c0_99 = arith.constant 0 : index
    %c2_100 = arith.constant 2 : index
    %52 = vector.load %arg5[%c0_95, %c0_96, %c2_97, %c0_98, %c0_99, %c2_100] : memref<1x1x3x2x16x6xbf16, #tpu.memory_space<vmem>>, vector<1x1x1x1x16x4xbf16>
    %53 = vector.shape_cast %52 : vector<1x1x1x1x16x4xbf16> to vector<16x4xbf16>
    %c0_101 = arith.constant 0 : index
    %c2_102 = arith.constant 2 : index
    %c2_103 = arith.constant 2 : index
    %c0_104 = arith.constant 0 : index
    %c0_105 = arith.constant 0 : index
    %54 = vector.load %arg3[%c0_101, %c2_102, %c2_103, %c0_104, %c0_105] : memref<1x3x3x32x16xbf16, #tpu.memory_space<vmem>>, vector<1x1x1x32x16xbf16>
    %55 = vector.shape_cast %54 : vector<1x1x1x32x16xbf16> to vector<32x16xbf16>
    %cst_106 = arith.constant dense<0.000000e+00> : vector<32x4xf32>
    %56 = tpu.matmul %55, %53, %cst_106 {dimension_numbers = #tpu.dot_dimension_numbers<[1], [0], [0], [1], [0, 0, 1, 1], [], []>} : vector<32x16xbf16>, vector<16x4xbf16>, vector<32x4xf32> -> vector<32x4xf32>
    %57 = arith.addf %51, %56 : vector<32x4xf32>
    %c0_107 = arith.constant 0 : index
    %c0_108 = arith.constant 0 : index
    %58 = vector.load %arg7[%c0_107, %c0_108] : memref<32x4xf32, #tpu.memory_space<vmem>>, vector<32x4xf32>
    tpu.vector_store %arg7[%c0_107, %c0_108], %57 {strides = array<i32>} : memref<32x4xf32, #tpu.memory_space<vmem>>, vector<32x4xf32>,
    %c2_i32 = arith.constant 2 : i32
    %59 = arith.cmpi eq, %arg2, %c2_i32 : i32
    %60 = arith.extui %59 : i1 to i32
    %c0_i32_109 = arith.constant 0 : i32
    %61 = arith.cmpi ne, %60, %c0_i32_109 : i32
    scf.if %61 {
      %c0_110 = arith.constant 0 : index
      %c0_111 = arith.constant 0 : index
      %62 = vector.load %arg7[%c0_110, %c0_111] : memref<32x4xf32, #tpu.memory_space<vmem>>, vector<32x4xf32>
      %c0_112 = arith.constant 0 : index
      %c0_113 = arith.constant 0 : index
      %63 = vector.load %arg4[%c0_112, %c0_113] : memref<32x1xf32, #tpu.memory_space<vmem>>, vector<32x1xf32>
      %64 = vector.broadcast %63 : vector<32x1xf32> to vector<32x4xf32>
      %65 = arith.addf %62, %64 : vector<32x4xf32>
      %cst_114 = arith.constant 0.000000e+00 : f32
      %66 = vector.broadcast %cst_114 : f32 to vector<32x4xf32>
      %67 = arith.maximumf %65, %66 : vector<32x4xf32>
      %68 = arith.truncf %67 : vector<32x4xf32> to vector<32x4xbf16>
      %c0_115 = arith.constant 0 : index
      %c0_116 = arith.constant 0 : index
      %c0_117 = arith.constant 0 : index
      %c0_118 = arith.constant 0 : index
      %69 = vector.load %arg6[%c0_115, %c0_116, %c0_117, %c0_118] : memref<1x1x32x4xbf16, #tpu.memory_space<vmem>>, vector<1x1x32x4xbf16>
      %70 = vector.shape_cast %69 : vector<1x1x32x4xbf16> to vector<32x4xbf16>
      %71 = vector.shape_cast %68 : vector<32x4xbf16> to vector<1x1x32x4xbf16>
      tpu.vector_store %arg6[%c0_115, %c0_116, %c0_117, %c0_118], %71 {strides = array<i32>} : memref<1x1x32x4xbf16, #tpu.memory_space<vmem>>, vector<1x1x32x4xbf16>,
    } else {
    }
    return
  }
  func.func @transform_0(%arg0: i32, %arg1: i32, %arg2: i32) -> (i32, i32, i32, i32, i32) {
    %c0_i32 = arith.constant 0 : i32
    %c0_i32_0 = arith.constant 0 : i32
    %c0_i32_1 = arith.constant 0 : i32
    %c0_i32_2 = arith.constant 0 : i32
    %c0_i32_3 = arith.constant 0 : i32
    return %arg2, %c0_i32, %c0_i32_0, %c0_i32_1, %c0_i32_2 : i32, i32, i32, i32, i32
  }
  func.func @transform_1(%arg0: i32, %arg1: i32, %arg2: i32) -> (i32, i32) {
    %c0_i32 = arith.constant 0 : i32
    %c0_i32_0 = arith.constant 0 : i32
    %c0_i32_1 = arith.constant 0 : i32
    return %c0_i32, %c0_i32_0 : i32, i32
  }
  func.func @transform_2(%arg0: i32, %arg1: i32, %arg2: i32) -> (i32, i32, i32, i32, i32, i32) {
    %c2_i32 = arith.constant 2 : i32
    %0 = arith.muli %c2_i32, %arg1 : i32
    %1 = arith.addi %0, %arg2 : i32
    %c0_i32 = arith.constant 0 : i32
    %c0_i32_0 = arith.constant 0 : i32
    %c0_i32_1 = arith.constant 0 : i32
    %c0_i32_2 = arith.constant 0 : i32
    %c0_i32_3 = arith.constant 0 : i32
    return %arg0, %1, %c0_i32, %c0_i32_0, %c0_i32_1, %c0_i32_2 : i32, i32, i32, i32, i32, i32
  }
  func.func @transform_3(%arg0: i32, %arg1: i32, %arg2: i32) -> (i32, i32, i32, i32) {
    %c0_i32 = arith.constant 0 : i32
    %c0_i32_0 = arith.constant 0 : i32
    %c0_i32_1 = arith.constant 0 : i32
    return %arg0, %arg1, %c0_i32, %c0_i32_0 : i32, i32, i32, i32
  }
}

module attributes {stable_mosaic.version = 11 : i64} {
  func.func @_gamma_head_kernel(%arg0: memref<2x2x16xf32, #tpu.memory_space<vmem>>, %arg1: memref<16x32xf32, #tpu.memory_space<vmem>>, %arg2: memref<1x32xf32, #tpu.memory_space<vmem>>, %arg3: memref<32x3xf32, #tpu.memory_space<vmem>>, %arg4: memref<2x3xf32, #tpu.memory_space<vmem>>) attributes {dimension_semantics = [], scalar_prefetch = 0 : i64, scratch_operands = 0 : i64, tpu.core_type = #tpu.core_type<tc>} {
    %c0 = arith.constant 0 : index
    %c0_0 = arith.constant 0 : index
    %c0_1 = arith.constant 0 : index
    %0 = vector.load %arg0[%c0, %c0_0, %c0_1] : memref<2x2x16xf32, #tpu.memory_space<vmem>>, vector<2x2x16xf32>
    %cst = arith.constant dense<0.000000e+00> : vector<2x16xf32>
    %1 = vector.multi_reduction <add>, %0, %cst [1] : vector<2x2x16xf32> to vector<2x16xf32>
    %cst_2 = arith.constant 1.250000e-01 : f32
    %2 = vector.broadcast %cst_2 : f32 to vector<2x16xf32>
    %3 = arith.mulf %1, %2 : vector<2x16xf32>
    %c0_3 = arith.constant 0 : index
    %c0_4 = arith.constant 0 : index
    %4 = vector.load %arg1[%c0_3, %c0_4] : memref<16x32xf32, #tpu.memory_space<vmem>>, vector<16x32xf32>
    %cst_5 = arith.constant dense<0.000000e+00> : vector<2x32xf32>
    %5 = tpu.matmul %3, %4, %cst_5 {dimension_numbers = #tpu.dot_dimension_numbers<[1], [0], [0], [1], [0, 0, 1, 1], [], []>} : vector<2x16xf32>, vector<16x32xf32>, vector<2x32xf32> -> vector<2x32xf32>
    %c0_6 = arith.constant 0 : index
    %c0_7 = arith.constant 0 : index
    %6 = vector.load %arg2[%c0_6, %c0_7] : memref<1x32xf32, #tpu.memory_space<vmem>>, vector<1x32xf32>
    %7 = vector.broadcast %6 : vector<1x32xf32> to vector<2x32xf32>
    %8 = arith.addf %5, %7 : vector<2x32xf32>
    %cst_8 = arith.constant 0.000000e+00 : f32
    %9 = vector.broadcast %cst_8 : f32 to vector<2x32xf32>
    %10 = arith.cmpf ogt, %8, %9 : vector<2x32xf32>
    %cst_9 = arith.constant 1.000000e-01 : f32
    %11 = vector.broadcast %cst_9 : f32 to vector<2x32xf32>
    %12 = arith.mulf %11, %8 : vector<2x32xf32>
    %13 = arith.select %10, %8, %12 : vector<2x32xi1>, vector<2x32xf32>
    %c0_10 = arith.constant 0 : index
    %c0_11 = arith.constant 0 : index
    %14 = vector.load %arg3[%c0_10, %c0_11] : memref<32x3xf32, #tpu.memory_space<vmem>>, vector<32x3xf32>
    %cst_12 = arith.constant dense<0.000000e+00> : vector<2x3xf32>
    %15 = tpu.matmul %13, %14, %cst_12 {dimension_numbers = #tpu.dot_dimension_numbers<[1], [0], [0], [1], [0, 0, 1, 1], [], []>} : vector<2x32xf32>, vector<32x3xf32>, vector<2x3xf32> -> vector<2x3xf32>
    %16 = math.tanh %15 : vector<2x3xf32>
    %cst_13 = arith.constant 5.000000e-01 : f32
    %17 = vector.broadcast %cst_13 : f32 to vector<2x3xf32>
    %18 = arith.mulf %16, %17 : vector<2x3xf32>
    %cst_14 = arith.constant 5.000000e-01 : f32
    %19 = vector.broadcast %cst_14 : f32 to vector<2x3xf32>
    %20 = arith.addf %18, %19 : vector<2x3xf32>
    %cst_15 = arith.constant 9.000000e+00 : f32
    %21 = vector.broadcast %cst_15 : f32 to vector<2x3xf32>
    %22 = arith.mulf %20, %21 : vector<2x3xf32>
    %cst_16 = arith.constant 1.000000e+00 : f32
    %23 = vector.broadcast %cst_16 : f32 to vector<2x3xf32>
    %24 = arith.addf %22, %23 : vector<2x3xf32>
    %c0_17 = arith.constant 0 : index
    %c0_18 = arith.constant 0 : index
    %25 = vector.load %arg4[%c0_17, %c0_18] : memref<2x3xf32, #tpu.memory_space<vmem>>, vector<2x3xf32>
    tpu.vector_store %arg4[%c0_17, %c0_18], %24 {strides = array<i32>} : memref<2x3xf32, #tpu.memory_space<vmem>>, vector<2x3xf32>,
    return
  }
}

module attributes {stable_mosaic.version = 11 : i64} {
  func.func @_conv_tap_kernel(%arg0: i32, %arg1: i32, %arg2: i32, %arg3: memref<1x3x3x16x32xbf16, #tpu.memory_space<vmem>>, %arg4: memref<16x1xf32, #tpu.memory_space<vmem>>, %arg5: memref<1x1x3x1x32x8xbf16, #tpu.memory_space<vmem>>, %arg6: memref<1x1x16x1xf32, #tpu.memory_space<vmem>>, %arg7: memref<16x4xf32, #tpu.memory_space<vmem>>) attributes {dimension_semantics = [#tpu.dimension_semantics<parallel>, #tpu.dimension_semantics<parallel>, #tpu.dimension_semantics<arbitrary>], iteration_bounds = array<i64: 2, 2, 3>, scalar_prefetch = 0 : i64, scratch_operands = 1 : i64, tpu.core_type = #tpu.core_type<tc>, window_params = [{transform_indices = @transform_0, window_bounds = array<i64: 1, 3, 3, 16, 32>}, {pipeline_mode = #tpu.pipeline_mode<synchronous>, transform_indices = @transform_1, window_bounds = array<i64: 16, 1>}, {transform_indices = @transform_2, window_bounds = array<i64: 1, 1, 3, 1, 32, 8>}, {transform_indices = @transform_3, window_bounds = array<i64: 1, 1, 16, 1>}]} {
    %c0_i32 = arith.constant 0 : i32
    %0 = arith.cmpi eq, %arg2, %c0_i32 : i32
    %1 = arith.extui %0 : i1 to i32
    %c0_i32_0 = arith.constant 0 : i32
    %2 = arith.cmpi ne, %1, %c0_i32_0 : i32
    scf.if %2 {
      %cst_109 = arith.constant 0.000000e+00 : f32
      %62 = vector.broadcast %cst_109 : f32 to vector<16x4xf32>
      %c0_110 = arith.constant 0 : index
      %c0_111 = arith.constant 0 : index
      %63 = vector.load %arg7[%c0_110, %c0_111] : memref<16x4xf32, #tpu.memory_space<vmem>>, vector<16x4xf32>
      tpu.vector_store %arg7[%c0_110, %c0_111], %62 {strides = array<i32>} : memref<16x4xf32, #tpu.memory_space<vmem>>, vector<16x4xf32>,
    } else {
    }
    %c0 = arith.constant 0 : index
    %c0_1 = arith.constant 0 : index
    %3 = vector.load %arg7[%c0, %c0_1] : memref<16x4xf32, #tpu.memory_space<vmem>>, vector<16x4xf32>
    %c0_2 = arith.constant 0 : index
    %c0_3 = arith.constant 0 : index
    %c0_4 = arith.constant 0 : index
    %c0_5 = arith.constant 0 : index
    %c0_6 = arith.constant 0 : index
    %c0_7 = arith.constant 0 : index
    %4 = vector.load %arg5[%c0_2, %c0_3, %c0_4, %c0_5, %c0_6, %c0_7] : memref<1x1x3x1x32x8xbf16, #tpu.memory_space<vmem>>, vector<1x1x1x1x32x4xbf16>
    %5 = vector.shape_cast %4 : vector<1x1x1x1x32x4xbf16> to vector<32x4xbf16>
    %c0_8 = arith.constant 0 : index
    %c0_9 = arith.constant 0 : index
    %c0_10 = arith.constant 0 : index
    %c0_11 = arith.constant 0 : index
    %c0_12 = arith.constant 0 : index
    %6 = vector.load %arg3[%c0_8, %c0_9, %c0_10, %c0_11, %c0_12] : memref<1x3x3x16x32xbf16, #tpu.memory_space<vmem>>, vector<1x1x1x16x32xbf16>
    %7 = vector.shape_cast %6 : vector<1x1x1x16x32xbf16> to vector<16x32xbf16>
    %cst = arith.constant dense<0.000000e+00> : vector<16x4xf32>
    %8 = tpu.matmul %7, %5, %cst {dimension_numbers = #tpu.dot_dimension_numbers<[1], [0], [0], [1], [0, 0, 1, 1], [], []>} : vector<16x32xbf16>, vector<32x4xbf16>, vector<16x4xf32> -> vector<16x4xf32>
    %9 = arith.addf %3, %8 : vector<16x4xf32>
    %c0_13 = arith.constant 0 : index
    %c0_14 = arith.constant 0 : index
    %c1 = arith.constant 1 : index
    %c0_15 = arith.constant 0 : index
    %c0_16 = arith.constant 0 : index
    %c0_17 = arith.constant 0 : index
    %10 = vector.load %arg5[%c0_13, %c0_14, %c1, %c0_15, %c0_16, %c0_17] : memref<1x1x3x1x32x8xbf16, #tpu.memory_space<vmem>>, vector<1x1x1x1x32x4xbf16>
    %11 = vector.shape_cast %10 : vector<1x1x1x1x32x4xbf16> to vector<32x4xbf16>
    %c0_18 = arith.constant 0 : index
    %c0_19 = arith.constant 0 : index
    %c1_20 = arith.constant 1 : index
    %c0_21 = arith.constant 0 : index
    %c0_22 = arith.constant 0 : index
    %12 = vector.load %arg3[%c0_18, %c0_19, %c1_20, %c0_21, %c0_22] : memref<1x3x3x16x32xbf16, #tpu.memory_space<vmem>>, vector<1x1x1x16x32xbf16>
    %13 = vector.shape_cast %12 : vector<1x1x1x16x32xbf16> to vector<16x32xbf16>
    %cst_23 = arith.constant dense<0.000000e+00> : vector<16x4xf32>
    %14 = tpu.matmul %13, %11, %cst_23 {dimension_numbers = #tpu.dot_dimension_numbers<[1], [0], [0], [1], [0, 0, 1, 1], [], []>} : vector<16x32xbf16>, vector<32x4xbf16>, vector<16x4xf32> -> vector<16x4xf32>
    %15 = arith.addf %9, %14 : vector<16x4xf32>
    %c0_24 = arith.constant 0 : index
    %c0_25 = arith.constant 0 : index
    %c2 = arith.constant 2 : index
    %c0_26 = arith.constant 0 : index
    %c0_27 = arith.constant 0 : index
    %c0_28 = arith.constant 0 : index
    %16 = vector.load %arg5[%c0_24, %c0_25, %c2, %c0_26, %c0_27, %c0_28] : memref<1x1x3x1x32x8xbf16, #tpu.memory_space<vmem>>, vector<1x1x1x1x32x4xbf16>
    %17 = vector.shape_cast %16 : vector<1x1x1x1x32x4xbf16> to vector<32x4xbf16>
    %c0_29 = arith.constant 0 : index
    %c0_30 = arith.constant 0 : index
    %c2_31 = arith.constant 2 : index
    %c0_32 = arith.constant 0 : index
    %c0_33 = arith.constant 0 : index
    %18 = vector.load %arg3[%c0_29, %c0_30, %c2_31, %c0_32, %c0_33] : memref<1x3x3x16x32xbf16, #tpu.memory_space<vmem>>, vector<1x1x1x16x32xbf16>
    %19 = vector.shape_cast %18 : vector<1x1x1x16x32xbf16> to vector<16x32xbf16>
    %cst_34 = arith.constant dense<0.000000e+00> : vector<16x4xf32>
    %20 = tpu.matmul %19, %17, %cst_34 {dimension_numbers = #tpu.dot_dimension_numbers<[1], [0], [0], [1], [0, 0, 1, 1], [], []>} : vector<16x32xbf16>, vector<32x4xbf16>, vector<16x4xf32> -> vector<16x4xf32>
    %21 = arith.addf %15, %20 : vector<16x4xf32>
    %c0_35 = arith.constant 0 : index
    %c0_36 = arith.constant 0 : index
    %c0_37 = arith.constant 0 : index
    %c0_38 = arith.constant 0 : index
    %c0_39 = arith.constant 0 : index
    %c2_40 = arith.constant 2 : index
    %22 = vector.load %arg5[%c0_35, %c0_36, %c0_37, %c0_38, %c0_39, %c2_40] : memref<1x1x3x1x32x8xbf16, #tpu.memory_space<vmem>>, vector<1x1x1x1x32x4xbf16>
    %23 = vector.shape_cast %22 : vector<1x1x1x1x32x4xbf16> to vector<32x4xbf16>
    %c0_41 = arith.constant 0 : index
    %c1_42 = arith.constant 1 : index
    %c0_43 = arith.constant 0 : index
    %c0_44 = arith.constant 0 : index
    %c0_45 = arith.constant 0 : index
    %24 = vector.load %arg3[%c0_41, %c1_42, %c0_43, %c0_44, %c0_45] : memref<1x3x3x16x32xbf16, #tpu.memory_space<vmem>>, vector<1x1x1x16x32xbf16>
    %25 = vector.shape_cast %24 : vector<1x1x1x16x32xbf16> to vector<16x32xbf16>
    %cst_46 = arith.constant dense<0.000000e+00> : vector<16x4xf32>
    %26 = tpu.matmul %25, %23, %cst_46 {dimension_numbers = #tpu.dot_dimension_numbers<[1], [0], [0], [1], [0, 0, 1, 1], [], []>} : vector<16x32xbf16>, vector<32x4xbf16>, vector<16x4xf32> -> vector<16x4xf32>
    %27 = arith.addf %21, %26 : vector<16x4xf32>
    %c0_47 = arith.constant 0 : index
    %c0_48 = arith.constant 0 : index
    %c1_49 = arith.constant 1 : index
    %c0_50 = arith.constant 0 : index
    %c0_51 = arith.constant 0 : index
    %c2_52 = arith.constant 2 : index
    %28 = vector.load %arg5[%c0_47, %c0_48, %c1_49, %c0_50, %c0_51, %c2_52] : memref<1x1x3x1x32x8xbf16, #tpu.memory_space<vmem>>, vector<1x1x1x1x32x4xbf16>
    %29 = vector.shape_cast %28 : vector<1x1x1x1x32x4xbf16> to vector<32x4xbf16>
    %c0_53 = arith.constant 0 : index
    %c1_54 = arith.constant 1 : index
    %c1_55 = arith.constant 1 : index
    %c0_56 = arith.constant 0 : index
    %c0_57 = arith.constant 0 : index
    %30 = vector.load %arg3[%c0_53, %c1_54, %c1_55, %c0_56, %c0_57] : memref<1x3x3x16x32xbf16, #tpu.memory_space<vmem>>, vector<1x1x1x16x32xbf16>
    %31 = vector.shape_cast %30 : vector<1x1x1x16x32xbf16> to vector<16x32xbf16>
    %cst_58 = arith.constant dense<0.000000e+00> : vector<16x4xf32>
    %32 = tpu.matmul %31, %29, %cst_58 {dimension_numbers = #tpu.dot_dimension_numbers<[1], [0], [0], [1], [0, 0, 1, 1], [], []>} : vector<16x32xbf16>, vector<32x4xbf16>, vector<16x4xf32> -> vector<16x4xf32>
    %33 = arith.addf %27, %32 : vector<16x4xf32>
    %c0_59 = arith.constant 0 : index
    %c0_60 = arith.constant 0 : index
    %c2_61 = arith.constant 2 : index
    %c0_62 = arith.constant 0 : index
    %c0_63 = arith.constant 0 : index
    %c2_64 = arith.constant 2 : index
    %34 = vector.load %arg5[%c0_59, %c0_60, %c2_61, %c0_62, %c0_63, %c2_64] : memref<1x1x3x1x32x8xbf16, #tpu.memory_space<vmem>>, vector<1x1x1x1x32x4xbf16>
    %35 = vector.shape_cast %34 : vector<1x1x1x1x32x4xbf16> to vector<32x4xbf16>
    %c0_65 = arith.constant 0 : index
    %c1_66 = arith.constant 1 : index
    %c2_67 = arith.constant 2 : index
    %c0_68 = arith.constant 0 : index
    %c0_69 = arith.constant 0 : index
    %36 = vector.load %arg3[%c0_65, %c1_66, %c2_67, %c0_68, %c0_69] : memref<1x3x3x16x32xbf16, #tpu.memory_space<vmem>>, vector<1x1x1x16x32xbf16>
    %37 = vector.shape_cast %36 : vector<1x1x1x16x32xbf16> to vector<16x32xbf16>
    %cst_70 = arith.constant dense<0.000000e+00> : vector<16x4xf32>
    %38 = tpu.matmul %37, %35, %cst_70 {dimension_numbers = #tpu.dot_dimension_numbers<[1], [0], [0], [1], [0, 0, 1, 1], [], []>} : vector<16x32xbf16>, vector<32x4xbf16>, vector<16x4xf32> -> vector<16x4xf32>
    %39 = arith.addf %33, %38 : vector<16x4xf32>
    %c0_71 = arith.constant 0 : index
    %c0_72 = arith.constant 0 : index
    %c0_73 = arith.constant 0 : index
    %c0_74 = arith.constant 0 : index
    %c0_75 = arith.constant 0 : index
    %c4 = arith.constant 4 : index
    %40 = vector.load %arg5[%c0_71, %c0_72, %c0_73, %c0_74, %c0_75, %c4] : memref<1x1x3x1x32x8xbf16, #tpu.memory_space<vmem>>, vector<1x1x1x1x32x4xbf16>
    %41 = vector.shape_cast %40 : vector<1x1x1x1x32x4xbf16> to vector<32x4xbf16>
    %c0_76 = arith.constant 0 : index
    %c2_77 = arith.constant 2 : index
    %c0_78 = arith.constant 0 : index
    %c0_79 = arith.constant 0 : index
    %c0_80 = arith.constant 0 : index
    %42 = vector.load %arg3[%c0_76, %c2_77, %c0_78, %c0_79, %c0_80] : memref<1x3x3x16x32xbf16, #tpu.memory_space<vmem>>, vector<1x1x1x16x32xbf16>
    %43 = vector.shape_cast %42 : vector<1x1x1x16x32xbf16> to vector<16x32xbf16>
    %cst_81 = arith.constant dense<0.000000e+00> : vector<16x4xf32>
    %44 = tpu.matmul %43, %41, %cst_81 {dimension_numbers = #tpu.dot_dimension_numbers<[1], [0], [0], [1], [0, 0, 1, 1], [], []>} : vector<16x32xbf16>, vector<32x4xbf16>, vector<16x4xf32> -> vector<16x4xf32>
    %45 = arith.addf %39, %44 : vector<16x4xf32>
    %c0_82 = arith.constant 0 : index
    %c0_83 = arith.constant 0 : index
    %c1_84 = arith.constant 1 : index
    %c0_85 = arith.constant 0 : index
    %c0_86 = arith.constant 0 : index
    %c4_87 = arith.constant 4 : index
    %46 = vector.load %arg5[%c0_82, %c0_83, %c1_84, %c0_85, %c0_86, %c4_87] : memref<1x1x3x1x32x8xbf16, #tpu.memory_space<vmem>>, vector<1x1x1x1x32x4xbf16>
    %47 = vector.shape_cast %46 : vector<1x1x1x1x32x4xbf16> to vector<32x4xbf16>
    %c0_88 = arith.constant 0 : index
    %c2_89 = arith.constant 2 : index
    %c1_90 = arith.constant 1 : index
    %c0_91 = arith.constant 0 : index
    %c0_92 = arith.constant 0 : index
    %48 = vector.load %arg3[%c0_88, %c2_89, %c1_90, %c0_91, %c0_92] : memref<1x3x3x16x32xbf16, #tpu.memory_space<vmem>>, vector<1x1x1x16x32xbf16>
    %49 = vector.shape_cast %48 : vector<1x1x1x16x32xbf16> to vector<16x32xbf16>
    %cst_93 = arith.constant dense<0.000000e+00> : vector<16x4xf32>
    %50 = tpu.matmul %49, %47, %cst_93 {dimension_numbers = #tpu.dot_dimension_numbers<[1], [0], [0], [1], [0, 0, 1, 1], [], []>} : vector<16x32xbf16>, vector<32x4xbf16>, vector<16x4xf32> -> vector<16x4xf32>
    %51 = arith.addf %45, %50 : vector<16x4xf32>
    %c0_94 = arith.constant 0 : index
    %c0_95 = arith.constant 0 : index
    %c2_96 = arith.constant 2 : index
    %c0_97 = arith.constant 0 : index
    %c0_98 = arith.constant 0 : index
    %c4_99 = arith.constant 4 : index
    %52 = vector.load %arg5[%c0_94, %c0_95, %c2_96, %c0_97, %c0_98, %c4_99] : memref<1x1x3x1x32x8xbf16, #tpu.memory_space<vmem>>, vector<1x1x1x1x32x4xbf16>
    %53 = vector.shape_cast %52 : vector<1x1x1x1x32x4xbf16> to vector<32x4xbf16>
    %c0_100 = arith.constant 0 : index
    %c2_101 = arith.constant 2 : index
    %c2_102 = arith.constant 2 : index
    %c0_103 = arith.constant 0 : index
    %c0_104 = arith.constant 0 : index
    %54 = vector.load %arg3[%c0_100, %c2_101, %c2_102, %c0_103, %c0_104] : memref<1x3x3x16x32xbf16, #tpu.memory_space<vmem>>, vector<1x1x1x16x32xbf16>
    %55 = vector.shape_cast %54 : vector<1x1x1x16x32xbf16> to vector<16x32xbf16>
    %cst_105 = arith.constant dense<0.000000e+00> : vector<16x4xf32>
    %56 = tpu.matmul %55, %53, %cst_105 {dimension_numbers = #tpu.dot_dimension_numbers<[1], [0], [0], [1], [0, 0, 1, 1], [], []>} : vector<16x32xbf16>, vector<32x4xbf16>, vector<16x4xf32> -> vector<16x4xf32>
    %57 = arith.addf %51, %56 : vector<16x4xf32>
    %c0_106 = arith.constant 0 : index
    %c0_107 = arith.constant 0 : index
    %58 = vector.load %arg7[%c0_106, %c0_107] : memref<16x4xf32, #tpu.memory_space<vmem>>, vector<16x4xf32>
    tpu.vector_store %arg7[%c0_106, %c0_107], %57 {strides = array<i32>} : memref<16x4xf32, #tpu.memory_space<vmem>>, vector<16x4xf32>,
    %c2_i32 = arith.constant 2 : i32
    %59 = arith.cmpi eq, %arg2, %c2_i32 : i32
    %60 = arith.extui %59 : i1 to i32
    %c0_i32_108 = arith.constant 0 : i32
    %61 = arith.cmpi ne, %60, %c0_i32_108 : i32
    scf.if %61 {
      %c0_109 = arith.constant 0 : index
      %c0_110 = arith.constant 0 : index
      %62 = vector.load %arg7[%c0_109, %c0_110] : memref<16x4xf32, #tpu.memory_space<vmem>>, vector<16x4xf32>
      %c0_111 = arith.constant 0 : index
      %c0_112 = arith.constant 0 : index
      %63 = vector.load %arg4[%c0_111, %c0_112] : memref<16x1xf32, #tpu.memory_space<vmem>>, vector<16x1xf32>
      %64 = vector.broadcast %63 : vector<16x1xf32> to vector<16x4xf32>
      %65 = arith.addf %62, %64 : vector<16x4xf32>
      %cst_113 = arith.constant 0.000000e+00 : f32
      %66 = vector.broadcast %cst_113 : f32 to vector<16x4xf32>
      %67 = arith.maximumf %65, %66 : vector<16x4xf32>
      %cst_114 = arith.constant dense<0.000000e+00> : vector<16xf32>
      %68 = vector.multi_reduction <add>, %67, %cst_114 [1] : vector<16x4xf32> to vector<16xf32>
      %69 = vector.shape_cast %68 : vector<16xf32> to vector<16x1xf32>
      %c0_115 = arith.constant 0 : index
      %c0_116 = arith.constant 0 : index
      %c0_117 = arith.constant 0 : index
      %c0_118 = arith.constant 0 : index
      %70 = vector.load %arg6[%c0_115, %c0_116, %c0_117, %c0_118] : memref<1x1x16x1xf32, #tpu.memory_space<vmem>>, vector<1x1x16x1xf32>
      %71 = vector.shape_cast %70 : vector<1x1x16x1xf32> to vector<16x1xf32>
      %72 = vector.shape_cast %69 : vector<16x1xf32> to vector<1x1x16x1xf32>
      tpu.vector_store %arg6[%c0_115, %c0_116, %c0_117, %c0_118], %72 {strides = array<i32>} : memref<1x1x16x1xf32, #tpu.memory_space<vmem>>, vector<1x1x16x1xf32>,
    } else {
    }
    return
  }
  func.func @transform_0(%arg0: i32, %arg1: i32, %arg2: i32) -> (i32, i32, i32, i32, i32) {
    %c0_i32 = arith.constant 0 : i32
    %c0_i32_0 = arith.constant 0 : i32
    %c0_i32_1 = arith.constant 0 : i32
    %c0_i32_2 = arith.constant 0 : i32
    %c0_i32_3 = arith.constant 0 : i32
    return %arg2, %c0_i32, %c0_i32_0, %c0_i32_1, %c0_i32_2 : i32, i32, i32, i32, i32
  }
  func.func @transform_1(%arg0: i32, %arg1: i32, %arg2: i32) -> (i32, i32) {
    %c0_i32 = arith.constant 0 : i32
    %c0_i32_0 = arith.constant 0 : i32
    %c0_i32_1 = arith.constant 0 : i32
    return %c0_i32, %c0_i32_0 : i32, i32
  }
  func.func @transform_2(%arg0: i32, %arg1: i32, %arg2: i32) -> (i32, i32, i32, i32, i32, i32) {
    %c1_i32 = arith.constant 1 : i32
    %0 = arith.muli %c1_i32, %arg1 : i32
    %1 = arith.addi %0, %arg2 : i32
    %c0_i32 = arith.constant 0 : i32
    %c0_i32_0 = arith.constant 0 : i32
    %c0_i32_1 = arith.constant 0 : i32
    %c0_i32_2 = arith.constant 0 : i32
    %c0_i32_3 = arith.constant 0 : i32
    return %arg0, %1, %c0_i32, %c0_i32_0, %c0_i32_1, %c0_i32_2 : i32, i32, i32, i32, i32, i32
  }
  func.func @transform_3(%arg0: i32, %arg1: i32, %arg2: i32) -> (i32, i32, i32, i32) {
    %c0_i32 = arith.constant 0 : i32
    %c0_i32_0 = arith.constant 0 : i32
    %c0_i32_1 = arith.constant 0 : i32
    return %arg0, %arg1, %c0_i32, %c0_i32_0 : i32, i32, i32, i32
  }
}

module attributes {stable_mosaic.version = 11 : i64} {
  func.func @_apply_gamma_kernel(%arg0: i32, %arg1: memref<24x1024xf32, #tpu.memory_space<vmem>>, %arg2: memref<24x1xf32, #tpu.memory_space<vmem>>, %arg3: memref<24x1024xf32, #tpu.memory_space<vmem>>) attributes {dimension_semantics = [#tpu.dimension_semantics<parallel>], iteration_bounds = array<i64: 1>, scalar_prefetch = 0 : i64, scratch_operands = 0 : i64, tpu.core_type = #tpu.core_type<tc>, window_params = [{transform_indices = @transform_0, window_bounds = array<i64: 24, 1024>}, {pipeline_mode = #tpu.pipeline_mode<synchronous>, transform_indices = @transform_1, window_bounds = array<i64: 24, 1>}, {transform_indices = @transform_2, window_bounds = array<i64: 24, 1024>}]} {
    %c0 = arith.constant 0 : index
    %c0_0 = arith.constant 0 : index
    %0 = vector.load %arg2[%c0, %c0_0] : memref<24x1xf32, #tpu.memory_space<vmem>>, vector<24x1xf32>
    %c0_1 = arith.constant 0 : index
    %c0_2 = arith.constant 0 : index
    %1 = vector.load %arg1[%c0_1, %c0_2] : memref<24x1024xf32, #tpu.memory_space<vmem>>, vector<24x1024xf32>
    %2 = math.log %1 : vector<24x1024xf32>
    %3 = vector.broadcast %0 : vector<24x1xf32> to vector<24x1024xf32>
    %4 = arith.mulf %3, %2 : vector<24x1024xf32>
    %5 = math.exp %4 : vector<24x1024xf32>
    %c0_3 = arith.constant 0 : index
    %c0_4 = arith.constant 0 : index
    %6 = vector.load %arg3[%c0_3, %c0_4] : memref<24x1024xf32, #tpu.memory_space<vmem>>, vector<24x1024xf32>
    tpu.vector_store %arg3[%c0_3, %c0_4], %5 {strides = array<i32>} : memref<24x1024xf32, #tpu.memory_space<vmem>>, vector<24x1024xf32>,
    return
  }
  func.func @transform_0(%arg0: i32) -> (i32, i32) {
    %c0_i32 = arith.constant 0 : i32
    %c0_i32_0 = arith.constant 0 : i32
    return %c0_i32, %arg0 : i32, i32
  }
  func.func @transform_1(%arg0: i32) -> (i32, i32) {
    %c0_i32 = arith.constant 0 : i32
    %c0_i32_0 = arith.constant 0 : i32
    %c0_i32_1 = arith.constant 0 : i32
    return %c0_i32, %c0_i32_0 : i32, i32
  }
  func.func @transform_2(%arg0: i32) -> (i32, i32) {
    %c0_i32 = arith.constant 0 : i32
    %c0_i32_0 = arith.constant 0 : i32
    return %c0_i32, %arg0 : i32, i32
  }
}

</mosaic_0001>

<bundles_post_ra>
// kernel: _lambda_.6
= control target key start
LH: loop header
LB: loop body
LE: loop exit
PB: predicated region body
PF: predicated region fallthrough
CT: control target
= control target key end

     0   :  { %s1131_s12 = smov 0   ;;  %s1133_s13 = smov 0   ;;  %s1281_s0 = inlined_call_operand.vmem [shape: bf16[3,3,3,8,3], index: 0, kind: input, shape index: {}]   ;;  %s1282_s1 = inlined_call_operand.vmem [shape: f32[8,1], index: 1, kind: input, shape index: {}]   ;;  %s1283_s2 = inlined_call_operand.vmem [shape: bf16[2,18,3,2,3,72], index: 2, kind: input, shape index: {}]   ;;  %s1284_s3 = inlined_call_operand.vmem [shape: bf16[2,8,8,64], index: 3, kind: output, shape index: {}]  }
   0x1   :  { %s1135_s14 = smov 0   ;;  %s1137_s15 = smov 0  }
   0x2   :  { %s1139_s16 = smov 0   ;;  %s1141_s17 = smov 0  }
   0x3   :  { %s1143_s18 = smov 0  }
   0x4 LB: > { %s25_s19 = sadd.s32 1, %s1090_s15  ;;  %s28_s20 = sadd.s32 1, %s1094_s16  ;;  %s1102_s18 = sphi %s1143_s18, %s13_s18   ;;  %s1098_s17 = sphi %s1141_s17, %s1292_s17   ;;  %s1094_s16 = sphi %s1139_s16, %s1291_s16   ;;  %s1090_s15 = sphi %s1137_s15, %s1290_s15   ;;  %s1086_s14 = sphi %s1135_s14, %s1289_s14   ;;  %s1082_s13 = sphi %s1133_s13, %s1288_s13   ;;  %s1078_s12 = sphi %s1131_s12, %s1287_s12  }
   0x5   : > { %p26_p0 = scmp.ge.s32.totalorder %s25_s19, 3  ;;  %p873_p1 = scmp.ge.s32.totalorder %s1102_s18, 1 }
   0x6   : > { %p182_p2 = scmp.lt.s32.totalorder %s1102_s18, 49  ;;  %s32_s21 = sadd.s32 1, %s1098_s17 }
   0x7   : > { %s1294_s19 = smov (%p26_p0, %s25_s19), 0  ;;  %s1296_s20 = smov (!%p26_p0, %s28_s20), %s1094_s16 }
   0x8   : > { %p183_p3 = pnand %p873_p1, %p182_p2  ;;  %p30_p4 = scmp.ge.s32.totalorder %s1296_s20, 8 }
   0x9   : > { %p220_p6 = scmp.lt.s32.totalorder (!%p183_p3), %s1078_s12, 2  ;;  %s875_s22 = sshll.u32 (!%p183_p3), %s1082_s13, 1 }
   0xa   : > { %s1298_s20 = smov (%p30_p4, %s1296_s20), 0  ;;  %s1300_s21 = smov (!%p30_p4, %s32_s21), %s1098_s17 }
   0xb   : > { %p34_p5 = scmp.ge.s32.totalorder %s1300_s21, 2  ;;  %186 = sbr.rel (%p183_p3) target bundleno = 497 (0x1f1), region = 32 }
   0xc   : > { %s226_s23 = sadd.s32 (!%p183_p3), %s1078_s12, %s875_s22  ;;  %p227_p7 = scmp.lt.s32.totalorder (!%p183_p3), %s1086_s14, 1 }
   0xd   : > { %s1302_s21 = smov (%p34_p5, %s1300_s21), 0  ;;  %p229_p8 = scmp.lt.s32.totalorder (!%p183_p3), %s226_s23, 17 }
   0xe   : > { %1285 = sst [smem:[#allocation3_spill]] %s1302_s21  ;;  %p240_p9 = scmp.lt.s32.totalorder (!%p183_p3), %s1082_s13, 7 }
   0xf   : > { %p879_p10 = scmp.ne.s32.totalorder (!%p183_p3), %s1078_s12, 0 }
  0x10   : > { %s221_s24 = scalar_select %p220_p6, %s1078_s12, 2 }
  0x11   : > { %s1304_s14 = smov (!%p227_p7, %s1086_s14), 1  ;;  %s1306_s23 = smov (!%p229_p8, %s226_s23), 17 }
  0x12   : > { %s981_s25 = smul.u32 36, %s221_s24  ;;  %s877_s30 = sshll.u32 %s1304_s14, 3 }
  0x13   : > { %s983_s26 = smul.u32 108, %s1304_s14  ;;  %s1308_s13 = smov (!%p240_p9, %s1082_s13), 7 }
  0x14   : > { %s1185_s29 = scalar_lea.vmem %s1281_s0, %s981_s25  ;;  %s982_s4 = smul.u32 6, %s1306_s23 }
  0x15   : > { %s243_s5 = sadd.s32 %s877_s30, %s1308_s13  ;;  %250 = sbr.rel (%p879_p10) target bundleno = 28 (0x1c), region = 36 }
  0x16   : > { %s233_s6 = sadd.s32 %s983_s26, %s982_s4  ;;  %s878_s7 = sshll.u32 %s243_s5, 2 }
  0x17   : > { %s876_s8 = sshll.u32 %s233_s6, 1  ;;  %s1191_s11 = scalar_lea.vmem %s1284_s3, %s878_s7 }
  0x18   : > { %s1196_s21 = scalar_lea.vmem %s1283_s2, %s876_s8 }
  0x1a   : > { %vm251_vm0 = vcmask 523264   ;;  %v1104_v0 = vmov 0.0  }
  0x1b   : > { %252 = vst.msk [vmem:[#allocation2] sm:$0xff] %vm251_vm0, %v1104_v0 }
  0x1c PF: > { %v569_v1 = vlaneseq  ;;  %v1105_v2 = vmov 1983009808   ;;  %v1106_v4 = vmov 0.0   ;;  %vm260_vm1 = vcmask 1040384   ;;  %s1107_s13 = smov 120   ;;  %p906_p11 = scmp.ne.s32.totalorder %s1078_s12, 2 }
  0x1d   : > { %v567_v3 = vunpack.c.l.s4 %v1105_v2  ;;  %927 = vmatprep.subr.bf16.mxu0 %v1106_v4  ;;  %vm261_vm2 = vcmask 1041408   ;;  %933 = vmatprep.subr.bf16.mxu1 %v1106_v4  ;;  %v904_v6 = vld.sshfl [vmem:[%s1196_s21 + $0x8] sm:$0x3 pattern:$0x76325410]  ;;  %v1108_v8 = vmov 65535  }
  0x1e   : > { %v570_v5 = vshrl.u32 %v569_v1, 7  ;;  %693 = vrot.lane.b32.xlu1 %v904_v6, %s1107_s13  ;;  %v262_v9 = vsel %vm260_vm1, 4294967295, %v1108_v8  ;;  %v881_v10 = vld [vmem:[%s1196_s21 + $0x4] sm:$0x3]  ;;  %v254_v11 = vld [vmem:[%s1196_s21] sm:$0x3] }
  0x1f   : > { %v568_v7 = vunpack.c.0.s8 %v567_v3  ;;  %v263_v12 = vsel %vm261_vm2, %v262_v9, 0  ;;  %vm1109_vm3 = vmmov 0   ;;  %v884_v13 = vld [vmem:[%s1196_s21 + $0x8] sm:$0x3]  ;;  %v887_v17 = vld [vmem:[%s1196_s21 + $0x2] sm:$0x3] }
  0x20   : > { %929 = vmatprep.mubr.msk.bf16.mxu0 %vm1109_vm3, %v1106_v4  ;;  %935 = vmatprep.mubr.msk.bf16.mxu1 %vm1109_vm3, %v1106_v4  ;;  %v265_v15 = vand.u32 %v263_v12, %v254_v11  ;;  %v316_v16 = vand.u32 %v881_v10, %v263_v12  ;;  %v255_v19 = vld [vmem:[%s1185_s29] sm:$0xf]  ;;  %vm256_vm4 = vcmask 23552   ;;  %v882_v20 = vld [vmem:[%s1185_s29 + $0x4] sm:$0xf]  ;;  %v367_v21 = vand.u32 %v884_v13, %v263_v12 }
  0x21   : > { %v571_v14 = vsub.s32 %v568_v7, %v570_v5  ;;  %v418_v22 = vand.u32 %v887_v17, %v263_v12  ;;  %v900_v23 = vld.sshfl [vmem:[%s1196_s21 + $0x4] sm:$0x3 pattern:$0x76325410]  ;;  %v890_v24 = vld [vmem:[%s1196_s21 + $0x6] sm:$0x3] }
  0x22   : > { %928 = vmatpush3.bf16.msra.mxu0 %v265_v15  ;;  %934 = vmatpush3.bf16.msra.mxu1 %v316_v16  ;;  %v893_v25 = vld [vmem:[%s1196_s21 + $0xa] sm:$0x3]  ;;  %v888_v27 = vld [vmem:[%s1185_s29 + $0xc] sm:$0xf]  ;;  %v469_v28 = vand.u32 %v890_v24, %v263_v12  ;;  %v891_v30 = vld [vmem:[%s1185_s29 + $0x10] sm:$0xf] }
  0x23   : > { %v572_v18 = vrot.slane %v254_v11, %v571_v14  ;;  %939 = vmatprep.subr.bf16.mxu0 %v1106_v4  ;;  %945 = vmatprep.subr.bf16.mxu1 %v1106_v4  ;;  %v885_v26 = vld [vmem:[%s1185_s29 + $0x8] sm:$0xf]  ;;  %v520_v29 = vand.u32 %v893_v25, %v263_v12  ;;  %v894_v31 = vld [vmem:[%s1185_s29 + $0x14] sm:$0xf]  ;;  %v896_v35 = vld [vmem:[%s1185_s29 + $0x18] sm:$0xf] }
  0x24   : > { %v899_v39 = vld [vmem:[%s1185_s29 + $0x1c] sm:$0xf]  ;;  %v903_v40 = vld [vmem:[%s1185_s29 + $0x20] sm:$0xf]  ;;  %vm742_vm5 = vcmask 523264  }
  0x25   : > { %573 = vrot.lane.b32.xlu0 %v572_v18, %s1107_s13  ;;  %930 = vmatmul.mubr.msk.bf16.vlgmr.msra.gmra.mxu0 %vm256_vm4, %v255_v19  ;;  %v253_v41 = vld [vmem:[#allocation2] sm:$0xff] }
  0x26   : > { %936 = vmatmul.mubr.msk.bf16.vlgmr.msra.gmra.mxu1 %vm256_vm4, %v882_v20  ;;  %940 = vmatpush3.bf16.msra.mxu0 %v367_v21 }
  0x27   : > { %941 = vmatprep.mubr.msk.bf16.mxu0 %vm1109_vm3, %v1106_v4  ;;  %946 = vmatpush3.bf16.msra.mxu1 %v418_v22 }
  0x28   : > { %947 = vmatprep.mubr.msk.bf16.mxu1 %vm1109_vm3, %v1106_v4  ;;  %951 = vmatprep.subr.bf16.mxu0 %v1106_v4 }
  0x29   : > { %633 = vrot.lane.b32.xlu0 %v900_v23, %s1107_s13  ;;  %957 = vmatprep.subr.bf16.mxu1 %v1106_v4 }
  0x2d   : > { %942 = vmatmul.mubr.msk.bf16.vlgmr.msra.gmra.mxu0 %vm256_vm4, %v885_v26 }
  0x2e   : > { %948 = vmatmul.mubr.msk.bf16.vlgmr.msra.gmra.mxu1 %vm256_vm4, %v888_v27  ;;  %952 = vmatpush3.bf16.msra.mxu0 %v469_v28 }
  0x2f   : > { %953 = vmatprep.mubr.msk.bf16.mxu0 %vm1109_vm3, %v1106_v4  ;;  %958 = vmatpush3.bf16.msra.mxu1 %v520_v29 }
  0x30   : > { %959 = vmatprep.mubr.msk.bf16.mxu1 %vm1109_vm3, %v1106_v4  ;;  %963 = vmatprep.subr.bf16.mxu0 %v1106_v4 }
  0x31   : > { %969 = vmatprep.subr.bf16.mxu1 %v1106_v4 }
  0x35   : > { %954 = vmatmul.mubr.msk.bf16.vlgmr.msra.gmra.mxu0 %vm256_vm4, %v891_v30 }
  0x36   : > { %960 = vmatmul.mubr.msk.bf16.vlgmr.msra.gmra.mxu1 %vm256_vm4, %v894_v31  ;;  %965 = vmatprep.mubr.msk.bf16.mxu0 %vm1109_vm3, %v1106_v4 }
  0x37   : > { %971 = vmatprep.mubr.msk.bf16.mxu1 %vm1109_vm3, %v1106_v4 }
  0x90   : > { %v694_v33 = vpop.permute.xlu1 %693 }
  0x91   : > { %v699_v36 = vand.u32 %v694_v33, %v263_v12 }
  0x97   : > { %v574_v32 = vpop.permute.xlu0 %573 }
  0x98   : > { %v579_v34 = vand.u32 %v574_v32, %v263_v12 }
  0x9a   : > { %964 = vmatpush3.bf16.msra.mxu0 %v579_v34 }
  0x9b   : > { %v634_v37 = vpop.permute.xlu0 %633  ;;  %975 = vmatprep.subr.bf16.mxu0 %v1106_v4 }
  0x9c   : > { %v639_v38 = vand.u32 %v634_v37, %v263_v12 }
  0x9d   : > { %966 = vmatmul.mubr.msk.bf16.vlgmr.msra.gmra.mxu0 %vm256_vm4, %v896_v35 }
  0x9e   : > { %970 = vmatpush3.bf16.msra.mxu1 %v639_v38  ;;  %976 = vmatpush3.bf16.msra.mxu0 %v699_v36 }
  0x9f   : > { %977 = vmatprep.mubr.msk.bf16.mxu0 %vm1109_vm3, %v1106_v4 }
  0xa1   : > { %972 = vmatmul.mubr.msk.bf16.vlgmr.msra.gmra.mxu1 %vm256_vm4, %v899_v39 }
  0xa5   : > { %978 = vmatmul.mubr.msk.bf16.vlgmr.msra.gmra.mxu0 %vm256_vm4, %v903_v40 }
  0xe5   : > { %v301_v42 = vpop.f32.mrf.mxu0 }
  0xe6   : > { %v352_v43 = vpop.f32.mrf.mxu1  ;;  %v307_v44 = vadd.f32 %v301_v42, %v253_v41 }
  0xe7   : > { %v931_v45 = vpop.f32.mrf.mxu0 }
  0xe8   : > { %v937_v46 = vpop.f32.mrf.mxu1  ;;  %v358_v47 = vadd.f32 %v352_v43, %v307_v44 }
  0xe9   : > { %v304_v48 = vpop.f32.mrf.mxu0 }
  0xea   : > { %v355_v49 = vpop.f32.mrf.mxu1 }
  0xeb   : > { %v932_v50 = vpop.f32.mrf.mxu0 }
  0xec   : > { %v938_v51 = vpop.f32.mrf.mxu1 }
  0xed   : > { %v403_v52 = vpop.f32.mrf.mxu0 }
  0xee   : > { %v454_v53 = vpop.f32.mrf.mxu1  ;;  %v409_v54 = vadd.f32 %v403_v52, %v358_v47 }
  0xef   : > { %v943_v55 = vpop.f32.mrf.mxu0 }
  0xf0   : > { %v949_v56 = vpop.f32.mrf.mxu1  ;;  %v460_v57 = vadd.f32 %v454_v53, %v409_v54 }
  0xf1   : > { %v406_v58 = vpop.f32.mrf.mxu0 }
  0xf2   : > { %v457_v59 = vpop.f32.mrf.mxu1 }
  0xf3   : > { %v944_v60 = vpop.f32.mrf.mxu0 }
  0xf4   : > { %v950_v61 = vpop.f32.mrf.mxu1 }
  0xf5   : > { %v505_v62 = vpop.f32.mrf.mxu0 }
  0xf6   : > { %v556_v63 = vpop.f32.mrf.mxu1  ;;  %v511_v0 = vadd.f32 %v505_v62, %v460_v57 }
  0xf7   : > { %v955_v1 = vpop.f32.mrf.mxu0 }
  0xf8   : > { %v961_v2 = vpop.f32.mrf.mxu1  ;;  %v562_v3 = vadd.f32 %v556_v63, %v511_v0 }
  0xf9   : > { %v508_v4 = vpop.f32.mrf.mxu0 }
  0xfa   : > { %v559_v5 = vpop.f32.mrf.mxu1 }
  0xfb   : > { %v956_v6 = vpop.f32.mrf.mxu0 }
  0xfc   : > { %v962_v7 = vpop.f32.mrf.mxu1 }
 0x15d   : > { %v615_v8 = vpop.f32.mrf.mxu0 }
 0x15e   : > { %v621_v12 = vadd.f32 %v615_v8, %v562_v3 }
 0x15f   : > { %v967_v9 = vpop.f32.mrf.mxu0 }
 0x161   : > { %v618_v10 = vpop.f32.mrf.mxu0  ;;  %v675_v11 = vpop.f32.mrf.mxu1 }
 0x162   : > { %v681_v15 = vadd.f32 %v675_v11, %v621_v12 }
 0x163   : > { %v968_v13 = vpop.f32.mrf.mxu0  ;;  %v973_v14 = vpop.f32.mrf.mxu1 }
 0x165   : > { %v735_v16 = vpop.f32.mrf.mxu0  ;;  %v678_v17 = vpop.f32.mrf.mxu1 }
 0x166   : > { %v741_v18 = vadd.f32 %v735_v16, %v681_v15 }
 0x167   : > { %v979_v19 = vpop.f32.mrf.mxu0  ;;  %v974_v20 = vpop.f32.mrf.mxu1  ;;  %747 = sbr.rel (%p906_p11) target bundleno = 497 (0x1f1), region = 40 }
 0x168   : > { %743 = vst.msk [vmem:[#allocation2] sm:$0xff] %vm742_vm5, %v741_v18 }
 0x169   : > { %v738_v21 = vpop.f32.mrf.mxu0 }
 0x16b   : > { %v980_v22 = vpop.f32.mrf.mxu0 }
 0x16c   : > { %v749_v23 = vld [vmem:[%s1282_s1] sm:$0xff]  ;;  %v1110_v24 = vmov 0   ;;  %vm758_vm6 = vcmask 519168  }
 0x16d   : > { %1047 = vset.pattern.permute.xlu0 %v1110_v24 }
 0x16e   : > { %752 = vperm.xlu0 %1047, %v749_v23  }
 0x16f   : > { %v748_v25 = vld [vmem:[#allocation2] sm:$0xff] }
 0x1e9   : > { %v753_v26 = vpop.permute.xlu0 %752 }
 0x1ea   : > { %v755_v27 = vadd.f32 %v753_v26, %v748_v25 }
 0x1ec   : > { %v756_v28 = vmax.f32 %v755_v27, 0.0 }
 0x1ee   : > { %v757_v29 = vpack.c.bf16 %v756_v28, %v756_v28 }
 0x1f0   : > { %759 = vst.msk [vmem:[%s1191_s11] sm:$0xf] %vm758_vm6, %v757_v29 }
 0x1f1 PF: > { %s13_s18 = sadd.s32 1, %s1102_s18   ;;  %s1286_s23 = sld [smem:[#allocation3_spill]] }
 0x1f2   : > { %p10_p12 = scmp.ge.s32.totalorder %s13_s18, 50   ;;  %s1287_s12 = smov %s1090_s15 }
 0x1f3   : > { %s1288_s13 = smov %s1094_s16  ;;  %s1289_s14 = smov %s1098_s17 }
 0x1f4   : > { %s1290_s15 = smov %s1294_s19  ;;  %s1291_s16 = smov %s1298_s20 }
 0x1f5   :  { %12 = sbr.rel (!%p10_p12) target bundleno = 4 (0x4), region = 86 }
 0x1f7   : > { %s1292_s17 = smov %s1286_s23 }

// kernel: _lambda_.7
= control target key start
LH: loop header
LB: loop body
LE: loop exit
PB: predicated region body
PF: predicated region fallthrough
CT: control target
= control target key end

     0   :  { %s1240_s12 = smov 0   ;;  %s1242_s13 = smov 0   ;;  %s1398_s0 = inlined_call_operand.vmem [shape: bf16[3,3,3,16,8], index: 0, kind: input, shape index: {}]   ;;  %s1399_s1 = inlined_call_operand.vmem [shape: f32[16,1], index: 1, kind: input, shape index: {}]   ;;  %s1400_s2 = inlined_call_operand.vmem [shape: bf16[2,10,3,2,8,20], index: 2, kind: input, shape index: {}]   ;;  %s1401_s3 = inlined_call_operand.vmem [shape: bf16[2,4,16,16], index: 3, kind: output, shape index: {}]  }
   0x1   :  { %s1244_s14 = smov 0   ;;  %s1246_s15 = smov 0  }
   0x2   :  { %s1248_s16 = smov 0   ;;  %s1250_s17 = smov 0  }
   0x3   :  { %s1252_s18 = smov 0  }
   0x4 LB: > { %s25_s19 = sadd.s32 1, %s1201_s15  ;;  %s28_s20 = sadd.s32 1, %s1205_s16  ;;  %s1213_s18 = sphi %s1252_s18, %s13_s18   ;;  %s1209_s17 = sphi %s1250_s17, %s1409_s17   ;;  %s1205_s16 = sphi %s1248_s16, %s1408_s16   ;;  %s1201_s15 = sphi %s1246_s15, %s1407_s15   ;;  %s1197_s14 = sphi %s1244_s14, %s1406_s14   ;;  %s1193_s13 = sphi %s1242_s13, %s1405_s13   ;;  %s1189_s12 = sphi %s1240_s12, %s1404_s12  }
   0x5   : > { %p26_p0 = scmp.ge.s32.totalorder %s25_s19, 3  ;;  %p953_p1 = scmp.ge.s32.totalorder %s1213_s18, 1 }
   0x6   : > { %p182_p2 = scmp.lt.s32.totalorder %s1213_s18, 25  ;;  %s32_s21 = sadd.s32 1, %s1209_s17 }
   0x7   : > { %s1411_s19 = smov (%p26_p0, %s25_s19), 0  ;;  %s1413_s20 = smov (!%p26_p0, %s28_s20), %s1205_s16 }
   0x8   : > { %p183_p3 = pnand %p953_p1, %p182_p2  ;;  %p30_p4 = scmp.ge.s32.totalorder %s1413_s20, 4 }
   0x9   : > { %p221_p6 = scmp.lt.s32.totalorder (!%p183_p3), %s1189_s12, 2  ;;  %s955_s22 = sshll.u32 (!%p183_p3), %s1193_s13, 1 }
   0xa   : > { %s1415_s20 = smov (%p30_p4, %s1413_s20), 0  ;;  %s1417_s21 = smov (!%p30_p4, %s32_s21), %s1209_s17 }
   0xb   : > { %p34_p5 = scmp.ge.s32.totalorder %s1417_s21, 2  ;;  %186 = sbr.rel (%p183_p3) target bundleno = 496 (0x1f0), region = 32 }
   0xc   : > { %s227_s23 = sadd.s32 (!%p183_p3), %s1189_s12, %s955_s22  ;;  %p228_p7 = scmp.lt.s32.totalorder (!%p183_p3), %s1197_s14, 1 }
   0xd   : > { %s1419_s21 = smov (%p34_p5, %s1417_s21), 0  ;;  %p230_p8 = scmp.lt.s32.totalorder (!%p183_p3), %s227_s23, 9 }
   0xe   : > { %1402 = sst [smem:[#allocation3_spill]] %s1419_s21  ;;  %p241_p9 = scmp.lt.s32.totalorder (!%p183_p3), %s1193_s13, 3 }
   0xf   : > { %p960_p10 = scmp.ne.s32.totalorder (!%p183_p3), %s1189_s12, 0 }
  0x10   : > { %s222_s24 = scalar_select %p221_p6, %s1189_s12, 2 }
  0x11   : > { %s1421_s14 = smov (!%p228_p7, %s1197_s14), 1  ;;  %s1423_s23 = smov (!%p230_p8, %s227_s23), 9 }
  0x12   : > { %s1082_s25 = smul.u32 72, %s222_s24  ;;  %s958_s30 = sshll.u32 %s1421_s14, 3 }
  0x13   : > { %s1084_s26 = smul.u32 60, %s1421_s14  ;;  %s1425_s13 = smov (!%p241_p9, %s1193_s13), 3 }
  0x14   : > { %s1294_s29 = scalar_lea.vmem %s1398_s0, %s1082_s25  ;;  %s1083_s4 = smul.u32 6, %s1423_s23 }
  0x15   : > { %s957_s5 = sshll.u32 %s1425_s13, 1  ;;  %252 = sbr.rel (%p960_p10) target bundleno = 28 (0x1c), region = 36 }
  0x16   : > { %s234_s6 = sadd.s32 %s1084_s26, %s1083_s4  ;;  %s245_s7 = sadd.s32 %s958_s30, %s957_s5 }
  0x17   : > { %s956_s8 = sshll.u32 %s234_s6, 2  ;;  %s959_s9 = sshll.u32 %s245_s7, 2 }
  0x18   : > { %s1300_s22 = scalar_lea.vmem %s1400_s2, %s956_s8  ;;  %s1305_s27 = scalar_lea.vmem %s1401_s3, %s959_s9 }
  0x1a   : > { %vm253_vm0 = vcmask 130048   ;;  %v1215_v0 = vmov 0.0  }
  0x1b   : > { %254 = vst.msk [vmem:[#allocation2] sm:$0xff] %vm253_vm0, %v1215_v0  ;;  %255 = vst.msk [vmem:[#allocation2 + $0x8] sm:$0xff] %vm253_vm0, %v1215_v0 }
  0x1c PF: > { %v258_v1 = vld [vmem:[%s1300_s22] sm:$0xf]  ;;  %v963_v2 = vld [vmem:[%s1300_s22 + $0x8] sm:$0xf]  ;;  %v968_v4 = vld [vmem:[%s1300_s22 + $0x10] sm:$0xf] }
  0x1d   : > { %v991_v3 = vcombine.low %v258_v1, %v258_v1  ;;  %v1216_v5 = vmov 0.0   ;;  %vm270_vm1 = vcmask 1043456   ;;  %v1001_v6 = vcombine.low %v968_v4, %v968_v4  ;;  %v1149_v9 = vld [vmem:[%s1294_s29] sm:$0xff]   ;;  %s1218_s13 = smov 124   ;;  %v1150_v11 = vld [vmem:[%s1294_s29 + $0x8] sm:$0xff]   ;;  %v1151_v15 = vld [vmem:[%s1294_s29 + $0x10] sm:$0xff]  }
  0x1e   : > { %1028 = vmatprep.subr.bf16.mxu0 %v1216_v5  ;;  %1034 = vmatprep.subr.bf16.mxu1 %v1216_v5  ;;  %v272_v7 = vsel %vm270_vm1, %v258_v1, 0  ;;  %vm1217_vm2 = vmmov 0   ;;  %v331_v8 = vsel %vm270_vm1, %v963_v2, 0  ;;  %v996_v10 = vcombine.low %v963_v2, %v963_v2  ;;  %v973_v12 = vld [vmem:[%s1300_s22 + $0x4] sm:$0xf]  ;;  %v1152_v18 = vld [vmem:[%s1294_s29 + $0x18] sm:$0xff]  }
  0x1f   : > { %1030 = vmatprep.mubr.msk.bf16.mxu0 %vm1217_vm2, %v1216_v5  ;;  %1036 = vmatprep.mubr.msk.bf16.mxu1 %vm1217_vm2, %v1216_v5  ;;  %vm266_vm3 = vcmask 64512   ;;  %v390_v13 = vsel %vm270_vm1, %v968_v4, 0  ;;  %v449_v14 = vsel %vm270_vm1, %v973_v12, 0  ;;  %v978_v16 = vld [vmem:[%s1300_s22 + $0xc] sm:$0xf]  ;;  %v1153_v21 = vld [vmem:[%s1294_s29 + $0x20] sm:$0xff]  }
  0x20   : > { %623 = vrot.lane.b32.xlu0 %v991_v3, %s1218_s13  ;;  %1029 = vmatpush3.bf16.msra.mxu0 %v272_v7  ;;  %v983_v17 = vld [vmem:[%s1300_s22 + $0x14] sm:$0xf]  ;;  %v508_v19 = vsel %vm270_vm1, %v978_v16, 0  ;;  %v1154_v22 = vld [vmem:[%s1294_s29 + $0x28] sm:$0xff]   ;;  %v1156_v30 = vld [vmem:[%s1294_s29 + $0x38] sm:$0xff]   ;;  %vm798_vm4 = vcmask 130048  }
  0x21   : > { %747 = vrot.lane.b32.xlu1 %v1001_v6, %s1218_s13  ;;  %1035 = vmatpush3.bf16.msra.mxu1 %v331_v8  ;;  %v567_v20 = vsel %vm270_vm1, %v983_v17, 0  ;;  %v1155_v25 = vld [vmem:[%s1294_s29 + $0x30] sm:$0xff]   ;;  %v1157_v31 = vld [vmem:[%s1294_s29 + $0x40] sm:$0xff]   ;;  %p1003_p11 = scmp.ne.s32.totalorder %s1189_s12, 2 }
  0x22   : > { %1040 = vmatprep.subr.bf16.mxu0 %v1216_v5  ;;  %1046 = vmatprep.subr.bf16.mxu1 %v1216_v5  ;;  %v256_v32 = vld [vmem:[#allocation2] sm:$0xff]  ;;  %v257_v37 = vld [vmem:[#allocation2 + $0x8] sm:$0xff] }
  0x23   : > { %1031 = vmatmul.mubr.msk.bf16.vlgmr.msra.gmra.mxu0 %vm266_vm3, %v1149_v9 }
  0x24   : > { %685 = vrot.lane.b32.xlu0 %v996_v10, %s1218_s13  ;;  %1037 = vmatmul.mubr.msk.bf16.vlgmr.msra.gmra.mxu1 %vm266_vm3, %v1150_v11 }
  0x25   : > { %1041 = vmatpush3.bf16.msra.mxu0 %v390_v13  ;;  %1042 = vmatprep.mubr.msk.bf16.mxu0 %vm1217_vm2, %v1216_v5 }
  0x26   : > { %1047 = vmatpush3.bf16.msra.mxu1 %v449_v14  ;;  %1048 = vmatprep.mubr.msk.bf16.mxu1 %vm1217_vm2, %v1216_v5 }
  0x27   : > { %1052 = vmatprep.subr.bf16.mxu0 %v1216_v5  ;;  %1058 = vmatprep.subr.bf16.mxu1 %v1216_v5 }
  0x2b   : > { %1043 = vmatmul.mubr.msk.bf16.vlgmr.msra.gmra.mxu0 %vm266_vm3, %v1151_v15 }
  0x2c   : > { %1049 = vmatmul.mubr.msk.bf16.vlgmr.msra.gmra.mxu1 %vm266_vm3, %v1152_v18  ;;  %1053 = vmatpush3.bf16.msra.mxu0 %v508_v19 }
  0x2d   : > { %1054 = vmatprep.mubr.msk.bf16.mxu0 %vm1217_vm2, %v1216_v5  ;;  %1059 = vmatpush3.bf16.msra.mxu1 %v567_v20 }
  0x2e   : > { %1060 = vmatprep.mubr.msk.bf16.mxu1 %vm1217_vm2, %v1216_v5  ;;  %1064 = vmatprep.subr.bf16.mxu0 %v1216_v5 }
  0x2f   : > { %1070 = vmatprep.subr.bf16.mxu1 %v1216_v5 }
  0x33   : > { %1055 = vmatmul.mubr.msk.bf16.vlgmr.msra.gmra.mxu0 %vm266_vm3, %v1153_v21 }
  0x34   : > { %1061 = vmatmul.mubr.msk.bf16.vlgmr.msra.gmra.mxu1 %vm266_vm3, %v1154_v22  ;;  %1066 = vmatprep.mubr.msk.bf16.mxu0 %vm1217_vm2, %v1216_v5 }
  0x35   : > { %1072 = vmatprep.mubr.msk.bf16.mxu1 %vm1217_vm2, %v1216_v5 }
  0x92   : > { %v624_v23 = vpop.permute.xlu0 %623 }
  0x93   : > { %v629_v24 = vsel %vm270_vm1, %v624_v23, 0  ;;  %v748_v26 = vpop.permute.xlu1 %747 }
  0x94   : > { %1065 = vmatpush3.bf16.msra.mxu0 %v629_v24  ;;  %v753_v27 = vsel %vm270_vm1, %v748_v26, 0 }
  0x95   : > { %1076 = vmatprep.subr.bf16.mxu0 %v1216_v5 }
  0x96   : > { %v686_v28 = vpop.permute.xlu0 %685 }
  0x97   : > { %v691_v29 = vsel %vm270_vm1, %v686_v28, 0  ;;  %1067 = vmatmul.mubr.msk.bf16.vlgmr.msra.gmra.mxu0 %vm266_vm3, %v1155_v25 }
  0x98   : > { %1071 = vmatpush3.bf16.msra.mxu1 %v691_v29  ;;  %1077 = vmatpush3.bf16.msra.mxu0 %v753_v27 }
  0x99   : > { %1078 = vmatprep.mubr.msk.bf16.mxu0 %vm1217_vm2, %v1216_v5 }
  0x9b   : > { %1073 = vmatmul.mubr.msk.bf16.vlgmr.msra.gmra.mxu1 %vm266_vm3, %v1156_v30 }
  0x9f   : > { %1079 = vmatmul.mubr.msk.bf16.vlgmr.msra.gmra.mxu0 %vm266_vm3, %v1157_v31 }
  0xe3   : > { %v308_v33 = vpop.f32.mrf.mxu0 }
  0xe4   : > { %v315_v34 = vadd.f32 %v308_v33, %v256_v32  ;;  %v367_v35 = vpop.f32.mrf.mxu1 }
  0xe5   : > { %v1032_v36 = vpop.f32.mrf.mxu0 }
  0xe6   : > { %v374_v38 = vadd.f32 %v367_v35, %v315_v34  ;;  %v1038_v39 = vpop.f32.mrf.mxu1 }
  0xe7   : > { %v311_v40 = vpop.f32.mrf.mxu0 }
  0xe8   : > { %v316_v41 = vadd.f32 %v311_v40, %v257_v37  ;;  %v370_v42 = vpop.f32.mrf.mxu1 }
  0xe9   : > { %v1033_v43 = vpop.f32.mrf.mxu0 }
  0xea   : > { %v375_v44 = vadd.f32 %v370_v42, %v316_v41  ;;  %v1039_v45 = vpop.f32.mrf.mxu1 }
  0xeb   : > { %v426_v46 = vpop.f32.mrf.mxu0 }
  0xec   : > { %v433_v47 = vadd.f32 %v426_v46, %v374_v38  ;;  %v485_v48 = vpop.f32.mrf.mxu1 }
  0xed   : > { %v1044_v49 = vpop.f32.mrf.mxu0 }
  0xee   : > { %v492_v50 = vadd.f32 %v485_v48, %v433_v47  ;;  %v1050_v51 = vpop.f32.mrf.mxu1 }
  0xef   : > { %v429_v52 = vpop.f32.mrf.mxu0 }
  0xf0   : > { %v434_v53 = vadd.f32 %v429_v52, %v375_v44  ;;  %v488_v54 = vpop.f32.mrf.mxu1 }
  0xf1   : > { %v1045_v55 = vpop.f32.mrf.mxu0 }
  0xf2   : > { %v493_v56 = vadd.f32 %v488_v54, %v434_v53  ;;  %v1051_v57 = vpop.f32.mrf.mxu1 }
  0xf3   : > { %v544_v58 = vpop.f32.mrf.mxu0 }
  0xf4   : > { %v551_v59 = vadd.f32 %v544_v58, %v492_v50  ;;  %v603_v60 = vpop.f32.mrf.mxu1 }
  0xf5   : > { %v1056_v61 = vpop.f32.mrf.mxu0 }
  0xf6   : > { %v610_v62 = vadd.f32 %v603_v60, %v551_v59  ;;  %v1062_v63 = vpop.f32.mrf.mxu1 }
  0xf7   : > { %v547_v0 = vpop.f32.mrf.mxu0 }
  0xf8   : > { %v552_v1 = vadd.f32 %v547_v0, %v493_v56  ;;  %v606_v2 = vpop.f32.mrf.mxu1 }
  0xf9   : > { %v1057_v3 = vpop.f32.mrf.mxu0 }
  0xfa   : > { %v611_v4 = vadd.f32 %v606_v2, %v552_v1  ;;  %v1063_v5 = vpop.f32.mrf.mxu1 }
 0x157   : > { %v665_v6 = vpop.f32.mrf.mxu0 }
 0x158   : > { %v672_v10 = vadd.f32 %v665_v6, %v610_v62 }
 0x159   : > { %v1068_v7 = vpop.f32.mrf.mxu0 }
 0x15b   : > { %v668_v8 = vpop.f32.mrf.mxu0  ;;  %v727_v9 = vpop.f32.mrf.mxu1 }
 0x15c   : > { %v734_v13 = vadd.f32 %v727_v9, %v672_v10  ;;  %v673_v16 = vadd.f32 %v668_v8, %v611_v4 }
 0x15d   : > { %v1069_v11 = vpop.f32.mrf.mxu0  ;;  %v1074_v12 = vpop.f32.mrf.mxu1 }
 0x15f   : > { %v730_v14 = vpop.f32.mrf.mxu1  ;;  %v789_v15 = vpop.f32.mrf.mxu0 }
 0x160   : > { %v796_v17 = vadd.f32 %v789_v15, %v734_v13  ;;  %v735_v20 = vadd.f32 %v730_v14, %v673_v16 }
 0x161   : > { %v1080_v18 = vpop.f32.mrf.mxu0  ;;  %v1075_v19 = vpop.f32.mrf.mxu1 }
 0x162   : > { %799 = vst.msk [vmem:[#allocation2] sm:$0xff] %vm798_vm4, %v796_v17  ;;  %804 = sbr.rel (%p1003_p11) target bundleno = 496 (0x1f0), region = 40 }
 0x163   : > { %v792_v21 = vpop.f32.mrf.mxu0 }
 0x164   : > { %v797_v22 = vadd.f32 %v792_v21, %v735_v20 }
 0x165   : > { %v1081_v23 = vpop.f32.mrf.mxu0 }
 0x166   : > { %800 = vst.msk [vmem:[#allocation2 + $0x8] sm:$0xff] %vm798_vm4, %v797_v22 }
 0x167   : > { %v807_v24 = vld [vmem:[%s1399_s1] sm:$0xff]  ;;  %v1219_v25 = vmov 0   ;;  %v808_v26 = vld [vmem:[%s1399_s1 + $0x8] sm:$0xff]  ;;  %vm831_vm5 = vcmask 125952  }
 0x168   : > { %1158 = vset.pattern.permute.xlu0 %v1219_v25 }
 0x169   : > { %811 = vperm.xlu0 %1158, %v807_v24   ;;  %v805_v27 = vld [vmem:[#allocation2] sm:$0xff] }
 0x16d   : > { %816 = vperm.xlu0 %1158, %v808_v26   ;;  %v806_v30 = vld [vmem:[#allocation2 + $0x8] sm:$0xff] }
 0x1e4   : > { %v812_v28 = vpop.permute.xlu0 %811 }
 0x1e5   : > { %v819_v29 = vadd.f32 %v812_v28, %v805_v27 }
 0x1e7   : > { %v821_v31 = vmax.f32 %v819_v29, 0.0 }
 0x1e8   : > { %v817_v32 = vpop.permute.xlu0 %816 }
 0x1e9   : > { %v1008_v33 = vpack.c.bf16 %v821_v31, %v821_v31  ;;  %v820_v34 = vadd.f32 %v817_v32, %v806_v30 }
 0x1eb   : > { %832 = vst.msk [vmem:[%s1305_s27] sm:$0xf] %vm831_vm5, %v1008_v33  ;;  %v822_v35 = vmax.f32 %v820_v34, 0.0 }
 0x1ed   : > { %v1009_v36 = vpack.c.bf16 %v822_v35, %v822_v35 }
 0x1ef   : > { %833 = vst.msk [vmem:[%s1305_s27 + $0x4] sm:$0xf] %vm831_vm5, %v1009_v36 }
 0x1f0 PF: > { %s13_s18 = sadd.s32 1, %s1213_s18   ;;  %s1403_s26 = sld [smem:[#allocation3_spill]] }
 0x1f1   : > { %p10_p12 = scmp.ge.s32.totalorder %s13_s18, 26   ;;  %s1404_s12 = smov %s1201_s15 }
 0x1f2   : > { %s1405_s13 = smov %s1205_s16  ;;  %s1406_s14 = smov %s1209_s17 }
 0x1f3   : > { %s1407_s15 = smov %s1411_s19  ;;  %s1408_s16 = smov %s1415_s20 }
 0x1f4   :  { %12 = sbr.rel (!%p10_p12) target bundleno = 4 (0x4), region = 86 }
 0x1f6   : > { %s1409_s17 = smov %s1403_s26 }

// kernel: _lambda_.8
= control target key start
LH: loop header
LB: loop body
LE: loop exit
PB: predicated region body
PF: predicated region fallthrough
CT: control target
= control target key end

     0   :  { %s1526_s12 = smov 0   ;;  %s1528_s13 = smov 0   ;;  %s1678_s0 = inlined_call_operand.vmem [shape: bf16[3,3,3,32,16], index: 0, kind: input, shape index: {}]   ;;  %s1679_s1 = inlined_call_operand.vmem [shape: f32[32,1], index: 1, kind: input, shape index: {}]   ;;  %s1680_s2 = inlined_call_operand.vmem [shape: bf16[2,6,3,2,16,6], index: 2, kind: input, shape index: {}]   ;;  %s1681_s3 = inlined_call_operand.vmem [shape: bf16[2,2,32,4], index: 3, kind: output, shape index: {}]  }
   0x1   :  { %s1530_s14 = smov 0   ;;  %s1532_s15 = smov 0  }
   0x2   :  { %s1534_s16 = smov 0   ;;  %s1536_s17 = smov 0  }
   0x3   :  { %s1538_s18 = smov 0  }
   0x4 LB: > { %s25_s19 = sadd.s32 1, %s1489_s15  ;;  %s28_s20 = sadd.s32 1, %s1493_s16  ;;  %s1501_s18 = sphi %s1538_s18, %s13_s18   ;;  %s1497_s17 = sphi %s1536_s17, %s1689_s17   ;;  %s1493_s16 = sphi %s1534_s16, %s1688_s16   ;;  %s1489_s15 = sphi %s1532_s15, %s1687_s15   ;;  %s1485_s14 = sphi %s1530_s14, %s1686_s14   ;;  %s1481_s13 = sphi %s1528_s13, %s1685_s13   ;;  %s1477_s12 = sphi %s1526_s12, %s1684_s12  }
   0x5   : > { %p26_p0 = scmp.ge.s32.totalorder %s25_s19, 3  ;;  %p1175_p1 = scmp.ge.s32.totalorder %s1501_s18, 1 }
   0x6   : > { %p182_p2 = scmp.lt.s32.totalorder %s1501_s18, 13  ;;  %s32_s21 = sadd.s32 1, %s1497_s17 }
   0x7   : > { %s1691_s19 = smov (%p26_p0, %s25_s19), 0  ;;  %s1693_s20 = smov (!%p26_p0, %s28_s20), %s1493_s16 }
   0x8   : > { %p183_p3 = pnand %p1175_p1, %p182_p2  ;;  %p30_p4 = scmp.ge.s32.totalorder %s1693_s20, 2 }
   0x9   : > { %p221_p6 = scmp.lt.s32.totalorder (!%p183_p3), %s1477_s12, 2  ;;  %s1177_s22 = sshll.u32 (!%p183_p3), %s1481_s13, 1 }
   0xa   : > { %s1695_s20 = smov (%p30_p4, %s1693_s20), 0  ;;  %s1697_s21 = smov (!%p30_p4, %s32_s21), %s1497_s17 }
   0xb   : > { %p34_p5 = scmp.ge.s32.totalorder %s1697_s21, 2  ;;  %186 = sbr.rel (%p183_p3) target bundleno = 496 (0x1f0), region = 32 }
   0xc   : > { %s227_s23 = sadd.s32 (!%p183_p3), %s1477_s12, %s1177_s22  ;;  %p228_p7 = scmp.lt.s32.totalorder (!%p183_p3), %s1485_s14, 1 }
   0xd   : > { %s1699_s21 = smov (%p34_p5, %s1697_s21), 0  ;;  %p230_p8 = scmp.lt.s32.totalorder (!%p183_p3), %s227_s23, 5 }
   0xe   : > { %1682 = sst [smem:[#allocation3_spill]] %s1699_s21  ;;  %p241_p9 = scmp.lt.s32.totalorder (!%p183_p3), %s1481_s13, 1 }
   0xf   : > { %p1182_p10 = scmp.ne.s32.totalorder (!%p183_p3), %s1477_s12, 0 }
  0x10   : > { %s222_s24 = scalar_select %p221_p6, %s1477_s12, 2 }
  0x11   : > { %s1701_s14 = smov (!%p228_p7, %s1485_s14), 1  ;;  %s1703_s23 = smov (!%p230_p8, %s227_s23), 5 }
  0x12   : > { %s1359_s25 = smul.u32 144, %s222_s24  ;;  %s1180_s30 = sshll.u32 %s1701_s14, 3 }
  0x13   : > { %s1361_s26 = smul.u32 72, %s1701_s14  ;;  %s1705_s13 = smov (!%p241_p9, %s1481_s13), 1 }
  0x14   : > { %s1580_s29 = scalar_lea.vmem %s1678_s0, %s1359_s25  ;;  %s1360_s4 = smul.u32 12, %s1703_s23 }
  0x15   : > { %s1179_s5 = sshll.u32 %s1705_s13, 2  ;;  %252 = sbr.rel (%p1182_p10) target bundleno = 29 (0x1d), region = 36 }
  0x16   : > { %s234_s6 = sadd.s32 %s1361_s26, %s1360_s4  ;;  %s245_s7 = sadd.s32 %s1180_s30, %s1179_s5 }
  0x17   : > { %s1178_s8 = sshll.u32 %s234_s6, 2  ;;  %s1181_s9 = sshll.u32 %s245_s7, 2 }
  0x18   : > { %s1586_s22 = scalar_lea.vmem %s1680_s2, %s1178_s8  ;;  %s1591_s27 = scalar_lea.vmem %s1681_s3, %s1181_s9 }
  0x1a   : > { %vm253_vm0 = vcmask 31744   ;;  %v1503_v0 = vmov 0.0  }
  0x1b   : > { %254 = vst.msk [vmem:[#allocation2] sm:$0xff] %vm253_vm0, %v1503_v0  ;;  %255 = vst.msk [vmem:[#allocation2 + $0x8] sm:$0xff] %vm253_vm0, %v1503_v0 }
  0x1c   : > { %256 = vst.msk [vmem:[#allocation2 + $0x10] sm:$0xff] %vm253_vm0, %v1503_v0  ;;  %257 = vst.msk [vmem:[#allocation2 + $0x18] sm:$0xff] %vm253_vm0, %v1503_v0 }
  0x1d PF: > { %v1421_v1 = vld [vmem:[%s1586_s22] sm:$0xff]   ;;  %v1422_v2 = vld [vmem:[%s1586_s22 + $0x10] sm:$0xff]   ;;  %s1504_s13 = smov 126   ;;  %vm284_vm1 = vcmask 130048   ;;  %v1425_v5 = vld [vmem:[%s1580_s29 + $0x8] sm:$0xff]   ;;  %vm990_vm2 = vcmask 31744  }
  0x1e   : > { %774 = vrot.lane.b32.xlu0 %v1421_v1, %s1504_s13  ;;  %v1423_v3 = vld [vmem:[%s1586_s22 + $0x20] sm:$0xff]   ;;  %1305 = vmatprep.subr.bf16.mxu0 %v1421_v1  ;;  %v1426_v6 = vld [vmem:[%s1580_s29 + $0x10] sm:$0xff]   ;;  %v1427_v7 = vld [vmem:[%s1580_s29 + $0x18] sm:$0xff]   ;;  %p1267_p11 = scmp.ne.s32.totalorder %s1477_s12, 2 }
  0x1f   : > { %1306 = vmatpush3.bf16.msra.mxu0 %v1421_v1  ;;  %1311 = vmatprep.subr.bf16.mxu1 %v1422_v2  ;;  %v1424_v4 = vld [vmem:[%s1580_s29] sm:$0xff]   ;;  %v1428_v8 = vld [vmem:[%s1586_s22 + $0x8] sm:$0xff]   ;;  %v1431_v11 = vld [vmem:[%s1580_s29 + $0x30] sm:$0xff]  }
  0x20   : > { %928 = vrot.lane.b32.xlu1 %v1423_v3, %s1504_s13  ;;  %1312 = vmatpush3.bf16.msra.mxu1 %v1422_v2  ;;  %v1429_v9 = vld [vmem:[%s1580_s29 + $0x20] sm:$0xff]   ;;  %v1430_v10 = vld [vmem:[%s1580_s29 + $0x28] sm:$0xff]   ;;  %v1432_v12 = vld [vmem:[%s1580_s29 + $0x38] sm:$0xff]  }
  0x21   : > { %1307 = vmatprep.mubr.msk.bf16.mxu0 %vm284_vm1, %v1424_v4  ;;  %1317 = vmatprep.subr.bf16.mxu0 %v1423_v3  ;;  %v1433_v13 = vld [vmem:[%s1586_s22 + $0x18] sm:$0xff]   ;;  %v1434_v14 = vld [vmem:[%s1586_s22 + $0x28] sm:$0xff]   ;;  %v1435_v15 = vld [vmem:[%s1580_s29 + $0x40] sm:$0xff]  }
  0x22   : > { %851 = vrot.lane.b32.xlu0 %v1422_v2, %s1504_s13  ;;  %1308 = vmatmul.mubr.msk.bf16.vlgmr.msra.gmra.mxu0 %vm284_vm1, %v1425_v5  ;;  %v1437_v16 = vld [vmem:[%s1580_s29 + $0x50] sm:$0xff]   ;;  %v1436_v17 = vld [vmem:[%s1580_s29 + $0x48] sm:$0xff]   ;;  %v1439_v18 = vld [vmem:[%s1580_s29 + $0x60] sm:$0xff]  }
  0x23   : > { %1313 = vmatprep.mubr.msk.bf16.mxu1 %vm284_vm1, %v1426_v6  ;;  %1318 = vmatpush3.bf16.msra.mxu0 %v1423_v3  ;;  %v1438_v19 = vld [vmem:[%s1580_s29 + $0x58] sm:$0xff]   ;;  %v1441_v20 = vld [vmem:[%s1580_s29 + $0x70] sm:$0xff]   ;;  %v1440_v22 = vld [vmem:[%s1580_s29 + $0x68] sm:$0xff]  }
  0x24   : > { %1314 = vmatmul.mubr.msk.bf16.vlgmr.msra.gmra.mxu1 %vm284_vm1, %v1427_v7  ;;  %1323 = vmatprep.subr.bf16.mxu1 %v1428_v8  ;;  %v1443_v24 = vld [vmem:[%s1580_s29 + $0x80] sm:$0xff]   ;;  %v1442_v26 = vld [vmem:[%s1580_s29 + $0x78] sm:$0xff]   ;;  %v1444_v27 = vld [vmem:[%s1580_s29 + $0x88] sm:$0xff]  }
  0x25   : > { %1319 = vmatprep.mubr.msk.bf16.mxu0 %vm284_vm1, %v1429_v9  ;;  %1324 = vmatpush3.bf16.msra.mxu1 %v1428_v8  ;;  %v260_v41 = vld [vmem:[#allocation2 + $0x10] sm:$0xff]  ;;  %v258_v42 = vld [vmem:[#allocation2] sm:$0xff]  ;;  %v261_v46 = vld [vmem:[#allocation2 + $0x18] sm:$0xff] }
  0x26   : > { %1325 = vmatprep.mubr.msk.bf16.mxu1 %vm284_vm1, %v1431_v11  ;;  %1329 = vmatprep.subr.bf16.mxu0 %v1433_v13  ;;  %v259_v48 = vld [vmem:[#allocation2 + $0x8] sm:$0xff] }
  0x27   : > { %1335 = vmatprep.subr.bf16.mxu1 %v1434_v14 }
  0x2a   : > { %1320 = vmatmul.mubr.msk.bf16.vlgmr.msra.gmra.mxu0 %vm284_vm1, %v1430_v10 }
  0x2b   : > { %1330 = vmatpush3.bf16.msra.mxu0 %v1433_v13  ;;  %1331 = vmatprep.mubr.msk.bf16.mxu0 %vm284_vm1, %v1435_v15 }
  0x2c   : > { %1326 = vmatmul.mubr.msk.bf16.vlgmr.msra.gmra.mxu1 %vm284_vm1, %v1432_v12 }
  0x2d   : > { %1336 = vmatpush3.bf16.msra.mxu1 %v1434_v14  ;;  %1337 = vmatprep.mubr.msk.bf16.mxu1 %vm284_vm1, %v1437_v16 }
  0x32   : > { %1332 = vmatmul.mubr.msk.bf16.vlgmr.msra.gmra.mxu0 %vm284_vm1, %v1436_v17 }
  0x33   : > { %1343 = vmatprep.mubr.msk.bf16.mxu0 %vm284_vm1, %v1439_v18 }
  0x34   : > { %1338 = vmatmul.mubr.msk.bf16.vlgmr.msra.gmra.mxu1 %vm284_vm1, %v1438_v19 }
  0x35   : > { %1349 = vmatprep.mubr.msk.bf16.mxu1 %vm284_vm1, %v1441_v20 }
  0x90   : > { %v775_v21 = vpop.permute.xlu0 %774 }
  0x91   : > { %1341 = vmatprep.subr.bf16.mxu0 %v775_v21 }
  0x92   : > { %1342 = vmatpush3.bf16.msra.mxu0 %v775_v21  ;;  %v929_v23 = vpop.permute.xlu1 %928 }
  0x93   : > { %1353 = vmatprep.subr.bf16.mxu0 %v929_v23 }
  0x94   : > { %v852_v25 = vpop.permute.xlu0 %851 }
  0x95   : > { %1344 = vmatmul.mubr.msk.bf16.vlgmr.msra.gmra.mxu0 %vm284_vm1, %v1440_v22  ;;  %1347 = vmatprep.subr.bf16.mxu1 %v852_v25 }
  0x96   : > { %1348 = vmatpush3.bf16.msra.mxu1 %v852_v25  ;;  %1354 = vmatpush3.bf16.msra.mxu0 %v929_v23 }
  0x97   : > { %1355 = vmatprep.mubr.msk.bf16.mxu0 %vm284_vm1, %v1443_v24 }
  0x99   : > { %1350 = vmatmul.mubr.msk.bf16.vlgmr.msra.gmra.mxu1 %vm284_vm1, %v1442_v26 }
  0x9d   : > { %1356 = vmatmul.mubr.msk.bf16.vlgmr.msra.gmra.mxu0 %vm284_vm1, %v1444_v27 }
  0xe2   : > { %v1309_v28 = vpop.f32.mrf.mxu0 }
  0xe3   : > { %v342_v45 = vadd.f32 %v1309_v28, %v260_v41 }
  0xe4   : > { %v325_v29 = vpop.f32.mrf.mxu0  ;;  %v1315_v30 = vpop.f32.mrf.mxu1 }
  0xe5   : > { %v340_v47 = vadd.f32 %v325_v29, %v258_v42  ;;  %v425_v51 = vadd.f32 %v1315_v30, %v342_v45 }
  0xe6   : > { %v1310_v31 = vpop.f32.mrf.mxu0  ;;  %v408_v32 = vpop.f32.mrf.mxu1 }
  0xe7   : > { %v343_v52 = vadd.f32 %v1310_v31, %v261_v46  ;;  %v423_v53 = vadd.f32 %v408_v32, %v340_v47 }
  0xe8   : > { %v328_v33 = vpop.f32.mrf.mxu0  ;;  %v1316_v34 = vpop.f32.mrf.mxu1 }
  0xe9   : > { %v341_v54 = vadd.f32 %v328_v33, %v259_v48  ;;  %v426_v57 = vadd.f32 %v1316_v34, %v343_v52 }
  0xea   : > { %v411_v35 = vpop.f32.mrf.mxu1  ;;  %v1321_v36 = vpop.f32.mrf.mxu0 }
  0xeb   : > { %v508_v58 = vadd.f32 %v1321_v36, %v425_v51  ;;  %v424_v59 = vadd.f32 %v411_v35, %v341_v54 }
  0xec   : > { %v491_v37 = vpop.f32.mrf.mxu0  ;;  %v1327_v38 = vpop.f32.mrf.mxu1 }
  0xed   : > { %v506_v60 = vadd.f32 %v491_v37, %v423_v53  ;;  %v591_v63 = vadd.f32 %v1327_v38, %v508_v58 }
  0xee   : > { %v1322_v39 = vpop.f32.mrf.mxu0  ;;  %v574_v40 = vpop.f32.mrf.mxu1 }
  0xef   : > { %v509_v0 = vadd.f32 %v1322_v39, %v426_v57  ;;  %v589_v1 = vadd.f32 %v574_v40, %v506_v60 }
  0xf0   : > { %v494_v43 = vpop.f32.mrf.mxu0  ;;  %v1328_v44 = vpop.f32.mrf.mxu1 }
  0xf1   : > { %v507_v2 = vadd.f32 %v494_v43, %v424_v59  ;;  %v592_v5 = vadd.f32 %v1328_v44, %v509_v0 }
  0xf2   : > { %v577_v49 = vpop.f32.mrf.mxu1  ;;  %v1333_v50 = vpop.f32.mrf.mxu0 }
  0xf3   : > { %v674_v6 = vadd.f32 %v1333_v50, %v591_v63  ;;  %v590_v8 = vadd.f32 %v577_v49, %v507_v2 }
  0xf4   : > { %v657_v55 = vpop.f32.mrf.mxu0  ;;  %v1339_v56 = vpop.f32.mrf.mxu1 }
  0xf5   : > { %v672_v9 = vadd.f32 %v657_v55, %v589_v1  ;;  %v757_v12 = vadd.f32 %v1339_v56, %v674_v6 }
  0xf6   : > { %v1334_v61 = vpop.f32.mrf.mxu0  ;;  %v740_v62 = vpop.f32.mrf.mxu1 }
  0xf7   : > { %v675_v13 = vadd.f32 %v1334_v61, %v592_v5  ;;  %v755_v16 = vadd.f32 %v740_v62, %v672_v9 }
  0xf8   : > { %v660_v3 = vpop.f32.mrf.mxu0  ;;  %v1340_v4 = vpop.f32.mrf.mxu1 }
  0xf9   : > { %v673_v17 = vadd.f32 %v660_v3, %v590_v8  ;;  %v758_v21 = vadd.f32 %v1340_v4, %v675_v13 }
  0xfa   : > { %v743_v10 = vpop.f32.mrf.mxu1 }
  0xfb   : > { %v756_v26 = vadd.f32 %v743_v10, %v673_v17 }
 0x155   : > { %v1345_v7 = vpop.f32.mrf.mxu0 }
 0x156   : > { %v834_v18 = vadd.f32 %v1345_v7, %v757_v12 }
 0x157   : > { %v817_v11 = vpop.f32.mrf.mxu0 }
 0x158   : > { %v832_v22 = vadd.f32 %v817_v11, %v755_v16 }
 0x159   : > { %v1346_v14 = vpop.f32.mrf.mxu0  ;;  %v1351_v15 = vpop.f32.mrf.mxu1 }
 0x15a   : > { %v911_v23 = vadd.f32 %v1351_v15, %v834_v18  ;;  %v835_v27 = vadd.f32 %v1346_v14, %v758_v21 }
 0x15b   : > { %v820_v19 = vpop.f32.mrf.mxu0  ;;  %v894_v20 = vpop.f32.mrf.mxu1 }
 0x15c   : > { %v909_v28 = vadd.f32 %v894_v20, %v832_v22  ;;  %v833_v32 = vadd.f32 %v820_v19, %v756_v26 }
 0x15d   : > { %v1352_v24 = vpop.f32.mrf.mxu1  ;;  %v1357_v25 = vpop.f32.mrf.mxu0 }
 0x15e   : > { %v988_v29 = vadd.f32 %v1357_v25, %v911_v23  ;;  %v912_v33 = vadd.f32 %v1352_v24, %v835_v27 }
 0x15f   : > { %v897_v30 = vpop.f32.mrf.mxu1  ;;  %v971_v31 = vpop.f32.mrf.mxu0 }
 0x160   : > { %993 = vst.msk [vmem:[#allocation2 + $0x10] sm:$0xff] %vm990_vm2, %v988_v29  ;;  %v986_v34 = vadd.f32 %v971_v31, %v909_v28  ;;  %v910_v36 = vadd.f32 %v897_v30, %v833_v32 }
 0x161   : > { %v1358_v35 = vpop.f32.mrf.mxu0 }
 0x162   : > { %991 = vst.msk [vmem:[#allocation2] sm:$0xff] %vm990_vm2, %v986_v34  ;;  %v989_v37 = vadd.f32 %v1358_v35, %v912_v33  ;;  %998 = sbr.rel (%p1267_p11) target bundleno = 496 (0x1f0), region = 40 }
 0x163   : > { %v974_v38 = vpop.f32.mrf.mxu0 }
 0x164   : > { %994 = vst.msk [vmem:[#allocation2 + $0x18] sm:$0xff] %vm990_vm2, %v989_v37  ;;  %v987_v39 = vadd.f32 %v974_v38, %v910_v36 }
 0x166   : > { %992 = vst.msk [vmem:[#allocation2 + $0x8] sm:$0xff] %vm990_vm2, %v987_v39 }
 0x167   : > { %v1005_v40 = vld [vmem:[%s1679_s1 + $0x10] sm:$0xff]  ;;  %v1003_v41 = vld [vmem:[%s1679_s1] sm:$0xff]  ;;  %v1505_v42 = vmov 0   ;;  %v1006_v43 = vld [vmem:[%s1679_s1 + $0x18] sm:$0xff]  ;;  %vm1051_vm3 = vcmask 27648  }
 0x168   : > { %1446 = vset.pattern.permute.xlu1 %v1505_v42  ;;  %1445 = vset.pattern.permute.xlu0 %v1505_v42  ;;  %v1004_v44 = vld [vmem:[%s1679_s1 + $0x8] sm:$0xff]  ;;  %v1001_v45 = vld [vmem:[#allocation2 + $0x10] sm:$0xff] }
 0x169   : > { %1019 = vperm.xlu1 %1446, %v1005_v40   ;;  %1009 = vperm.xlu0 %1445, %v1003_v41   ;;  %v999_v46 = vld [vmem:[#allocation2] sm:$0xff] }
 0x16b   : > { %v1002_v51 = vld [vmem:[#allocation2 + $0x18] sm:$0xff] }
 0x16d   : > { %1024 = vperm.xlu1 %1446, %v1006_v43   ;;  %1014 = vperm.xlu0 %1445, %v1004_v44   ;;  %v1000_v52 = vld [vmem:[#allocation2 + $0x8] sm:$0xff] }
 0x1e4   : > { %v1020_v47 = vpop.permute.xlu1 %1019  ;;  %v1010_v48 = vpop.permute.xlu0 %1009 }
 0x1e5   : > { %v1029_v49 = vadd.f32 %v1020_v47, %v1001_v45  ;;  %v1027_v50 = vadd.f32 %v1010_v48, %v999_v46 }
 0x1e7   : > { %v1033_v53 = vmax.f32 %v1029_v49, 0.0  ;;  %v1031_v54 = vmax.f32 %v1027_v50, 0.0 }
 0x1e8   : > { %v1025_v55 = vpop.permute.xlu1 %1024  ;;  %v1015_v56 = vpop.permute.xlu0 %1014 }
 0x1e9   : > { %v1276_v57 = vpack.c.bf16 %v1033_v53, %v1033_v53  ;;  %v1274_v58 = vpack.c.bf16 %v1031_v54, %v1031_v54  ;;  %v1030_v59 = vadd.f32 %v1025_v55, %v1002_v51  ;;  %v1028_v60 = vadd.f32 %v1015_v56, %v1000_v52 }
 0x1eb   : > { %1054 = vst.msk [vmem:[%s1591_s27 + $0x8] sm:$0xf] %vm1051_vm3, %v1276_v57  ;;  %1052 = vst.msk [vmem:[%s1591_s27] sm:$0xf] %vm1051_vm3, %v1274_v58  ;;  %v1034_v61 = vmax.f32 %v1030_v59, 0.0  ;;  %v1032_v62 = vmax.f32 %v1028_v60, 0.0 }
 0x1ed   : > { %v1277_v63 = vpack.c.bf16 %v1034_v61, %v1034_v61  ;;  %v1275_v0 = vpack.c.bf16 %v1032_v62, %v1032_v62 }
 0x1ef   : > { %1055 = vst.msk [vmem:[%s1591_s27 + $0xc] sm:$0xf] %vm1051_vm3, %v1277_v63  ;;  %1053 = vst.msk [vmem:[%s1591_s27 + $0x4] sm:$0xf] %vm1051_vm3, %v1275_v0 }
 0x1f0 PF: > { %s13_s18 = sadd.s32 1, %s1501_s18   ;;  %s1683_s30 = sld [smem:[#allocation3_spill]] }
 0x1f1   : > { %p10_p12 = scmp.ge.s32.totalorder %s13_s18, 14   ;;  %s1684_s12 = smov %s1489_s15 }
 0x1f2   : > { %s1685_s13 = smov %s1493_s16  ;;  %s1686_s14 = smov %s1497_s17 }
 0x1f3   : > { %s1687_s15 = smov %s1691_s19  ;;  %s1688_s16 = smov %s1695_s20 }
 0x1f4   :  { %12 = sbr.rel (!%p10_p12) target bundleno = 4 (0x4), region = 86 }
 0x1f6   : > { %s1689_s17 = smov %s1683_s30 }

// kernel: _lambda_.10
= control target key start
LH: loop header
LB: loop body
LE: loop exit
PB: predicated region body
PF: predicated region fallthrough
CT: control target
= control target key end

     0   :  { %vm19_vm0 = vcmask 123904   ;;  %v247_v0 = vmov 0.0   ;;  %vm248_vm1 = vmmov 0   ;;  %vm47_vm2 = vcmask 1041409   ;;  %s308_s1 = inlined_call_operand.vmem [shape: f32[16,32], index: 1, kind: input, shape index: {}]   ;;  %s309_s0 = inlined_call_operand.vmem [shape: f32[2,2,16], index: 0, kind: input, shape index: {}]   ;;  %s310_s3 = inlined_call_operand.vmem [shape: f32[32,3], index: 3, kind: input, shape index: {}]   ;;  %s311_s2 = inlined_call_operand.vmem [shape: f32[1,32], index: 2, kind: input, shape index: {}]   ;;  %s312_s4 = inlined_call_operand.vmem [shape: f32[2,3], index: 4, kind: output, shape index: {}]  }
   0x1   :  { %225 = vmatprep.subr.mxu0 %v247_v0  ;;  %v37_v1 = vld [vmem:[%s308_s1 + $0x8] sm:$0xff]  ;;  %v36_v2 = vld [vmem:[%s308_s1] sm:$0xff]  ;;  %229 = vmatprep.mubr.msk.f32.mxu0 %vm248_vm1, %v247_v0  ;;  %v128_v6 = vld [vmem:[%s310_s3 + $0x18] sm:$0xff]  ;;  %vm49_vm3 = vcmask 130048   ;;  %vm129_vm5 = vcmask 261120   ;;  %vm208_vm6 = vcmask 17408  }
   0x2   :  { %v17_v3 = vld [vmem:[%s309_s0] sm:$0x3]  ;;  %226 = vmatpush3.msra.mxu0 %v37_v1  ;;  %v18_v4 = vld [vmem:[%s309_s0 + $0x2] sm:$0x3]  ;;  %232 = vmatprep.subr.mxu1 %v247_v0  ;;  %v127_v23 = vld [vmem:[%s310_s3 + $0x10] sm:$0xff] }
   0x3   :  { %v20_v5 = vsel %vm19_vm0, %v17_v3, 0.0  ;;  %227 = vmatprep.subr.mxu0 %v247_v0  ;;  %v27_v8 = vsel %vm19_vm0, %v18_v4, 0.0  ;;  %233 = vmatpush3.msra.mxu1 %v128_v6  ;;  %v126_v24 = vld [vmem:[%s310_s3 + $0x8] sm:$0xff]  ;;  %v125_v25 = vld [vmem:[%s310_s3] sm:$0xff] }
   0x4   :  { %v21_v7 = vrot.slane %v20_v5, 4  ;;  %228 = vmatpush3.msra.mxu0 %v36_v2  ;;  %v28_v9 = vrot.slane %v27_v8, 4  ;;  %234 = vmatprep.subr.mxu1 %v247_v0  ;;  %v214_v26 = vld [vmem:[%s311_s2] ss:$0 sm:$0xff] }
   0x5   :  { %240 = vmatprep.mubr.msk.f32.mxu1 %vm248_vm1, %v247_v0  ;;  %235 = vmatpush3.msra.mxu1 %v127_v23 }
   0x6   :  { %v22_v10 = vadd.f32 %v21_v7, %v20_v5  ;;  %v29_v11 = vadd.f32 %v28_v9, %v27_v8  ;;  %236 = vmatprep.subr.mxu1 %v247_v0 }
   0x7   :  { %237 = vmatpush3.msra.mxu1 %v126_v24 }
   0x8   :  { %v23_v12 = vrot.slane %v22_v10, 2  ;;  %v30_v13 = vrot.slane %v29_v11, 2  ;;  %238 = vmatprep.subr.mxu1 %v247_v0 }
   0x9   :  { %239 = vmatpush3.msra.mxu1 %v125_v25 }
   0xa   :  { %v24_v14 = vadd.f32 %v23_v12, %v22_v10  ;;  %v31_v15 = vadd.f32 %v30_v13, %v29_v11 }
   0xc   :  { %v25_v16 = vrot.slane %v24_v14, 1  ;;  %v32_v17 = vrot.slane %v31_v15, 1 }
   0xe   :  { %v26_v18 = vadd.f32 %v25_v16, %v24_v14  ;;  %v33_v19 = vadd.f32 %v32_v17, %v31_v15 }
  0x10   :  { %v34_v20 = vmul.f32 0.125, %v26_v18  ;;  %v35_v21 = vmul.f32 0.125, %v33_v19 }
  0x12   :  { %v48_v22 = vsel %vm47_vm2, %v35_v21, %v34_v20 }
  0x13   :  { %230 = vmatmul.mubr.msk.f32.vlgmr.msra.gmra.mxu0 %vm49_vm3, %v48_v22 }
  0xd3   :  { %v118_v27 = vpop.f32.mrf.mxu0 }
  0xd4   :  { %v119_v28 = vadd.f32 %v214_v26, %v118_v27 }
  0xd5   :  { %v231_v29 = vpop.f32.mrf.mxu0 }
  0xd6   :  { %vm122_vm4 = vcmp.gt.f32.partialorder %v119_v28, 0.0  ;;  %v123_v30 = vmul.f32 0.1, %v119_v28 }
  0xd8   :  { %v124_v31 = vsel %vm122_vm4, %v119_v28, %v123_v30 }
  0xd9   :  { %241 = vmatmul.mubr.msk.f32.vlgmr.msra.gmra.mxu1 %vm129_vm5, %v124_v31 }
 0x199   :  { %v199_v32 = vpop.f32.mrf.mxu1 }
 0x19a   :  { %245 = vtanh.f32 %v199_v32 }
 0x19b   :  { %v242_v33 = vpop.f32.mrf.mxu1 }
 0x1a7   :  { %v246_v34 = vpop.eup %245 }
 0x1a8   :  { %v204_v35 = vmul.f32 0.5, %v246_v34 }
 0x1aa   :  { %v205_v36 = vadd.f32 0.5, %v204_v35 }
 0x1ac   :  { %v206_v37 = vmul.f32 9.0, %v205_v36 }
 0x1ae   :  { %v207_v38 = vadd.f32 1.0, %v206_v37 }
 0x1b0   :  { %209 = vst.msk [vmem:[%s312_s4] sm:$0x3] %vm208_vm6, %v207_v38 }

// kernel: _lambda_.9
= control target key start
LH: loop header
LB: loop body
LE: loop exit
PB: predicated region body
PF: predicated region fallthrough
CT: control target
= control target key end

     0   :  { %s1294_s12 = smov 0   ;;  %s1296_s13 = smov 0   ;;  %s1462_s0 = inlined_call_operand.vmem [shape: bf16[3,3,3,16,32], index: 0, kind: input, shape index: {}]   ;;  %s1463_s1 = inlined_call_operand.vmem [shape: f32[16,1], index: 1, kind: input, shape index: {}]   ;;  %s1464_s2 = inlined_call_operand.vmem [shape: bf16[2,4,3,1,32,8], index: 2, kind: input, shape index: {}]   ;;  %s1465_s3 = inlined_call_operand.vmem [shape: f32[2,2,16,1], index: 3, kind: output, shape index: {}]  }
   0x1   :  { %s1298_s14 = smov 0   ;;  %s1300_s15 = smov 0  }
   0x2   :  { %s1302_s16 = smov 0   ;;  %s1304_s17 = smov 0  }
   0x3   :  { %s1306_s18 = smov 0  }
   0x4 LB: > { %s25_s19 = sadd.s32 1, %s1254_s15  ;;  %s28_s20 = sadd.s32 1, %s1258_s16  ;;  %s1266_s18 = sphi %s1306_s18, %s13_s18   ;;  %s1262_s17 = sphi %s1304_s17, %s1473_s17   ;;  %s1258_s16 = sphi %s1302_s16, %s1472_s16   ;;  %s1254_s15 = sphi %s1300_s15, %s1471_s15   ;;  %s1250_s14 = sphi %s1298_s14, %s1470_s14   ;;  %s1246_s13 = sphi %s1296_s13, %s1469_s13   ;;  %s1242_s12 = sphi %s1294_s12, %s1468_s12  }
   0x5   : > { %p26_p0 = scmp.ge.s32.totalorder %s25_s19, 3  ;;  %p974_p1 = scmp.ge.s32.totalorder %s1266_s18, 1 }
   0x6   : > { %p178_p2 = scmp.lt.s32.totalorder %s1266_s18, 13  ;;  %s32_s21 = sadd.s32 1, %s1262_s17 }
   0x7   : > { %s1475_s19 = smov (%p26_p0, %s25_s19), 0  ;;  %s1477_s20 = smov (!%p26_p0, %s28_s20), %s1258_s16 }
   0x8   : > { %p179_p3 = pnand %p974_p1, %p178_p2  ;;  %p30_p4 = scmp.ge.s32.totalorder %s1477_s20, 2 }
   0x9   : > { %p216_p6 = scmp.lt.s32.totalorder (!%p179_p3), %s1242_s12, 2  ;;  %s221_s22 = sadd.s32 (!%p179_p3), %s1242_s12, %s1246_s13 }
   0xa   : > { %s1479_s20 = smov (%p30_p4, %s1477_s20), 0  ;;  %s1481_s21 = smov (!%p30_p4, %s32_s21), %s1262_s17 }
   0xb   : > { %p34_p5 = scmp.ge.s32.totalorder %s1481_s21, 2  ;;  %182 = sbr.rel (%p179_p3) target bundleno = 645 (0x285), region = 32 }
   0xc   : > { %p222_p7 = scmp.lt.s32.totalorder (!%p179_p3), %s1250_s14, 1  ;;  %p224_p8 = scmp.lt.s32.totalorder (!%p179_p3), %s221_s22, 3 }
   0xd   : > { %s1483_s21 = smov (%p34_p5, %s1481_s21), 0  ;;  %p234_p9 = scmp.lt.s32.totalorder (!%p179_p3), %s1246_s13, 1 }
   0xe   : > { %1466 = sst [smem:[#allocation3_spill]] %s1483_s21  ;;  %p980_p10 = scmp.ne.s32.totalorder (!%p179_p3), %s1242_s12, 0 }
  0x10   : > { %s217_s23 = scalar_select %p216_p6, %s1242_s12, 2 }
  0x11   : > { %s1485_s14 = smov (!%p222_p7, %s1250_s14), 1  ;;  %s1487_s22 = smov (!%p224_p8, %s221_s22), 3 }
  0x12   : > { %s1131_s24 = smul.u32 72, %s217_s23  ;;  %s978_s30 = sshll.u32 %s1485_s14, 2 }
  0x13   : > { %s1133_s28 = smul.u32 48, %s1485_s14  ;;  %s1489_s13 = smov (!%p234_p9, %s1246_s13), 1 }
  0x14   : > { %s1348_s27 = scalar_lea.vmem %s1462_s0, %s1131_s24  ;;  %s1132_s29 = smul.u32 12, %s1487_s22 }
  0x15   : > { %s977_s6 = sshll.u32 %s1489_s13, 1  ;;  %245 = sbr.rel (%p980_p10) target bundleno = 28 (0x1c), region = 36 }
  0x16   : > { %s228_s4 = sadd.s32 %s1133_s28, %s1132_s29  ;;  %s238_s10 = sadd.s32 %s978_s30, %s977_s6 }
  0x17   : > { %s976_s5 = sshll.u32 %s228_s4, 2  ;;  %s979_s11 = sshll.u32 %s238_s10, 3 }
  0x18   : > { %s1354_s9 = scalar_lea.vmem %s1464_s2, %s976_s5  ;;  %s1359_s25 = scalar_lea.vmem %s1465_s3, %s979_s11 }
  0x1a   : > { %vm246_vm0 = vcmask 31744   ;;  %v1268_v0 = vmov 0.0  }
  0x1b   : > { %247 = vst.msk [vmem:[#allocation2] sm:$0xff] %vm246_vm0, %v1268_v0  ;;  %248 = vst.msk [vmem:[#allocation2 + $0x8] sm:$0xff] %vm246_vm0, %v1268_v0 }
  0x1c PF: > { %v1196_v1 = vld [vmem:[%s1354_s9 + $0x8] sm:$0xff]   ;;  %v1197_v2 = vld [vmem:[%s1354_s9 + $0x18] sm:$0xff]   ;;  %s1269_s13 = smov 126   ;;  %v1198_v3 = vld [vmem:[%s1354_s9] sm:$0xff]   ;;  %v1270_v4 = vmov 0.0   ;;  %vm1271_vm1 = vmmov 0  }
  0x1d   : > { %473 = vrot.lane.b32.xlu0 %v1196_v1, %s1269_s13  ;;  %1059 = vmatprep.subr.bf16.mxu0 %v1270_v4  ;;  %v1200_v5 = vld [vmem:[%s1354_s9 + $0x10] sm:$0xff]   ;;  %v1199_v6 = vld [vmem:[%s1354_s9 + $0x28] sm:$0xff]   ;;  %v1202_v7 = vld [vmem:[%s1348_s27] sm:$0xff]   ;;  %vm274_vm2 = vcmask 261120   ;;  %s1272_s14 = smov 124   ;;  %vm823_vm3 = vcmask 31744  }
  0x1e   : > { %1067 = vmatprep.subr.bf16.mxu1 %v1270_v4  ;;  %471 = vrot.lane.b32.xlu1 %v1198_v3, %s1269_s13  ;;  %v1203_v8 = vld [vmem:[%s1348_s27 + $0x8] sm:$0xff]   ;;  %v1201_v9 = vld [vmem:[%s1354_s9 + $0x20] sm:$0xff]   ;;  %v1204_v10 = vld [vmem:[%s1348_s27 + $0x10] sm:$0xff]   ;;  %p1029_p11 = scmp.ne.s32.totalorder %s1242_s12, 2 }
  0x1f   : > { %1060 = vmatpush3.bf16.msra.mxu0 %v1196_v1  ;;  %1063 = vmatprep.mubr.msk.bf16.mxu0 %vm1271_vm1, %v1270_v4  ;;  %v1205_v14 = vld [vmem:[%s1348_s27 + $0x18] sm:$0xff]   ;;  %v1206_v17 = vld [vmem:[%s1348_s27 + $0x20] sm:$0xff]   ;;  %v1207_v20 = vld [vmem:[%s1348_s27 + $0x28] sm:$0xff]  }
  0x20   : > { %1061 = vmatprep.subr.bf16.mxu0 %v1270_v4  ;;  %1068 = vmatpush3.bf16.msra.mxu1 %v1197_v2  ;;  %v1208_v23 = vld [vmem:[%s1348_s27 + $0x30] sm:$0xff]   ;;  %v1209_v26 = vld [vmem:[%s1348_s27 + $0x38] sm:$0xff]   ;;  %v1210_v28 = vld [vmem:[%s1348_s27 + $0x40] sm:$0xff]  }
  0x21   : > { %533 = vrot.lane.b32.xlu0 %v1197_v2, %s1269_s13  ;;  %1069 = vmatprep.subr.bf16.mxu1 %v1270_v4 }
  0x22   : > { %1071 = vmatprep.mubr.msk.bf16.mxu1 %vm1271_vm1, %v1270_v4  ;;  %531 = vrot.lane.b32.xlu1 %v1200_v5, %s1269_s13  ;;  %v249_v29 = vld [vmem:[#allocation2] sm:$0xff]  ;;  %v250_v33 = vld [vmem:[#allocation2 + $0x8] sm:$0xff] }
  0x23   : > { %1062 = vmatpush3.bf16.msra.mxu0 %v1198_v3 }
  0x24   : > { %1075 = vmatprep.subr.bf16.mxu0 %v1270_v4  ;;  %1070 = vmatpush3.bf16.msra.mxu1 %v1200_v5 }
  0x25   : > { %593 = vrot.lane.b32.xlu0 %v1199_v6, %s1269_s13  ;;  %1083 = vmatprep.subr.bf16.mxu1 %v1270_v4 }
  0x26   : > { %1064 = vmatmul.mubr.msk.bf16.vlgmr.msra.gmra.mxu0 %vm274_vm2, %v1202_v7  ;;  %653 = vrot.lane.b32.xlu1 %v1196_v1, %s1272_s14 }
  0x27   : > { %1076 = vmatpush3.bf16.msra.mxu0 %v1199_v6  ;;  %1072 = vmatmul.mubr.msk.bf16.vlgmr.msra.gmra.mxu1 %vm274_vm2, %v1203_v8 }
  0x28   : > { %1077 = vmatprep.subr.bf16.mxu0 %v1270_v4  ;;  %1079 = vmatprep.mubr.msk.bf16.mxu0 %vm1271_vm1, %v1270_v4 }
  0x29   : > { %591 = vrot.lane.b32.xlu0 %v1201_v9, %s1269_s13  ;;  %1087 = vmatprep.mubr.msk.bf16.mxu1 %vm1271_vm1, %v1270_v4 }
  0x2a   : > { %651 = vrot.lane.b32.xlu1 %v1198_v3, %s1272_s14 }
  0x2b   : > { %1078 = vmatpush3.bf16.msra.mxu0 %v1201_v9 }
  0x2c   : > { %1091 = vmatprep.subr.bf16.mxu0 %v1270_v4 }
  0x2d   : > { %713 = vrot.lane.b32.xlu0 %v1197_v2, %s1272_s14 }
  0x2e   : > { %1080 = vmatmul.mubr.msk.bf16.vlgmr.msra.gmra.mxu0 %vm274_vm2, %v1204_v10  ;;  %773 = vrot.lane.b32.xlu1 %v1199_v6, %s1272_s14 }
  0x2f   : > { %1095 = vmatprep.mubr.msk.bf16.mxu0 %vm1271_vm1, %v1270_v4 }
  0x31   : > { %711 = vrot.lane.b32.xlu0 %v1200_v5, %s1272_s14 }
  0x32   : > { %771 = vrot.lane.b32.xlu1 %v1201_v9, %s1272_s14 }
  0x8f   : > { %v474_v11 = vpop.permute.xlu0 %473 }
  0x90   : > { %1084 = vmatpush3.bf16.msra.mxu1 %v474_v11  ;;  %v472_v12 = vpop.permute.xlu1 %471 }
  0x91   : > { %1085 = vmatprep.subr.bf16.mxu1 %v1270_v4 }
  0x93   : > { %v534_v13 = vpop.permute.xlu0 %533 }
  0x94   : > { %1086 = vmatpush3.bf16.msra.mxu1 %v472_v12  ;;  %1092 = vmatpush3.bf16.msra.mxu0 %v534_v13  ;;  %v532_v15 = vpop.permute.xlu1 %531 }
  0x95   : > { %1099 = vmatprep.subr.bf16.mxu1 %v1270_v4  ;;  %1093 = vmatprep.subr.bf16.mxu0 %v1270_v4 }
  0x97   : > { %v594_v16 = vpop.permute.xlu0 %593  ;;  %1088 = vmatmul.mubr.msk.bf16.vlgmr.msra.gmra.mxu1 %vm274_vm2, %v1205_v14 }
  0x98   : > { %1094 = vmatpush3.bf16.msra.mxu0 %v532_v15  ;;  %1100 = vmatpush3.bf16.msra.mxu1 %v594_v16  ;;  %v654_v18 = vpop.permute.xlu1 %653 }
  0x99   : > { %1101 = vmatprep.subr.bf16.mxu1 %v1270_v4  ;;  %1107 = vmatprep.subr.bf16.mxu0 %v1270_v4 }
  0x9a   : > { %1103 = vmatprep.mubr.msk.bf16.mxu1 %vm1271_vm1, %v1270_v4 }
  0x9b   : > { %v592_v19 = vpop.permute.xlu0 %591  ;;  %1096 = vmatmul.mubr.msk.bf16.vlgmr.msra.gmra.mxu0 %vm274_vm2, %v1206_v17 }
  0x9c   : > { %1102 = vmatpush3.bf16.msra.mxu1 %v592_v19  ;;  %1108 = vmatpush3.bf16.msra.mxu0 %v654_v18  ;;  %v652_v21 = vpop.permute.xlu1 %651 }
  0x9d   : > { %1115 = vmatprep.subr.bf16.mxu1 %v1270_v4  ;;  %1109 = vmatprep.subr.bf16.mxu0 %v1270_v4 }
  0x9e   : > { %1111 = vmatprep.mubr.msk.bf16.mxu0 %vm1271_vm1, %v1270_v4 }
  0x9f   : > { %v714_v22 = vpop.permute.xlu0 %713  ;;  %1104 = vmatmul.mubr.msk.bf16.vlgmr.msra.gmra.mxu1 %vm274_vm2, %v1207_v20 }
  0xa0   : > { %1110 = vmatpush3.bf16.msra.mxu0 %v652_v21  ;;  %1116 = vmatpush3.bf16.msra.mxu1 %v714_v22  ;;  %v774_v24 = vpop.permute.xlu1 %773 }
  0xa1   : > { %1117 = vmatprep.subr.bf16.mxu1 %v1270_v4  ;;  %1123 = vmatprep.subr.bf16.mxu0 %v1270_v4 }
  0xa2   : > { %1119 = vmatprep.mubr.msk.bf16.mxu1 %vm1271_vm1, %v1270_v4 }
  0xa3   : > { %v712_v25 = vpop.permute.xlu0 %711  ;;  %1112 = vmatmul.mubr.msk.bf16.vlgmr.msra.gmra.mxu0 %vm274_vm2, %v1208_v23 }
  0xa4   : > { %1118 = vmatpush3.bf16.msra.mxu1 %v712_v25  ;;  %1124 = vmatpush3.bf16.msra.mxu0 %v774_v24  ;;  %v772_v27 = vpop.permute.xlu1 %771 }
  0xa5   : > { %1125 = vmatprep.subr.bf16.mxu0 %v1270_v4  ;;  %1127 = vmatprep.mubr.msk.bf16.mxu0 %vm1271_vm1, %v1270_v4 }
  0xa7   : > { %1120 = vmatmul.mubr.msk.bf16.vlgmr.msra.gmra.mxu1 %vm274_vm2, %v1209_v26 }
  0xa8   : > { %1126 = vmatpush3.bf16.msra.mxu0 %v772_v27 }
  0xab   : > { %1128 = vmatmul.mubr.msk.bf16.vlgmr.msra.gmra.mxu0 %vm274_vm2, %v1210_v28 }
  0xe6   : > { %v312_v30 = vpop.f32.mrf.mxu0 }
  0xe7   : > { %v319_v31 = vadd.f32 %v312_v30, %v249_v29  ;;  %v383_v34 = vpop.f32.mrf.mxu1 }
  0xe8   : > { %v1065_v32 = vpop.f32.mrf.mxu0 }
  0xe9   : > { %v390_v35 = vadd.f32 %v383_v34, %v319_v31  ;;  %v1073_v37 = vpop.f32.mrf.mxu1 }
  0xea   : > { %v315_v36 = vpop.f32.mrf.mxu0 }
  0xeb   : > { %v320_v38 = vadd.f32 %v315_v36, %v250_v33  ;;  %v386_v40 = vpop.f32.mrf.mxu1 }
  0xec   : > { %v1066_v39 = vpop.f32.mrf.mxu0 }
  0xed   : > { %v391_v41 = vadd.f32 %v386_v40, %v320_v38  ;;  %v1074_v43 = vpop.f32.mrf.mxu1 }
  0xee   : > { %v454_v42 = vpop.f32.mrf.mxu0 }
  0xef   : > { %v461_v44 = vadd.f32 %v454_v42, %v390_v35 }
  0xf0   : > { %v1081_v45 = vpop.f32.mrf.mxu0 }
  0xf2   : > { %v457_v46 = vpop.f32.mrf.mxu0 }
  0xf3   : > { %v462_v47 = vadd.f32 %v457_v46, %v391_v41 }
  0xf4   : > { %v1082_v48 = vpop.f32.mrf.mxu0 }
 0x157   : > { %v514_v49 = vpop.f32.mrf.mxu1 }
 0x158   : > { %v521_v59 = vadd.f32 %v514_v49, %v461_v44 }
 0x159   : > { %v1089_v50 = vpop.f32.mrf.mxu1 }
 0x15b   : > { %v517_v51 = vpop.f32.mrf.mxu1  ;;  %v574_v52 = vpop.f32.mrf.mxu0 }
 0x15c   : > { %v581_v62 = vadd.f32 %v574_v52, %v521_v59  ;;  %v522_v1 = vadd.f32 %v517_v51, %v462_v47 }
 0x15d   : > { %v1090_v53 = vpop.f32.mrf.mxu1  ;;  %v1097_v54 = vpop.f32.mrf.mxu0 }
 0x15f   : > { %v577_v55 = vpop.f32.mrf.mxu0  ;;  %v634_v56 = vpop.f32.mrf.mxu1 }
 0x160   : > { %v641_v2 = vadd.f32 %v634_v56, %v581_v62  ;;  %v582_v5 = vadd.f32 %v577_v55, %v522_v1 }
 0x161   : > { %v1098_v57 = vpop.f32.mrf.mxu0  ;;  %v1105_v58 = vpop.f32.mrf.mxu1 }
 0x163   : > { %v637_v60 = vpop.f32.mrf.mxu1  ;;  %v694_v61 = vpop.f32.mrf.mxu0 }
 0x164   : > { %v701_v6 = vadd.f32 %v694_v61, %v641_v2  ;;  %v642_v9 = vadd.f32 %v637_v60, %v582_v5 }
 0x165   : > { %v1106_v63 = vpop.f32.mrf.mxu1  ;;  %v1113_v0 = vpop.f32.mrf.mxu0 }
 0x167   : > { %v697_v3 = vpop.f32.mrf.mxu0  ;;  %v754_v4 = vpop.f32.mrf.mxu1 }
 0x168   : > { %v761_v10 = vadd.f32 %v754_v4, %v701_v6  ;;  %v702_v13 = vadd.f32 %v697_v3, %v642_v9 }
 0x169   : > { %v1114_v7 = vpop.f32.mrf.mxu0  ;;  %v1121_v8 = vpop.f32.mrf.mxu1 }
 0x16b   : > { %v757_v11 = vpop.f32.mrf.mxu1  ;;  %v814_v12 = vpop.f32.mrf.mxu0 }
 0x16c   : > { %v821_v14 = vadd.f32 %v814_v12, %v761_v10  ;;  %v762_v17 = vadd.f32 %v757_v11, %v702_v13 }
 0x16d   : > { %v1122_v15 = vpop.f32.mrf.mxu1  ;;  %v1129_v16 = vpop.f32.mrf.mxu0 }
 0x16e   : > { %824 = vst.msk [vmem:[#allocation2] sm:$0xff] %vm823_vm3, %v821_v14  ;;  %829 = sbr.rel (%p1029_p11) target bundleno = 645 (0x285), region = 40 }
 0x16f   : > { %v817_v18 = vpop.f32.mrf.mxu0 }
 0x170   : > { %v822_v19 = vadd.f32 %v817_v18, %v762_v17 }
 0x171   : > { %v1130_v20 = vpop.f32.mrf.mxu0 }
 0x172   : > { %825 = vst.msk [vmem:[#allocation2 + $0x8] sm:$0xff] %vm823_vm3, %v822_v19 }
 0x173   : > { %v832_v21 = vld [vmem:[%s1463_s1] sm:$0xff]  ;;  %v1273_v22 = vmov 0   ;;  %v833_v23 = vld [vmem:[%s1463_s1 + $0x8] sm:$0xff]  ;;  %vm854_vm4 = vcmask 7168  }
 0x174   : > { %1211 = vset.pattern.permute.xlu0 %v1273_v22 }
 0x175   : > { %836 = vperm.xlu0 %1211, %v832_v21   ;;  %v830_v24 = vld [vmem:[#allocation2] sm:$0xff] }
 0x179   : > { %841 = vperm.xlu0 %1211, %v833_v23   ;;  %v831_v27 = vld [vmem:[#allocation2 + $0x8] sm:$0xff] }
 0x1f0   : > { %v837_v25 = vpop.permute.xlu0 %836 }
 0x1f1   : > { %v844_v26 = vadd.f32 %v837_v25, %v830_v24 }
 0x1f3   : > { %v846_v28 = vmax.f32 %v844_v26, 0.0 }
 0x1f4   : > { %v842_v29 = vpop.permute.xlu0 %841 }
 0x1f5   : > { %v845_v30 = vadd.f32 %v842_v29, %v831_v27  ;;  %v848_v31 = vsel %vm823_vm3, %v846_v28, 0.0 }
 0x1f6   : > { %849 = vadd.xlane.f32.xlu1 %v848_v31 }
 0x1f7   : > { %v847_v32 = vmax.f32 %v845_v30, 0.0 }
 0x1f9   : > { %v851_v33 = vsel %vm823_vm3, %v847_v32, 0.0 }
 0x1fa   : > { %852 = vadd.xlane.f32.xlu1 %v851_v33 }
 0x27f   : > { %v850_v34 = vpop.xlane.xlu1 %849 }
 0x280   : > { %855 = vst.msk [vmem:[%s1359_s25] sm:$0xff] %vm854_vm4, %v850_v34 }
 0x283   : > { %v853_v35 = vpop.xlane.xlu1 %852 }
 0x284   : > { %856 = vst.msk [vmem:[%s1359_s25 + $0x8] sm:$0xff] %vm854_vm4, %v853_v35 }
 0x285 PF: > { %s13_s18 = sadd.s32 1, %s1266_s18   ;;  %s1467_s27 = sld [smem:[#allocation3_spill]] }
 0x286   : > { %p10_p12 = scmp.ge.s32.totalorder %s13_s18, 14   ;;  %s1468_s12 = smov %s1254_s15 }
 0x287   : > { %s1469_s13 = smov %s1258_s16  ;;  %s1470_s14 = smov %s1262_s17 }
 0x288   : > { %s1471_s15 = smov %s1475_s19  ;;  %s1472_s16 = smov %s1479_s20 }
 0x289   :  { %12 = sbr.rel (!%p10_p12) target bundleno = 4 (0x4), region = 83 }
 0x28b   : > { %s1473_s17 = smov %s1467_s27 }

// kernel: _lambda_.11
= control target key start
LH: loop header
LB: loop body
LE: loop exit
PB: predicated region body
PF: predicated region fallthrough
CT: control target
= control target key end

     0   :  { %v300_v0 = vmov 0   ;;  %s469_s1 = inlined_call_operand.vmem [shape: f32[24,1], index: 1, kind: input, shape index: {}]   ;;  %s470_s0 = inlined_call_operand.vmem [shape: f32[24,1024], index: 0, kind: input, shape index: {}]   ;;  %s471_s2 = inlined_call_operand.vmem [shape: f32[24,1024], index: 2, kind: output, shape index: {}]  }
   0x1   :  { %202 = vset.pattern.permute.xlu0 %v300_v0  ;;  %v11_v1 = vld [vmem:[%s469_s1] sm:$0xff]  ;;  %203 = vset.pattern.permute.xlu1 %v300_v0  ;;  %v13_v2 = vld [vmem:[%s469_s1 + $0x10] sm:$0xff]  ;;  %v12_v3 = vld [vmem:[%s469_s1 + $0x8] sm:$0xff] }
   0x2   :  { %88 = vperm.xlu0 %202, %v11_v1   ;;  %98 = vperm.xlu1 %203, %v13_v2   ;;  %v14_v4 = vld [vmem:[%s470_s0] sm:$0xff]  ;;  %v15_v5 = vld [vmem:[%s470_s0 + $0x8] sm:$0xff]  ;;  %v16_v6 = vld [vmem:[%s470_s0 + $0x10] sm:$0xff] }
   0x3   :  { %v17_v7 = vld [vmem:[%s470_s0 + $0x18] sm:$0xff]  ;;  %204 = vlog2.f32 %v14_v4  ;;  %v18_v8 = vld [vmem:[%s470_s0 + $0x20] sm:$0xff]  ;;  %v19_v9 = vld [vmem:[%s470_s0 + $0x28] sm:$0xff] }
   0x4   :  { %206 = vlog2.f32 %v15_v5  ;;  %v20_v10 = vld [vmem:[%s470_s0 + $0x30] sm:$0xff]  ;;  %v21_v11 = vld [vmem:[%s470_s0 + $0x38] sm:$0xff]  ;;  %v30_v12 = vld [vmem:[%s470_s0 + $0x80] sm:$0xff] }
   0x5   :  { %208 = vlog2.f32 %v16_v6  ;;  %v31_v13 = vld [vmem:[%s470_s0 + $0x88] sm:$0xff]  ;;  %v32_v14 = vld [vmem:[%s470_s0 + $0x90] sm:$0xff]  ;;  %v33_v15 = vld [vmem:[%s470_s0 + $0x98] sm:$0xff] }
   0x6   :  { %93 = vperm.xlu0 %202, %v12_v3   ;;  %210 = vlog2.f32 %v17_v7  ;;  %v34_v16 = vld [vmem:[%s470_s0 + $0xa0] sm:$0xff]  ;;  %v35_v17 = vld [vmem:[%s470_s0 + $0xa8] sm:$0xff]  ;;  %v36_v18 = vld [vmem:[%s470_s0 + $0xb0] sm:$0xff] }
   0x7   :  { %212 = vlog2.f32 %v18_v8  ;;  %v37_v20 = vld [vmem:[%s470_s0 + $0xb8] sm:$0xff]  ;;  %v22_v22 = vld [vmem:[%s470_s0 + $0x40] sm:$0xff]  ;;  %v23_v24 = vld [vmem:[%s470_s0 + $0x48] sm:$0xff] }
   0x8   :  { %214 = vlog2.f32 %v19_v9  ;;  %v24_v26 = vld [vmem:[%s470_s0 + $0x50] sm:$0xff]  ;;  %v25_v28 = vld [vmem:[%s470_s0 + $0x58] sm:$0xff]  ;;  %v26_v30 = vld [vmem:[%s470_s0 + $0x60] sm:$0xff] }
   0x9   :  { %216 = vlog2.f32 %v20_v10  ;;  %v27_v32 = vld [vmem:[%s470_s0 + $0x68] sm:$0xff]  ;;  %v28_v35 = vld [vmem:[%s470_s0 + $0x70] sm:$0xff]  ;;  %v29_v36 = vld [vmem:[%s470_s0 + $0x78] sm:$0xff] }
   0xa   :  { %218 = vlog2.f32 %v21_v11 }
   0xb   :  { %220 = vlog2.f32 %v30_v12 }
   0xc   :  { %222 = vlog2.f32 %v31_v13 }
   0xd   :  { %224 = vlog2.f32 %v32_v14 }
   0xe   :  { %226 = vlog2.f32 %v33_v15 }
   0xf   :  { %228 = vlog2.f32 %v34_v16 }
  0x10   :  { %v205_v19 = vpop.eup %204  ;;  %230 = vlog2.f32 %v35_v17 }
  0x11   :  { %v207_v21 = vpop.eup %206  ;;  %232 = vlog2.f32 %v36_v18  ;;  %v39_v34 = vmul.f32 0.6931472, %v205_v19 }
  0x12   :  { %v209_v23 = vpop.eup %208  ;;  %234 = vlog2.f32 %v37_v20  ;;  %v41_v38 = vmul.f32 0.6931472, %v207_v21 }
  0x13   :  { %v211_v25 = vpop.eup %210  ;;  %236 = vlog2.f32 %v22_v22  ;;  %v43_v39 = vmul.f32 0.6931472, %v209_v23 }
  0x14   :  { %v213_v27 = vpop.eup %212  ;;  %238 = vlog2.f32 %v23_v24  ;;  %v45_v40 = vmul.f32 0.6931472, %v211_v25 }
  0x15   :  { %v215_v29 = vpop.eup %214  ;;  %240 = vlog2.f32 %v24_v26  ;;  %v47_v42 = vmul.f32 0.6931472, %v213_v27 }
  0x16   :  { %v217_v31 = vpop.eup %216  ;;  %242 = vlog2.f32 %v25_v28  ;;  %v49_v43 = vmul.f32 0.6931472, %v215_v29 }
  0x17   :  { %v219_v33 = vpop.eup %218  ;;  %244 = vlog2.f32 %v26_v30  ;;  %v51_v45 = vmul.f32 0.6931472, %v217_v31 }
  0x18   :  { %v221_v37 = vpop.eup %220  ;;  %246 = vlog2.f32 %v27_v32  ;;  %v53_v47 = vmul.f32 0.6931472, %v219_v33 }
  0x19   :  { %v223_v41 = vpop.eup %222  ;;  %248 = vlog2.f32 %v28_v35  ;;  %v71_v48 = vmul.f32 0.6931472, %v221_v37 }
  0x1a   :  { %v225_v44 = vpop.eup %224  ;;  %250 = vlog2.f32 %v29_v36  ;;  %v73_v58 = vmul.f32 0.6931472, %v223_v41 }
  0x1b   :  { %v227_v49 = vpop.eup %226  ;;  %v75_v59 = vmul.f32 0.6931472, %v225_v44 }
  0x1c   :  { %v229_v54 = vpop.eup %228  ;;  %v77_v4 = vmul.f32 0.6931472, %v227_v49 }
  0x1d   :  { %v231_v60 = vpop.eup %230  ;;  %v79_v7 = vmul.f32 0.6931472, %v229_v54 }
  0x1e   :  { %v233_v1 = vpop.eup %232  ;;  %v81_v11 = vmul.f32 0.6931472, %v231_v60 }
  0x1f   :  { %v235_v5 = vpop.eup %234  ;;  %v83_v15 = vmul.f32 0.6931472, %v233_v1 }
  0x20   :  { %v237_v9 = vpop.eup %236  ;;  %v85_v19 = vmul.f32 0.6931472, %v235_v5 }
  0x21   :  { %v239_v13 = vpop.eup %238  ;;  %v55_v24 = vmul.f32 0.6931472, %v237_v9 }
  0x22   :  { %v241_v17 = vpop.eup %240  ;;  %v57_v29 = vmul.f32 0.6931472, %v239_v13 }
  0x23   :  { %v243_v21 = vpop.eup %242  ;;  %v59_v33 = vmul.f32 0.6931472, %v241_v17 }
  0x24   :  { %v245_v25 = vpop.eup %244  ;;  %v61_v37 = vmul.f32 0.6931472, %v243_v21 }
  0x25   :  { %v247_v30 = vpop.eup %246 }
  0x7d   :  { %v89_v46 = vpop.permute.xlu0 %88  ;;  %v99_v57 = vpop.permute.xlu1 %98 }
  0x7e   :  { %v101_v50 = vmul.f32 %v89_v46, %v39_v34  ;;  %v102_v51 = vmul.f32 %v89_v46, %v41_v38  ;;  %v103_v52 = vmul.f32 %v89_v46, %v43_v39  ;;  %v104_v53 = vmul.f32 %v89_v46, %v45_v40  ;;  %v249_v34 = vpop.eup %248 }
  0x7f   :  { %v105_v55 = vmul.f32 %v89_v46, %v47_v42  ;;  %v106_v56 = vmul.f32 %v89_v46, %v49_v43  ;;  %v107_v61 = vmul.f32 %v89_v46, %v51_v45  ;;  %v108_v2 = vmul.f32 %v89_v46, %v53_v47  ;;  %v251_v38 = vpop.eup %250 }
  0x80   :  { %v125_v62 = vmul.f32 1.442695, %v101_v50  ;;  %v127_v63 = vmul.f32 1.442695, %v102_v51  ;;  %v129_v0 = vmul.f32 1.442695, %v103_v52  ;;  %v117_v8 = vmul.f32 %v99_v57, %v71_v48 }
  0x81   :  { %v131_v3 = vmul.f32 1.442695, %v104_v53  ;;  %v133_v6 = vmul.f32 1.442695, %v105_v55  ;;  %v135_v10 = vmul.f32 1.442695, %v106_v56  ;;  %v118_v12 = vmul.f32 %v99_v57, %v73_v58  ;;  %v94_v28 = vpop.permute.xlu0 %93 }
  0x82   :  { %252 = vpow2.f32 %v125_v62  ;;  %v137_v14 = vmul.f32 1.442695, %v107_v61  ;;  %v119_v16 = vmul.f32 %v99_v57, %v75_v59  ;;  %v139_v18 = vmul.f32 1.442695, %v108_v2 }
  0x83   :  { %254 = vpow2.f32 %v127_v63  ;;  %v120_v20 = vmul.f32 %v99_v57, %v77_v4  ;;  %v121_v22 = vmul.f32 %v99_v57, %v79_v7  ;;  %v157_v23 = vmul.f32 1.442695, %v117_v8 }
  0x84   :  { %256 = vpow2.f32 %v129_v0  ;;  %v122_v26 = vmul.f32 %v99_v57, %v81_v11  ;;  %v159_v27 = vmul.f32 1.442695, %v118_v12  ;;  %v123_v31 = vmul.f32 %v99_v57, %v83_v15 }
  0x85   :  { %258 = vpow2.f32 %v131_v3  ;;  %v161_v32 = vmul.f32 1.442695, %v119_v16  ;;  %v124_v35 = vmul.f32 %v99_v57, %v85_v19  ;;  %v163_v36 = vmul.f32 1.442695, %v120_v20 }
  0x86   :  { %260 = vpow2.f32 %v133_v6  ;;  %v165_v39 = vmul.f32 1.442695, %v121_v22  ;;  %v63_v40 = vmul.f32 0.6931472, %v245_v25  ;;  %v109_v41 = vmul.f32 %v94_v28, %v55_v24 }
  0x87   :  { %262 = vpow2.f32 %v135_v10  ;;  %v167_v42 = vmul.f32 1.442695, %v122_v26  ;;  %v65_v43 = vmul.f32 0.6931472, %v247_v30  ;;  %v110_v44 = vmul.f32 %v94_v28, %v57_v29 }
  0x88   :  { %264 = vpow2.f32 %v137_v14  ;;  %v169_v45 = vmul.f32 1.442695, %v123_v31  ;;  %v67_v46 = vmul.f32 0.6931472, %v249_v34  ;;  %v111_v47 = vmul.f32 %v94_v28, %v59_v33 }
  0x89   :  { %266 = vpow2.f32 %v139_v18  ;;  %v171_v48 = vmul.f32 1.442695, %v124_v35  ;;  %v69_v49 = vmul.f32 0.6931472, %v251_v38  ;;  %v112_v50 = vmul.f32 %v94_v28, %v61_v37 }
  0x8a   :  { %268 = vpow2.f32 %v157_v23  ;;  %v113_v51 = vmul.f32 %v94_v28, %v63_v40  ;;  %v141_v52 = vmul.f32 1.442695, %v109_v41  ;;  %v114_v54 = vmul.f32 %v94_v28, %v65_v43 }
  0x8b   :  { %270 = vpow2.f32 %v159_v27  ;;  %v143_v55 = vmul.f32 1.442695, %v110_v44  ;;  %v115_v57 = vmul.f32 %v94_v28, %v67_v46  ;;  %v145_v58 = vmul.f32 1.442695, %v111_v47 }
  0x8c   :  { %272 = vpow2.f32 %v161_v32  ;;  %v116_v60 = vmul.f32 %v94_v28, %v69_v49  ;;  %v147_v61 = vmul.f32 1.442695, %v112_v50  ;;  %v149_v63 = vmul.f32 1.442695, %v113_v51 }
  0x8d   :  { %274 = vpow2.f32 %v163_v36  ;;  %v151_v1 = vmul.f32 1.442695, %v114_v54  ;;  %v153_v3 = vmul.f32 1.442695, %v115_v57 }
  0x8e   :  { %276 = vpow2.f32 %v165_v39  ;;  %v155_v5 = vmul.f32 1.442695, %v116_v60 }
  0x8f   :  { %v253_v53 = vpop.eup %252  ;;  %278 = vpow2.f32 %v167_v42 }
  0x90   :  { %v255_v56 = vpop.eup %254  ;;  %173 = vst [vmem:[%s471_s2] sm:$0xff] %v253_v53  ;;  %280 = vpow2.f32 %v169_v45 }
  0x91   :  { %v257_v59 = vpop.eup %256  ;;  %174 = vst [vmem:[%s471_s2 + $0x8] sm:$0xff] %v255_v56  ;;  %282 = vpow2.f32 %v171_v48 }
  0x92   :  { %v259_v62 = vpop.eup %258  ;;  %175 = vst [vmem:[%s471_s2 + $0x10] sm:$0xff] %v257_v59  ;;  %284 = vpow2.f32 %v141_v52 }
  0x93   :  { %v261_v0 = vpop.eup %260  ;;  %176 = vst [vmem:[%s471_s2 + $0x18] sm:$0xff] %v259_v62  ;;  %286 = vpow2.f32 %v143_v55 }
  0x94   :  { %v263_v2 = vpop.eup %262  ;;  %177 = vst [vmem:[%s471_s2 + $0x20] sm:$0xff] %v261_v0  ;;  %288 = vpow2.f32 %v145_v58 }
  0x95   :  { %v265_v4 = vpop.eup %264  ;;  %178 = vst [vmem:[%s471_s2 + $0x28] sm:$0xff] %v263_v2  ;;  %290 = vpow2.f32 %v147_v61 }
  0x96   :  { %v267_v6 = vpop.eup %266  ;;  %179 = vst [vmem:[%s471_s2 + $0x30] sm:$0xff] %v265_v4  ;;  %292 = vpow2.f32 %v149_v63 }
  0x97   :  { %v269_v7 = vpop.eup %268  ;;  %180 = vst [vmem:[%s471_s2 + $0x38] sm:$0xff] %v267_v6  ;;  %294 = vpow2.f32 %v151_v1 }
  0x98   :  { %v271_v8 = vpop.eup %270  ;;  %189 = vst [vmem:[%s471_s2 + $0x80] sm:$0xff] %v269_v7  ;;  %296 = vpow2.f32 %v153_v3 }
  0x99   :  { %v273_v9 = vpop.eup %272  ;;  %190 = vst [vmem:[%s471_s2 + $0x88] sm:$0xff] %v271_v8  ;;  %298 = vpow2.f32 %v155_v5 }
  0x9a   :  { %v275_v10 = vpop.eup %274  ;;  %191 = vst [vmem:[%s471_s2 + $0x90] sm:$0xff] %v273_v9 }
  0x9b   :  { %v277_v11 = vpop.eup %276  ;;  %192 = vst [vmem:[%s471_s2 + $0x98] sm:$0xff] %v275_v10 }
  0x9c   :  { %v279_v12 = vpop.eup %278  ;;  %193 = vst [vmem:[%s471_s2 + $0xa0] sm:$0xff] %v277_v11 }
  0x9d   :  { %v281_v13 = vpop.eup %280  ;;  %194 = vst [vmem:[%s471_s2 + $0xa8] sm:$0xff] %v279_v12 }
  0x9e   :  { %v283_v14 = vpop.eup %282  ;;  %195 = vst [vmem:[%s471_s2 + $0xb0] sm:$0xff] %v281_v13 }
  0x9f   :  { %v285_v15 = vpop.eup %284  ;;  %196 = vst [vmem:[%s471_s2 + $0xb8] sm:$0xff] %v283_v14 }
  0xa0   :  { %v287_v16 = vpop.eup %286  ;;  %181 = vst [vmem:[%s471_s2 + $0x40] sm:$0xff] %v285_v15 }
  0xa1   :  { %v289_v17 = vpop.eup %288  ;;  %182 = vst [vmem:[%s471_s2 + $0x48] sm:$0xff] %v287_v16 }
  0xa2   :  { %v291_v18 = vpop.eup %290  ;;  %183 = vst [vmem:[%s471_s2 + $0x50] sm:$0xff] %v289_v17 }
  0xa3   :  { %v293_v19 = vpop.eup %292  ;;  %184 = vst [vmem:[%s471_s2 + $0x58] sm:$0xff] %v291_v18 }
  0xa4   :  { %v295_v20 = vpop.eup %294  ;;  %185 = vst [vmem:[%s471_s2 + $0x60] sm:$0xff] %v293_v19 }
  0xa5   :  { %v297_v21 = vpop.eup %296  ;;  %186 = vst [vmem:[%s471_s2 + $0x68] sm:$0xff] %v295_v20 }
  0xa6   :  { %v299_v22 = vpop.eup %298  ;;  %187 = vst [vmem:[%s471_s2 + $0x70] sm:$0xff] %v297_v21 }
  0xa7   :  { %188 = vst [vmem:[%s471_s2 + $0x78] sm:$0xff] %v299_v22 }

</bundles_post_ra>
